<compile_context>
chip_gen: v7x
topology: tpu7x:2x2x1
jax: 0.10.0
libtpu: 0.0.40
codegen_flags: <defaults>
</compile_context>

<pallas_src>
import functools

import numpy as np
import jax
import jax.numpy as jnp
from jax.experimental import pallas as pl
from jax.experimental.pallas import tpu as pltpu

EPS = 1e-5            # BatchNorm eps
ALPHA = 0.1           # LeakyReLU negative slope
LANE = 128            # lane padding target
CH, F1, F2 = 3, 40, 80
KS = (2, 3, 5)        # conv kernel sizes
H_IN = 11             # 11 -> 10 -> 8 -> 4 -> MaxPool2d(4) -> 1x1
W1 = H_IN - KS[0] + 1  # spatial width after the host-packed k=2 layer (=10)
POOL = 4
LABELS = 4
FDIM = 5
assert H_IN - sum(k - 1 for k in KS) == POOL


# ----------------------------------------------------------------------------
# Kernel 1: fused conv tower (Conv+BN+LReLU x3, MaxPool2d(4), int BN+LReLU)
# ----------------------------------------------------------------------------
def _tower_kernel(x_ref, w_ref, sb_ref, o_ref, *, n):
    # x_ref : (100*n, 128) bf16  layer-1 im2col slab, row = (h*10+w)*n + s,
    #                            lanes [0,12) valid (K-packed 2x2x3 window).
    # w_ref : (35, 128, 128) bf16  [w1_packed, 9x w2 window slices, 25x w3].
    # sb_ref: (8, 128)  f32  [s1,b1,s2,b2,s3,b3,s_int,b_int] folded BN.
    # o_ref : (n, 128)  f32  pooled + int-BN + LeakyReLU features.
    sb = sb_ref[...]

    def bn_lrelu(acc, li):
        y = acc * sb[2 * li:2 * li + 1] + sb[2 * li + 1:2 * li + 2]
        return jnp.where(y > 0, y, ALPHA * y)          # f32 epilogue

    # layer 1: host-side K-packed im2col -> a single bf16 matmul.
    acc = jnp.dot(x_ref[...], w_ref[0], preferred_element_type=jnp.float32)
    x = bn_lrelu(acc, 0).astype(jnp.bfloat16)           # (100n, 128)

    # layers 2 (k=3) and 3 (k=5): shift-and-accumulate; with the
    # position-major layout a (di,dj) tap is a row shift of (di*10+dj)*n and
    # every junk row lies above the consumed region, so s_out shrinks to
    # 78n then 34n rows with no padding needed.
    widx = 1
    for li, k in ((1, KS[1]), (2, KS[2])):
        s_out = x.shape[0] - (k - 1) * (W1 + 1) * n
        acc = jnp.zeros((s_out, LANE), jnp.float32)
        for di in range(k):
            for dj in range(k):
                sh = (di * W1 + dj) * n
                acc = acc + jnp.dot(x[sh:sh + s_out, :], w_ref[widx],
                                    preferred_element_type=jnp.float32)
                widx += 1
        y = bn_lrelu(acc, li)
        x = y.astype(jnp.bfloat16) if li == 1 else y     # keep f32 into pooling

    # MaxPool2d(4): the 16 valid window positions are the contiguous n-row
    # slices starting at (h*10+w)*n -> O(1)-in-N maximum chain, then the
    # int_conv BatchNorm + LeakyReLU, one lane-dense store.
    pooled = x[0:n, :]
    for h in range(POOL):
        for w in range(POOL):
            if h == 0 and w == 0:
                continue
            p = (h * W1 + w) * n
            pooled = jnp.maximum(pooled, x[p:p + n, :])
    pooled = pooled * sb[6:7] + sb[7:8]
    o_ref[...] = jnp.where(pooled > 0, pooled, ALPHA * pooled)


def conv_towers(x, w, sb, *, n):
    T, S, C = x.shape
    kern = functools.partial(_tower_kernel, n=n)
    return pl.pallas_call(
        kern,
        grid=(T,),
        in_specs=[
            pl.BlockSpec((None, S, C), lambda t: (t, 0, 0)),
            pl.BlockSpec((None,) + tuple(w.shape[1:]), lambda t: (t, 0, 0, 0)),
            pl.BlockSpec((None,) + tuple(sb.shape[1:]), lambda t: (t, 0, 0)),
        ],
        out_specs=pl.BlockSpec((None, n, C), lambda t: (t, 0, 0)),
        out_shape=jax.ShapeDtypeStruct((T, n, C), jnp.float32),
        # v7x note: 3 grid steps over 2 TensorCores is a 2:1 imbalance; kept
        # anyway since per-tower halo-free M-splitting would complicate the
        # shift-and-accumulate BlockSpecs (v5e/v6e have a single TC).
        compiler_params=pltpu.CompilerParams(
            dimension_semantics=("parallel",)),
    )(x, w, sb)


# ----------------------------------------------------------------------------
# Kernel 2: fused MLP head (uncert x3, fgen, labelpredic, softmax, argmax)
# ----------------------------------------------------------------------------
def _head_kernel(feat_ref, w_ref, sb_ref, probs_ref, f_ref, idx_ref, *, labels):
    n = feat_ref.shape[0] // 3
    sb = sb_ref[...]                                     # (18, 128) f32
    feat_bf = feat_ref[...].astype(jnp.bfloat16)         # (3n, 128) rows [x,z,y]

    def dot(a, wi):
        return jnp.dot(a, w_ref[wi], preferred_element_type=jnp.float32)

    def bn_lrelu(y, si, act=True):
        y = y * sb[si:si + 1] + sb[si + 1:si + 2]
        return jnp.where(y > 0, y, ALPHA * y) if act else y

    # uncert (shared weights): cat([branch_feat, feat_x]) @ W ==
    #   branch_feat @ W_top + feat_x @ W_bot.  The W_bot term is identical for
    #   all three branches -> computed ONCE (hoisted); the branches are
    #   batched along M so each uncert layer is a single matmul on 3n rows.
    f0w = dot(feat_bf[0:n], 1)                           # (n, 128), hoisted
    h = dot(feat_bf, 0) + jnp.concatenate([f0w, f0w, f0w], axis=0)
    h = bn_lrelu(h, 0).astype(jnp.bfloat16)
    h = bn_lrelu(dot(h, 2), 2).astype(jnp.bfloat16)
    u = bn_lrelu(dot(h, 3), 4, act=False).astype(jnp.bfloat16)   # (3n, 128)

    # fgen on cat([u_x, u_z, u_y]) -> three partial matmuls on the row blocks.
    g = dot(u[0:n], 4) + dot(u[n:2 * n], 5) + dot(u[2 * n:3 * n], 6)
    g = bn_lrelu(g, 6).astype(jnp.bfloat16)
    g = bn_lrelu(dot(g, 7), 8).astype(jnp.bfloat16)
    f = bn_lrelu(dot(g, 8), 10, act=False)               # (n,128); cols [0,5) valid

    # labelpredic + masked softmax + first-index argmax (all in f32).
    l = bn_lrelu(dot(f.astype(jnp.bfloat16), 9), 12).astype(jnp.bfloat16)
    l = bn_lrelu(dot(l, 10), 14).astype(jnp.bfloat16)
    logits = bn_lrelu(dot(l, 11), 16, act=False)         # cols [0, labels) valid

    lane = jax.lax.broadcasted_iota(jnp.int32, logits.shape, 1)
    valid = lane < labels
    z = jnp.where(valid, logits, -1e30)
    m = jnp.max(z, axis=-1, keepdims=True)
    e = jnp.where(valid, jnp.exp(z - m), 0.0)
    s = jnp.sum(e, axis=-1, keepdims=True)
    probs_ref[...] = e / s        # exact divide keeps sum(probs)==1 to fp eps
    f_ref[...] = f
    idx_ref[...] = jnp.min(jnp.where(z >= m, lane, jnp.int32(2 ** 30)),
                           axis=-1, keepdims=True)


def mlp_head(feat, w, sb, *, labels=LABELS):
    n = feat.shape[0] // 3
    # No grid / no BlockSpec scaffolding: whole arrays live in VMEM (<1 MiB).
    return pl.pallas_call(
        functools.partial(_head_kernel, labels=labels),
        out_shape=[jax.ShapeDtypeStruct((n, LANE), jnp.float32),
                   jax.ShapeDtypeStruct((n, LANE), jnp.float32),
                   jax.ShapeDtypeStruct((n, 1), jnp.int32)],
    )(feat, w, sb)


# ----------------------------------------------------------------------------
# Parameter construction (deterministic; eval-mode BN folded to scale/shift,
# weights cast to bf16 and zero-padded to 128 lanes once at init time).
# ----------------------------------------------------------------------------
def _bn_fold(gamma, beta, mean, var, bias):
    scale = gamma / jnp.sqrt(var + EPS)
    return scale, (bias - mean) * scale + beta


def _rand_bn(key, c):
    k3, k4, k5, k6 = jax.random.split(key, 4)
    gamma = 1.0 + 0.1 * jax.random.normal(k3, (c,), jnp.float32)
    beta = 0.1 * jax.random.normal(k4, (c,), jnp.float32)
    mean = 0.1 * jax.random.normal(k5, (c,), jnp.float32)
    var = 1.0 + 0.1 * jnp.abs(jax.random.normal(k6, (c,), jnp.float32))
    return gamma, beta, mean, var


def _pad_vec(v):
    return jnp.zeros((LANE,), jnp.float32).at[:v.shape[0]].set(v)


def _pad_mat(w):
    return jnp.zeros((LANE, LANE), jnp.float32).at[:w.shape[0], :w.shape[1]].set(w)


def _conv_block(key, cin, cout, k):
    k1, k2, kb = jax.random.split(key, 3)
    w = jax.random.normal(k1, (cout, cin, k, k), jnp.float32) / np.sqrt(cin * k * k)
    b = 0.05 * jax.random.normal(k2, (cout,), jnp.float32)
    scale, shift = _bn_fold(*_rand_bn(kb, cout), bias=b)
    # torch layout (cout, cin, kh, kw) -> per-window (k*k, cin, cout).
    wm = jnp.transpose(w, (2, 3, 1, 0)).reshape(k * k, cin, cout)
    return wm, _pad_vec(scale), _pad_vec(shift)


def _tower_params(key):
    k0, k1, k2, k3 = jax.random.split(key, 4)
    w1, s1, b1 = _conv_block(k0, CH, F1, KS[0])
    w2, s2, b2 = _conv_block(k1, F1, F2, KS[1])
    w3, s3, b3 = _conv_block(k2, F2, F2, KS[2])
    si, bi = _bn_fold(*_rand_bn(k3, F2), bias=jnp.zeros((F2,), jnp.float32))
    # layer-1 weight is K-packed to match the host-side im2col lane order
    # ((di*2+dj)*3 + c); layers 2/3 stay per-window slices for shift-and-acc.
    w1p = _pad_mat(w1.reshape(KS[0] * KS[0] * CH, F1))
    slices = ([w1p]
              + [_pad_mat(w2[j]) for j in range(KS[1] * KS[1])]
              + [_pad_mat(w3[j]) for j in range(KS[2] * KS[2])])
    w = jnp.stack(slices, axis=0).astype(jnp.bfloat16)            # (35, 128, 128)
    sb = jnp.stack([s1, b1, s2, b2, s3, b3, _pad_vec(si), _pad_vec(bi)], axis=0)
    return w, sb


def _linear(key, din, dout, with_bn):
    k1, k2, kb = jax.random.split(key, 3)
    w = jax.random.normal(k1, (dout, din), jnp.float32) / np.sqrt(din)
    b = 0.05 * jax.random.normal(k2, (dout,), jnp.float32)
    if with_bn:
        scale, shift = _bn_fold(*_rand_bn(kb, dout), bias=b)
    else:
        scale, shift = jnp.ones((dout,), jnp.float32), b          # plain bias
    return w.T, scale, shift                                      # (din, dout)


def _head_params(key):
    ku = jax.random.split(key, 9)
    wu1, su1, bu1 = _linear(ku[0], 2 * F2, 10, True)    # uncert (shared)
    wu2, su2, bu2 = _linear(ku[1], 10, 20, True)
    wu3, su3, bu3 = _linear(ku[2], 20, F2, False)
    wf1, sf1, bf1 = _linear(ku[3], 3 * F2, 20, True)    # fgen
    wf2, sf2, bf2 = _linear(ku[4], 20, 30, True)
    wf3, sf3, bf3 = _linear(ku[5], 30, FDIM, False)
    wl1, sl1, bl1 = _linear(ku[6], FDIM, 12, True)      # labelpredic
    wl2, sl2, bl2 = _linear(ku[7], 12, 6, True)
    wl3, sl3, bl3 = _linear(ku[8], 6, LABELS, False)
    w_slots = [wu1[:F2], wu1[F2:], wu2, wu3,                       # concat splits
               wf1[:F2], wf1[F2:2 * F2], wf1[2 * F2:], wf2, wf3,
               wl1, wl2, wl3]
    sb_slots = [su1, bu1, su2, bu2, su3, bu3,
                sf1, bf1, sf2, bf2, sf3, bf3,
                sl1, bl1, sl2, bl2, sl3, bl3]
    w = jnp.stack([_pad_mat(m) for m in w_slots], axis=0).astype(jnp.bfloat16)
    sb = jnp.stack([_pad_vec(v) for v in sb_slots], axis=0)       # f32
    return w, sb


def init_params(key):
    ks = jax.random.split(key, 4)
    tower = [_tower_params(k) for k in ks[:3]]          # order: x, z, y towers
    hw, hsb = _head_params(ks[3])
    return dict(tower_w=jnp.stack([t[0] for t in tower], 0),   # (3, 35, 128, 128) bf16
                tower_sb=jnp.stack([t[1] for t in tower], 0),  # (3, 8, 128)      f32
                head_w=hw, head_sb=hsb)


# ----------------------------------------------------------------------------
# Forward pass
# ----------------------------------------------------------------------------
def _prep_inputs(neigh, neigh_z, neigh_y):
    # NCHW inputs -> layer-1 K-packed im2col in a position-major, sample-minor
    # row slab: row = (h*10 + w)*N + s, lanes = 2x2 window x 3 channels = 12.
    x = jnp.stack([neigh, neigh_z, neigh_y], axis=0)              # (3, N, C, H, W)
    T, N, C, H, W = x.shape
    assert (H, W, C) == (H_IN, H_IN, CH), "use 11x11x3 inputs (MaxPool2d(4) -> 1x1)"
    x = jnp.transpose(x, (0, 1, 3, 4, 2))                         # (3, N, H, W, C)
    cols = [x[:, :, di:di + W1, dj:dj + W1, :]
            for di in range(KS[0]) for dj in range(KS[0])]
    x = jnp.concatenate(cols, axis=-1)                            # (3, N, 10, 10, 12)
    x = jnp.transpose(x, (0, 2, 3, 1, 4)).reshape(T, W1 * W1 * N, KS[0] * KS[0] * C)
    x = jnp.pad(x, ((0, 0), (0, 0), (0, LANE - x.shape[-1])))
    return x.astype(jnp.bfloat16)


def forward(params, X1, neigh, neigh_z, neigh_y, uncert, uncert_z, uncert_y):
    # X1 and the *_uncert conv towers are dead in the reference forward
    # (activations shadowed); outputs are reproduced exactly without them.
    del X1, uncert, uncert_z, uncert_y
    n = neigh.shape[0]
    x = _prep_inputs(neigh, neigh_z, neigh_y)                     # (3, 100n, 128) bf16
    feat = conv_towers(x, params["tower_w"], params["tower_sb"], n=n)  # (3, n, 128)
    feat2 = feat.reshape(3 * n, LANE)                             # free XLA reshape
    probs_p, f_p, idx = mlp_head(feat2, params["head_w"], params["head_sb"])
    return probs_p[:, :LABELS], f_p[:, :FDIM], idx[:, 0]


# ----------------------------------------------------------------------------
if __name__ == "__main__":
    params = init_params(jax.random.PRNGKey(0))

    N, H = 2, 11  # 11x11 -> 10 -> 8 -> 4 -> MaxPool2d(4) -> 1x1 (flat dim 80)
    kx = jax.random.split(jax.random.PRNGKey(0), 8)
    X1 = jax.random.normal(kx[1], (N, 1), jnp.float32)
    neigh = jax.random.normal(kx[2], (N, 3, H, H), jnp.float32)
    neigh_z = jax.random.normal(kx[3], (N, 3, H, H), jnp.float32)
    neigh_y = jax.random.normal(kx[4], (N, 3, H, H), jnp.float32)
    uncert = jax.random.normal(kx[5], (N, 4, H, H), jnp.float32)
    uncert_z = jax.random.normal(kx[6], (N, 4, H, H), jnp.float32)
    uncert_y = jax.random.normal(kx[7], (N, 4, H, H), jnp.float32)

    fwd = jax.jit(forward)
    label_OHE, f, indices = fwd(params, X1, neigh, neigh_z, neigh_y,
                                uncert, uncert_z, uncert_y)
    jax.block_until_ready((label_OHE, f, indices))

    assert label_OHE.shape == (N, LABELS) and f.shape == (N, FDIM)
    assert indices.shape == (N,) and indices.dtype == jnp.int32
    assert bool(jnp.all(jnp.isfinite(label_OHE))) and bool(jnp.all(jnp.isfinite(f)))
    assert bool(jnp.allclose(jnp.sum(label_OHE, axis=1), 1.0, atol=1e-5))
    print("KERNEL_OK")
</pallas_src>

<mosaic_0001>
module attributes {stable_mosaic.version = 11 : i64} {
  func.func @_tower_kernel(%arg0: i32, %arg1: memref<1x200x128xbf16, #tpu.memory_space<vmem>>, %arg2: memref<1x35x128x128xbf16, #tpu.memory_space<vmem>>, %arg3: memref<1x8x128xf32, #tpu.memory_space<vmem>>, %arg4: memref<1x2x128xf32, #tpu.memory_space<vmem>>) attributes {dimension_semantics = [#tpu.dimension_semantics<parallel>], iteration_bounds = array<i64: 3>, scalar_prefetch = 0 : i64, scratch_operands = 0 : i64, tpu.core_type = #tpu.core_type<tc>, window_params = [{transform_indices = @transform_0, window_bounds = array<i64: 1, 200, 128>}, {transform_indices = @transform_1, window_bounds = array<i64: 1, 35, 128, 128>}, {transform_indices = @transform_2, window_bounds = array<i64: 1, 8, 128>}, {transform_indices = @transform_3, window_bounds = array<i64: 1, 2, 128>}]} {
    %c0 = arith.constant 0 : index
    %c0_0 = arith.constant 0 : index
    %c0_1 = arith.constant 0 : index
    %0 = vector.load %arg3[%c0, %c0_0, %c0_1] : memref<1x8x128xf32, #tpu.memory_space<vmem>>, vector<1x8x128xf32>
    %1 = vector.shape_cast %0 : vector<1x8x128xf32> to vector<8x128xf32>
    %c0_2 = arith.constant 0 : index
    %c0_3 = arith.constant 0 : index
    %c0_4 = arith.constant 0 : index
    %2 = vector.load %arg1[%c0_2, %c0_3, %c0_4] : memref<1x200x128xbf16, #tpu.memory_space<vmem>>, vector<1x200x128xbf16>
    %3 = vector.shape_cast %2 : vector<1x200x128xbf16> to vector<200x128xbf16>
    %c0_5 = arith.constant 0 : index
    %c0_6 = arith.constant 0 : index
    %c0_7 = arith.constant 0 : index
    %c0_8 = arith.constant 0 : index
    %4 = vector.load %arg2[%c0_5, %c0_6, %c0_7, %c0_8] : memref<1x35x128x128xbf16, #tpu.memory_space<vmem>>, vector<1x1x128x128xbf16>
    %5 = vector.shape_cast %4 : vector<1x1x128x128xbf16> to vector<128x128xbf16>
    %cst = arith.constant dense<0.000000e+00> : vector<200x128xf32>
    %6 = tpu.matmul %3, %5, %cst {dimension_numbers = #tpu.dot_dimension_numbers<[1], [0], [0], [1], [0, 0, 1, 1], [], []>} : vector<200x128xbf16>, vector<128x128xbf16>, vector<200x128xf32> -> vector<200x128xf32>
    %7 = vector.extract_strided_slice %1 {offsets = [0, 0], sizes = [1, 128], strides = [1, 1]} : vector<8x128xf32> to vector<1x128xf32>
    %8 = vector.broadcast %7 : vector<1x128xf32> to vector<200x128xf32>
    %9 = arith.mulf %6, %8 : vector<200x128xf32>
    %10 = vector.extract_strided_slice %1 {offsets = [1, 0], sizes = [1, 128], strides = [1, 1]} : vector<8x128xf32> to vector<1x128xf32>
    %11 = vector.broadcast %10 : vector<1x128xf32> to vector<200x128xf32>
    %12 = arith.addf %9, %11 : vector<200x128xf32>
    %cst_9 = arith.constant 0.000000e+00 : f32
    %13 = vector.broadcast %cst_9 : f32 to vector<200x128xf32>
    %14 = arith.cmpf ogt, %12, %13 : vector<200x128xf32>
    %cst_10 = arith.constant 1.000000e-01 : f32
    %15 = vector.broadcast %cst_10 : f32 to vector<200x128xf32>
    %16 = arith.mulf %15, %12 : vector<200x128xf32>
    %17 = arith.select %14, %12, %16 : vector<200x128xi1>, vector<200x128xf32>
    %18 = arith.truncf %17 : vector<200x128xf32> to vector<200x128xbf16>
    %cst_11 = arith.constant 0.000000e+00 : f32
    %19 = vector.broadcast %cst_11 : f32 to vector<156x128xf32>
    %20 = vector.extract_strided_slice %18 {offsets = [0, 0], sizes = [156, 128], strides = [1, 1]} : vector<200x128xbf16> to vector<156x128xbf16>
    %c0_12 = arith.constant 0 : index
    %c1 = arith.constant 1 : index
    %c0_13 = arith.constant 0 : index
    %c0_14 = arith.constant 0 : index
    %21 = vector.load %arg2[%c0_12, %c1, %c0_13, %c0_14] : memref<1x35x128x128xbf16, #tpu.memory_space<vmem>>, vector<1x1x128x128xbf16>
    %22 = vector.shape_cast %21 : vector<1x1x128x128xbf16> to vector<128x128xbf16>
    %cst_15 = arith.constant dense<0.000000e+00> : vector<156x128xf32>
    %23 = tpu.matmul %20, %22, %cst_15 {dimension_numbers = #tpu.dot_dimension_numbers<[1], [0], [0], [1], [0, 0, 1, 1], [], []>} : vector<156x128xbf16>, vector<128x128xbf16>, vector<156x128xf32> -> vector<156x128xf32>
    %24 = arith.addf %19, %23 : vector<156x128xf32>
    %25 = vector.extract_strided_slice %18 {offsets = [2, 0], sizes = [156, 128], strides = [1, 1]} : vector<200x128xbf16> to vector<156x128xbf16>
    %c0_16 = arith.constant 0 : index
    %c2 = arith.constant 2 : index
    %c0_17 = arith.constant 0 : index
    %c0_18 = arith.constant 0 : index
    %26 = vector.load %arg2[%c0_16, %c2, %c0_17, %c0_18] : memref<1x35x128x128xbf16, #tpu.memory_space<vmem>>, vector<1x1x128x128xbf16>
    %27 = vector.shape_cast %26 : vector<1x1x128x128xbf16> to vector<128x128xbf16>
    %cst_19 = arith.constant dense<0.000000e+00> : vector<156x128xf32>
    %28 = tpu.matmul %25, %27, %cst_19 {dimension_numbers = #tpu.dot_dimension_numbers<[1], [0], [0], [1], [0, 0, 1, 1], [], []>} : vector<156x128xbf16>, vector<128x128xbf16>, vector<156x128xf32> -> vector<156x128xf32>
    %29 = arith.addf %24, %28 : vector<156x128xf32>
    %30 = vector.extract_strided_slice %18 {offsets = [4, 0], sizes = [156, 128], strides = [1, 1]} : vector<200x128xbf16> to vector<156x128xbf16>
    %c0_20 = arith.constant 0 : index
    %c3 = arith.constant 3 : index
    %c0_21 = arith.constant 0 : index
    %c0_22 = arith.constant 0 : index
    %31 = vector.load %arg2[%c0_20, %c3, %c0_21, %c0_22] : memref<1x35x128x128xbf16, #tpu.memory_space<vmem>>, vector<1x1x128x128xbf16>
    %32 = vector.shape_cast %31 : vector<1x1x128x128xbf16> to vector<128x128xbf16>
    %cst_23 = arith.constant dense<0.000000e+00> : vector<156x128xf32>
    %33 = tpu.matmul %30, %32, %cst_23 {dimension_numbers = #tpu.dot_dimension_numbers<[1], [0], [0], [1], [0, 0, 1, 1], [], []>} : vector<156x128xbf16>, vector<128x128xbf16>, vector<156x128xf32> -> vector<156x128xf32>
    %34 = arith.addf %29, %33 : vector<156x128xf32>
    %35 = vector.extract_strided_slice %18 {offsets = [20, 0], sizes = [156, 128], strides = [1, 1]} : vector<200x128xbf16> to vector<156x128xbf16>
    %c0_24 = arith.constant 0 : index
    %c4 = arith.constant 4 : index
    %c0_25 = arith.constant 0 : index
    %c0_26 = arith.constant 0 : index
    %36 = vector.load %arg2[%c0_24, %c4, %c0_25, %c0_26] : memref<1x35x128x128xbf16, #tpu.memory_space<vmem>>, vector<1x1x128x128xbf16>
    %37 = vector.shape_cast %36 : vector<1x1x128x128xbf16> to vector<128x128xbf16>
    %cst_27 = arith.constant dense<0.000000e+00> : vector<156x128xf32>
    %38 = tpu.matmul %35, %37, %cst_27 {dimension_numbers = #tpu.dot_dimension_numbers<[1], [0], [0], [1], [0, 0, 1, 1], [], []>} : vector<156x128xbf16>, vector<128x128xbf16>, vector<156x128xf32> -> vector<156x128xf32>
    %39 = arith.addf %34, %38 : vector<156x128xf32>
    %40 = vector.extract_strided_slice %18 {offsets = [22, 0], sizes = [156, 128], strides = [1, 1]} : vector<200x128xbf16> to vector<156x128xbf16>
    %c0_28 = arith.constant 0 : index
    %c5 = arith.constant 5 : index
    %c0_29 = arith.constant 0 : index
    %c0_30 = arith.constant 0 : index
    %41 = vector.load %arg2[%c0_28, %c5, %c0_29, %c0_30] : memref<1x35x128x128xbf16, #tpu.memory_space<vmem>>, vector<1x1x128x128xbf16>
    %42 = vector.shape_cast %41 : vector<1x1x128x128xbf16> to vector<128x128xbf16>
    %cst_31 = arith.constant dense<0.000000e+00> : vector<156x128xf32>
    %43 = tpu.matmul %40, %42, %cst_31 {dimension_numbers = #tpu.dot_dimension_numbers<[1], [0], [0], [1], [0, 0, 1, 1], [], []>} : vector<156x128xbf16>, vector<128x128xbf16>, vector<156x128xf32> -> vector<156x128xf32>
    %44 = arith.addf %39, %43 : vector<156x128xf32>
    %45 = vector.extract_strided_slice %18 {offsets = [24, 0], sizes = [156, 128], strides = [1, 1]} : vector<200x128xbf16> to vector<156x128xbf16>
    %c0_32 = arith.constant 0 : index
    %c6 = arith.constant 6 : index
    %c0_33 = arith.constant 0 : index
    %c0_34 = arith.constant 0 : index
    %46 = vector.load %arg2[%c0_32, %c6, %c0_33, %c0_34] : memref<1x35x128x128xbf16, #tpu.memory_space<vmem>>, vector<1x1x128x128xbf16>
    %47 = vector.shape_cast %46 : vector<1x1x128x128xbf16> to vector<128x128xbf16>
    %cst_35 = arith.constant dense<0.000000e+00> : vector<156x128xf32>
    %48 = tpu.matmul %45, %47, %cst_35 {dimension_numbers = #tpu.dot_dimension_numbers<[1], [0], [0], [1], [0, 0, 1, 1], [], []>} : vector<156x128xbf16>, vector<128x128xbf16>, vector<156x128xf32> -> vector<156x128xf32>
    %49 = arith.addf %44, %48 : vector<156x128xf32>
    %50 = vector.extract_strided_slice %18 {offsets = [40, 0], sizes = [156, 128], strides = [1, 1]} : vector<200x128xbf16> to vector<156x128xbf16>
    %c0_36 = arith.constant 0 : index
    %c7 = arith.constant 7 : index
    %c0_37 = arith.constant 0 : index
    %c0_38 = arith.constant 0 : index
    %51 = vector.load %arg2[%c0_36, %c7, %c0_37, %c0_38] : memref<1x35x128x128xbf16, #tpu.memory_space<vmem>>, vector<1x1x128x128xbf16>
    %52 = vector.shape_cast %51 : vector<1x1x128x128xbf16> to vector<128x128xbf16>
    %cst_39 = arith.constant dense<0.000000e+00> : vector<156x128xf32>
    %53 = tpu.matmul %50, %52, %cst_39 {dimension_numbers = #tpu.dot_dimension_numbers<[1], [0], [0], [1], [0, 0, 1, 1], [], []>} : vector<156x128xbf16>, vector<128x128xbf16>, vector<156x128xf32> -> vector<156x128xf32>
    %54 = arith.addf %49, %53 : vector<156x128xf32>
    %55 = vector.extract_strided_slice %18 {offsets = [42, 0], sizes = [156, 128], strides = [1, 1]} : vector<200x128xbf16> to vector<156x128xbf16>
    %c0_40 = arith.constant 0 : index
    %c8 = arith.constant 8 : index
    %c0_41 = arith.constant 0 : index
    %c0_42 = arith.constant 0 : index
    %56 = vector.load %arg2[%c0_40, %c8, %c0_41, %c0_42] : memref<1x35x128x128xbf16, #tpu.memory_space<vmem>>, vector<1x1x128x128xbf16>
    %57 = vector.shape_cast %56 : vector<1x1x128x128xbf16> to vector<128x128xbf16>
    %cst_43 = arith.constant dense<0.000000e+00> : vector<156x128xf32>
    %58 = tpu.matmul %55, %57, %cst_43 {dimension_numbers = #tpu.dot_dimension_numbers<[1], [0], [0], [1], [0, 0, 1, 1], [], []>} : vector<156x128xbf16>, vector<128x128xbf16>, vector<156x128xf32> -> vector<156x128xf32>
    %59 = arith.addf %54, %58 : vector<156x128xf32>
    %60 = vector.extract_strided_slice %18 {offsets = [44, 0], sizes = [156, 128], strides = [1, 1]} : vector<200x128xbf16> to vector<156x128xbf16>
    %c0_44 = arith.constant 0 : index
    %c9 = arith.constant 9 : index
    %c0_45 = arith.constant 0 : index
    %c0_46 = arith.constant 0 : index
    %61 = vector.load %arg2[%c0_44, %c9, %c0_45, %c0_46] : memref<1x35x128x128xbf16, #tpu.memory_space<vmem>>, vector<1x1x128x128xbf16>
    %62 = vector.shape_cast %61 : vector<1x1x128x128xbf16> to vector<128x128xbf16>
    %cst_47 = arith.constant dense<0.000000e+00> : vector<156x128xf32>
    %63 = tpu.matmul %60, %62, %cst_47 {dimension_numbers = #tpu.dot_dimension_numbers<[1], [0], [0], [1], [0, 0, 1, 1], [], []>} : vector<156x128xbf16>, vector<128x128xbf16>, vector<156x128xf32> -> vector<156x128xf32>
    %64 = arith.addf %59, %63 : vector<156x128xf32>
    %65 = vector.extract_strided_slice %1 {offsets = [2, 0], sizes = [1, 128], strides = [1, 1]} : vector<8x128xf32> to vector<1x128xf32>
    %66 = vector.broadcast %65 : vector<1x128xf32> to vector<156x128xf32>
    %67 = arith.mulf %64, %66 : vector<156x128xf32>
    %68 = vector.extract_strided_slice %1 {offsets = [3, 0], sizes = [1, 128], strides = [1, 1]} : vector<8x128xf32> to vector<1x128xf32>
    %69 = vector.broadcast %68 : vector<1x128xf32> to vector<156x128xf32>
    %70 = arith.addf %67, %69 : vector<156x128xf32>
    %cst_48 = arith.constant 0.000000e+00 : f32
    %71 = vector.broadcast %cst_48 : f32 to vector<156x128xf32>
    %72 = arith.cmpf ogt, %70, %71 : vector<156x128xf32>
    %cst_49 = arith.constant 1.000000e-01 : f32
    %73 = vector.broadcast %cst_49 : f32 to vector<156x128xf32>
    %74 = arith.mulf %73, %70 : vector<156x128xf32>
    %75 = arith.select %72, %70, %74 : vector<156x128xi1>, vector<156x128xf32>
    %76 = arith.truncf %75 : vector<156x128xf32> to vector<156x128xbf16>
    %cst_50 = arith.constant 0.000000e+00 : f32
    %77 = vector.broadcast %cst_50 : f32 to vector<68x128xf32>
    %78 = vector.extract_strided_slice %76 {offsets = [0, 0], sizes = [68, 128], strides = [1, 1]} : vector<156x128xbf16> to vector<68x128xbf16>
    %c0_51 = arith.constant 0 : index
    %c10 = arith.constant 10 : index
    %c0_52 = arith.constant 0 : index
    %c0_53 = arith.constant 0 : index
    %79 = vector.load %arg2[%c0_51, %c10, %c0_52, %c0_53] : memref<1x35x128x128xbf16, #tpu.memory_space<vmem>>, vector<1x1x128x128xbf16>
    %80 = vector.shape_cast %79 : vector<1x1x128x128xbf16> to vector<128x128xbf16>
    %cst_54 = arith.constant dense<0.000000e+00> : vector<68x128xf32>
    %81 = tpu.matmul %78, %80, %cst_54 {dimension_numbers = #tpu.dot_dimension_numbers<[1], [0], [0], [1], [0, 0, 1, 1], [], []>} : vector<68x128xbf16>, vector<128x128xbf16>, vector<68x128xf32> -> vector<68x128xf32>
    %82 = arith.addf %77, %81 : vector<68x128xf32>
    %83 = vector.extract_strided_slice %76 {offsets = [2, 0], sizes = [68, 128], strides = [1, 1]} : vector<156x128xbf16> to vector<68x128xbf16>
    %c0_55 = arith.constant 0 : index
    %c11 = arith.constant 11 : index
    %c0_56 = arith.constant 0 : index
    %c0_57 = arith.constant 0 : index
    %84 = vector.load %arg2[%c0_55, %c11, %c0_56, %c0_57] : memref<1x35x128x128xbf16, #tpu.memory_space<vmem>>, vector<1x1x128x128xbf16>
    %85 = vector.shape_cast %84 : vector<1x1x128x128xbf16> to vector<128x128xbf16>
    %cst_58 = arith.constant dense<0.000000e+00> : vector<68x128xf32>
    %86 = tpu.matmul %83, %85, %cst_58 {dimension_numbers = #tpu.dot_dimension_numbers<[1], [0], [0], [1], [0, 0, 1, 1], [], []>} : vector<68x128xbf16>, vector<128x128xbf16>, vector<68x128xf32> -> vector<68x128xf32>
    %87 = arith.addf %82, %86 : vector<68x128xf32>
    %88 = vector.extract_strided_slice %76 {offsets = [4, 0], sizes = [68, 128], strides = [1, 1]} : vector<156x128xbf16> to vector<68x128xbf16>
    %c0_59 = arith.constant 0 : index
    %c12 = arith.constant 12 : index
    %c0_60 = arith.constant 0 : index
    %c0_61 = arith.constant 0 : index
    %89 = vector.load %arg2[%c0_59, %c12, %c0_60, %c0_61] : memref<1x35x128x128xbf16, #tpu.memory_space<vmem>>, vector<1x1x128x128xbf16>
    %90 = vector.shape_cast %89 : vector<1x1x128x128xbf16> to vector<128x128xbf16>
    %cst_62 = arith.constant dense<0.000000e+00> : vector<68x128xf32>
    %91 = tpu.matmul %88, %90, %cst_62 {dimension_numbers = #tpu.dot_dimension_numbers<[1], [0], [0], [1], [0, 0, 1, 1], [], []>} : vector<68x128xbf16>, vector<128x128xbf16>, vector<68x128xf32> -> vector<68x128xf32>
    %92 = arith.addf %87, %91 : vector<68x128xf32>
    %93 = vector.extract_strided_slice %76 {offsets = [6, 0], sizes = [68, 128], strides = [1, 1]} : vector<156x128xbf16> to vector<68x128xbf16>
    %c0_63 = arith.constant 0 : index
    %c13 = arith.constant 13 : index
    %c0_64 = arith.constant 0 : index
    %c0_65 = arith.constant 0 : index
    %94 = vector.load %arg2[%c0_63, %c13, %c0_64, %c0_65] : memref<1x35x128x128xbf16, #tpu.memory_space<vmem>>, vector<1x1x128x128xbf16>
    %95 = vector.shape_cast %94 : vector<1x1x128x128xbf16> to vector<128x128xbf16>
    %cst_66 = arith.constant dense<0.000000e+00> : vector<68x128xf32>
    %96 = tpu.matmul %93, %95, %cst_66 {dimension_numbers = #tpu.dot_dimension_numbers<[1], [0], [0], [1], [0, 0, 1, 1], [], []>} : vector<68x128xbf16>, vector<128x128xbf16>, vector<68x128xf32> -> vector<68x128xf32>
    %97 = arith.addf %92, %96 : vector<68x128xf32>
    %98 = vector.extract_strided_slice %76 {offsets = [8, 0], sizes = [68, 128], strides = [1, 1]} : vector<156x128xbf16> to vector<68x128xbf16>
    %c0_67 = arith.constant 0 : index
    %c14 = arith.constant 14 : index
    %c0_68 = arith.constant 0 : index
    %c0_69 = arith.constant 0 : index
    %99 = vector.load %arg2[%c0_67, %c14, %c0_68, %c0_69] : memref<1x35x128x128xbf16, #tpu.memory_space<vmem>>, vector<1x1x128x128xbf16>
    %100 = vector.shape_cast %99 : vector<1x1x128x128xbf16> to vector<128x128xbf16>
    %cst_70 = arith.constant dense<0.000000e+00> : vector<68x128xf32>
    %101 = tpu.matmul %98, %100, %cst_70 {dimension_numbers = #tpu.dot_dimension_numbers<[1], [0], [0], [1], [0, 0, 1, 1], [], []>} : vector<68x128xbf16>, vector<128x128xbf16>, vector<68x128xf32> -> vector<68x128xf32>
    %102 = arith.addf %97, %101 : vector<68x128xf32>
    %103 = vector.extract_strided_slice %76 {offsets = [20, 0], sizes = [68, 128], strides = [1, 1]} : vector<156x128xbf16> to vector<68x128xbf16>
    %c0_71 = arith.constant 0 : index
    %c15 = arith.constant 15 : index
    %c0_72 = arith.constant 0 : index
    %c0_73 = arith.constant 0 : index
    %104 = vector.load %arg2[%c0_71, %c15, %c0_72, %c0_73] : memref<1x35x128x128xbf16, #tpu.memory_space<vmem>>, vector<1x1x128x128xbf16>
    %105 = vector.shape_cast %104 : vector<1x1x128x128xbf16> to vector<128x128xbf16>
    %cst_74 = arith.constant dense<0.000000e+00> : vector<68x128xf32>
    %106 = tpu.matmul %103, %105, %cst_74 {dimension_numbers = #tpu.dot_dimension_numbers<[1], [0], [0], [1], [0, 0, 1, 1], [], []>} : vector<68x128xbf16>, vector<128x128xbf16>, vector<68x128xf32> -> vector<68x128xf32>
    %107 = arith.addf %102, %106 : vector<68x128xf32>
    %108 = vector.extract_strided_slice %76 {offsets = [22, 0], sizes = [68, 128], strides = [1, 1]} : vector<156x128xbf16> to vector<68x128xbf16>
    %c0_75 = arith.constant 0 : index
    %c16 = arith.constant 16 : index
    %c0_76 = arith.constant 0 : index
    %c0_77 = arith.constant 0 : index
    %109 = vector.load %arg2[%c0_75, %c16, %c0_76, %c0_77] : memref<1x35x128x128xbf16, #tpu.memory_space<vmem>>, vector<1x1x128x128xbf16>
    %110 = vector.shape_cast %109 : vector<1x1x128x128xbf16> to vector<128x128xbf16>
    %cst_78 = arith.constant dense<0.000000e+00> : vector<68x128xf32>
    %111 = tpu.matmul %108, %110, %cst_78 {dimension_numbers = #tpu.dot_dimension_numbers<[1], [0], [0], [1], [0, 0, 1, 1], [], []>} : vector<68x128xbf16>, vector<128x128xbf16>, vector<68x128xf32> -> vector<68x128xf32>
    %112 = arith.addf %107, %111 : vector<68x128xf32>
    %113 = vector.extract_strided_slice %76 {offsets = [24, 0], sizes = [68, 128], strides = [1, 1]} : vector<156x128xbf16> to vector<68x128xbf16>
    %c0_79 = arith.constant 0 : index
    %c17 = arith.constant 17 : index
    %c0_80 = arith.constant 0 : index
    %c0_81 = arith.constant 0 : index
    %114 = vector.load %arg2[%c0_79, %c17, %c0_80, %c0_81] : memref<1x35x128x128xbf16, #tpu.memory_space<vmem>>, vector<1x1x128x128xbf16>
    %115 = vector.shape_cast %114 : vector<1x1x128x128xbf16> to vector<128x128xbf16>
    %cst_82 = arith.constant dense<0.000000e+00> : vector<68x128xf32>
    %116 = tpu.matmul %113, %115, %cst_82 {dimension_numbers = #tpu.dot_dimension_numbers<[1], [0], [0], [1], [0, 0, 1, 1], [], []>} : vector<68x128xbf16>, vector<128x128xbf16>, vector<68x128xf32> -> vector<68x128xf32>
    %117 = arith.addf %112, %116 : vector<68x128xf32>
    %118 = vector.extract_strided_slice %76 {offsets = [26, 0], sizes = [68, 128], strides = [1, 1]} : vector<156x128xbf16> to vector<68x128xbf16>
    %c0_83 = arith.constant 0 : index
    %c18 = arith.constant 18 : index
    %c0_84 = arith.constant 0 : index
    %c0_85 = arith.constant 0 : index
    %119 = vector.load %arg2[%c0_83, %c18, %c0_84, %c0_85] : memref<1x35x128x128xbf16, #tpu.memory_space<vmem>>, vector<1x1x128x128xbf16>
    %120 = vector.shape_cast %119 : vector<1x1x128x128xbf16> to vector<128x128xbf16>
    %cst_86 = arith.constant dense<0.000000e+00> : vector<68x128xf32>
    %121 = tpu.matmul %118, %120, %cst_86 {dimension_numbers = #tpu.dot_dimension_numbers<[1], [0], [0], [1], [0, 0, 1, 1], [], []>} : vector<68x128xbf16>, vector<128x128xbf16>, vector<68x128xf32> -> vector<68x128xf32>
    %122 = arith.addf %117, %121 : vector<68x128xf32>
    %123 = vector.extract_strided_slice %76 {offsets = [28, 0], sizes = [68, 128], strides = [1, 1]} : vector<156x128xbf16> to vector<68x128xbf16>
    %c0_87 = arith.constant 0 : index
    %c19 = arith.constant 19 : index
    %c0_88 = arith.constant 0 : index
    %c0_89 = arith.constant 0 : index
    %124 = vector.load %arg2[%c0_87, %c19, %c0_88, %c0_89] : memref<1x35x128x128xbf16, #tpu.memory_space<vmem>>, vector<1x1x128x128xbf16>
    %125 = vector.shape_cast %124 : vector<1x1x128x128xbf16> to vector<128x128xbf16>
    %cst_90 = arith.constant dense<0.000000e+00> : vector<68x128xf32>
    %126 = tpu.matmul %123, %125, %cst_90 {dimension_numbers = #tpu.dot_dimension_numbers<[1], [0], [0], [1], [0, 0, 1, 1], [], []>} : vector<68x128xbf16>, vector<128x128xbf16>, vector<68x128xf32> -> vector<68x128xf32>
    %127 = arith.addf %122, %126 : vector<68x128xf32>
    %128 = vector.extract_strided_slice %76 {offsets = [40, 0], sizes = [68, 128], strides = [1, 1]} : vector<156x128xbf16> to vector<68x128xbf16>
    %c0_91 = arith.constant 0 : index
    %c20 = arith.constant 20 : index
    %c0_92 = arith.constant 0 : index
    %c0_93 = arith.constant 0 : index
    %129 = vector.load %arg2[%c0_91, %c20, %c0_92, %c0_93] : memref<1x35x128x128xbf16, #tpu.memory_space<vmem>>, vector<1x1x128x128xbf16>
    %130 = vector.shape_cast %129 : vector<1x1x128x128xbf16> to vector<128x128xbf16>
    %cst_94 = arith.constant dense<0.000000e+00> : vector<68x128xf32>
    %131 = tpu.matmul %128, %130, %cst_94 {dimension_numbers = #tpu.dot_dimension_numbers<[1], [0], [0], [1], [0, 0, 1, 1], [], []>} : vector<68x128xbf16>, vector<128x128xbf16>, vector<68x128xf32> -> vector<68x128xf32>
    %132 = arith.addf %127, %131 : vector<68x128xf32>
    %133 = vector.extract_strided_slice %76 {offsets = [42, 0], sizes = [68, 128], strides = [1, 1]} : vector<156x128xbf16> to vector<68x128xbf16>
    %c0_95 = arith.constant 0 : index
    %c21 = arith.constant 21 : index
    %c0_96 = arith.constant 0 : index
    %c0_97 = arith.constant 0 : index
    %134 = vector.load %arg2[%c0_95, %c21, %c0_96, %c0_97] : memref<1x35x128x128xbf16, #tpu.memory_space<vmem>>, vector<1x1x128x128xbf16>
    %135 = vector.shape_cast %134 : vector<1x1x128x128xbf16> to vector<128x128xbf16>
    %cst_98 = arith.constant dense<0.000000e+00> : vector<68x128xf32>
    %136 = tpu.matmul %133, %135, %cst_98 {dimension_numbers = #tpu.dot_dimension_numbers<[1], [0], [0], [1], [0, 0, 1, 1], [], []>} : vector<68x128xbf16>, vector<128x128xbf16>, vector<68x128xf32> -> vector<68x128xf32>
    %137 = arith.addf %132, %136 : vector<68x128xf32>
    %138 = vector.extract_strided_slice %76 {offsets = [44, 0], sizes = [68, 128], strides = [1, 1]} : vector<156x128xbf16> to vector<68x128xbf16>
    %c0_99 = arith.constant 0 : index
    %c22 = arith.constant 22 : index
    %c0_100 = arith.constant 0 : index
    %c0_101 = arith.constant 0 : index
    %139 = vector.load %arg2[%c0_99, %c22, %c0_100, %c0_101] : memref<1x35x128x128xbf16, #tpu.memory_space<vmem>>, vector<1x1x128x128xbf16>
    %140 = vector.shape_cast %139 : vector<1x1x128x128xbf16> to vector<128x128xbf16>
    %cst_102 = arith.constant dense<0.000000e+00> : vector<68x128xf32>
    %141 = tpu.matmul %138, %140, %cst_102 {dimension_numbers = #tpu.dot_dimension_numbers<[1], [0], [0], [1], [0, 0, 1, 1], [], []>} : vector<68x128xbf16>, vector<128x128xbf16>, vector<68x128xf32> -> vector<68x128xf32>
    %142 = arith.addf %137, %141 : vector<68x128xf32>
    %143 = vector.extract_strided_slice %76 {offsets = [46, 0], sizes = [68, 128], strides = [1, 1]} : vector<156x128xbf16> to vector<68x128xbf16>
    %c0_103 = arith.constant 0 : index
    %c23 = arith.constant 23 : index
    %c0_104 = arith.constant 0 : index
    %c0_105 = arith.constant 0 : index
    %144 = vector.load %arg2[%c0_103, %c23, %c0_104, %c0_105] : memref<1x35x128x128xbf16, #tpu.memory_space<vmem>>, vector<1x1x128x128xbf16>
    %145 = vector.shape_cast %144 : vector<1x1x128x128xbf16> to vector<128x128xbf16>
    %cst_106 = arith.constant dense<0.000000e+00> : vector<68x128xf32>
    %146 = tpu.matmul %143, %145, %cst_106 {dimension_numbers = #tpu.dot_dimension_numbers<[1], [0], [0], [1], [0, 0, 1, 1], [], []>} : vector<68x128xbf16>, vector<128x128xbf16>, vector<68x128xf32> -> vector<68x128xf32>
    %147 = arith.addf %142, %146 : vector<68x128xf32>
    %148 = vector.extract_strided_slice %76 {offsets = [48, 0], sizes = [68, 128], strides = [1, 1]} : vector<156x128xbf16> to vector<68x128xbf16>
    %c0_107 = arith.constant 0 : index
    %c24 = arith.constant 24 : index
    %c0_108 = arith.constant 0 : index
    %c0_109 = arith.constant 0 : index
    %149 = vector.load %arg2[%c0_107, %c24, %c0_108, %c0_109] : memref<1x35x128x128xbf16, #tpu.memory_space<vmem>>, vector<1x1x128x128xbf16>
    %150 = vector.shape_cast %149 : vector<1x1x128x128xbf16> to vector<128x128xbf16>
    %cst_110 = arith.constant dense<0.000000e+00> : vector<68x128xf32>
    %151 = tpu.matmul %148, %150, %cst_110 {dimension_numbers = #tpu.dot_dimension_numbers<[1], [0], [0], [1], [0, 0, 1, 1], [], []>} : vector<68x128xbf16>, vector<128x128xbf16>, vector<68x128xf32> -> vector<68x128xf32>
    %152 = arith.addf %147, %151 : vector<68x128xf32>
    %153 = vector.extract_strided_slice %76 {offsets = [60, 0], sizes = [68, 128], strides = [1, 1]} : vector<156x128xbf16> to vector<68x128xbf16>
    %c0_111 = arith.constant 0 : index
    %c25 = arith.constant 25 : index
    %c0_112 = arith.constant 0 : index
    %c0_113 = arith.constant 0 : index
    %154 = vector.load %arg2[%c0_111, %c25, %c0_112, %c0_113] : memref<1x35x128x128xbf16, #tpu.memory_space<vmem>>, vector<1x1x128x128xbf16>
    %155 = vector.shape_cast %154 : vector<1x1x128x128xbf16> to vector<128x128xbf16>
    %cst_114 = arith.constant dense<0.000000e+00> : vector<68x128xf32>
    %156 = tpu.matmul %153, %155, %cst_114 {dimension_numbers = #tpu.dot_dimension_numbers<[1], [0], [0], [1], [0, 0, 1, 1], [], []>} : vector<68x128xbf16>, vector<128x128xbf16>, vector<68x128xf32> -> vector<68x128xf32>
    %157 = arith.addf %152, %156 : vector<68x128xf32>
    %158 = vector.extract_strided_slice %76 {offsets = [62, 0], sizes = [68, 128], strides = [1, 1]} : vector<156x128xbf16> to vector<68x128xbf16>
    %c0_115 = arith.constant 0 : index
    %c26 = arith.constant 26 : index
    %c0_116 = arith.constant 0 : index
    %c0_117 = arith.constant 0 : index
    %159 = vector.load %arg2[%c0_115, %c26, %c0_116, %c0_117] : memref<1x35x128x128xbf16, #tpu.memory_space<vmem>>, vector<1x1x128x128xbf16>
    %160 = vector.shape_cast %159 : vector<1x1x128x128xbf16> to vector<128x128xbf16>
    %cst_118 = arith.constant dense<0.000000e+00> : vector<68x128xf32>
    %161 = tpu.matmul %158, %160, %cst_118 {dimension_numbers = #tpu.dot_dimension_numbers<[1], [0], [0], [1], [0, 0, 1, 1], [], []>} : vector<68x128xbf16>, vector<128x128xbf16>, vector<68x128xf32> -> vector<68x128xf32>
    %162 = arith.addf %157, %161 : vector<68x128xf32>
    %163 = vector.extract_strided_slice %76 {offsets = [64, 0], sizes = [68, 128], strides = [1, 1]} : vector<156x128xbf16> to vector<68x128xbf16>
    %c0_119 = arith.constant 0 : index
    %c27 = arith.constant 27 : index
    %c0_120 = arith.constant 0 : index
    %c0_121 = arith.constant 0 : index
    %164 = vector.load %arg2[%c0_119, %c27, %c0_120, %c0_121] : memref<1x35x128x128xbf16, #tpu.memory_space<vmem>>, vector<1x1x128x128xbf16>
    %165 = vector.shape_cast %164 : vector<1x1x128x128xbf16> to vector<128x128xbf16>
    %cst_122 = arith.constant dense<0.000000e+00> : vector<68x128xf32>
    %166 = tpu.matmul %163, %165, %cst_122 {dimension_numbers = #tpu.dot_dimension_numbers<[1], [0], [0], [1], [0, 0, 1, 1], [], []>} : vector<68x128xbf16>, vector<128x128xbf16>, vector<68x128xf32> -> vector<68x128xf32>
    %167 = arith.addf %162, %166 : vector<68x128xf32>
    %168 = vector.extract_strided_slice %76 {offsets = [66, 0], sizes = [68, 128], strides = [1, 1]} : vector<156x128xbf16> to vector<68x128xbf16>
    %c0_123 = arith.constant 0 : index
    %c28 = arith.constant 28 : index
    %c0_124 = arith.constant 0 : index
    %c0_125 = arith.constant 0 : index
    %169 = vector.load %arg2[%c0_123, %c28, %c0_124, %c0_125] : memref<1x35x128x128xbf16, #tpu.memory_space<vmem>>, vector<1x1x128x128xbf16>
    %170 = vector.shape_cast %169 : vector<1x1x128x128xbf16> to vector<128x128xbf16>
    %cst_126 = arith.constant dense<0.000000e+00> : vector<68x128xf32>
    %171 = tpu.matmul %168, %170, %cst_126 {dimension_numbers = #tpu.dot_dimension_numbers<[1], [0], [0], [1], [0, 0, 1, 1], [], []>} : vector<68x128xbf16>, vector<128x128xbf16>, vector<68x128xf32> -> vector<68x128xf32>
    %172 = arith.addf %167, %171 : vector<68x128xf32>
    %173 = vector.extract_strided_slice %76 {offsets = [68, 0], sizes = [68, 128], strides = [1, 1]} : vector<156x128xbf16> to vector<68x128xbf16>
    %c0_127 = arith.constant 0 : index
    %c29 = arith.constant 29 : index
    %c0_128 = arith.constant 0 : index
    %c0_129 = arith.constant 0 : index
    %174 = vector.load %arg2[%c0_127, %c29, %c0_128, %c0_129] : memref<1x35x128x128xbf16, #tpu.memory_space<vmem>>, vector<1x1x128x128xbf16>
    %175 = vector.shape_cast %174 : vector<1x1x128x128xbf16> to vector<128x128xbf16>
    %cst_130 = arith.constant dense<0.000000e+00> : vector<68x128xf32>
    %176 = tpu.matmul %173, %175, %cst_130 {dimension_numbers = #tpu.dot_dimension_numbers<[1], [0], [0], [1], [0, 0, 1, 1], [], []>} : vector<68x128xbf16>, vector<128x128xbf16>, vector<68x128xf32> -> vector<68x128xf32>
    %177 = arith.addf %172, %176 : vector<68x128xf32>
    %178 = vector.extract_strided_slice %76 {offsets = [80, 0], sizes = [68, 128], strides = [1, 1]} : vector<156x128xbf16> to vector<68x128xbf16>
    %c0_131 = arith.constant 0 : index
    %c30 = arith.constant 30 : index
    %c0_132 = arith.constant 0 : index
    %c0_133 = arith.constant 0 : index
    %179 = vector.load %arg2[%c0_131, %c30, %c0_132, %c0_133] : memref<1x35x128x128xbf16, #tpu.memory_space<vmem>>, vector<1x1x128x128xbf16>
    %180 = vector.shape_cast %179 : vector<1x1x128x128xbf16> to vector<128x128xbf16>
    %cst_134 = arith.constant dense<0.000000e+00> : vector<68x128xf32>
    %181 = tpu.matmul %178, %180, %cst_134 {dimension_numbers = #tpu.dot_dimension_numbers<[1], [0], [0], [1], [0, 0, 1, 1], [], []>} : vector<68x128xbf16>, vector<128x128xbf16>, vector<68x128xf32> -> vector<68x128xf32>
    %182 = arith.addf %177, %181 : vector<68x128xf32>
    %183 = vector.extract_strided_slice %76 {offsets = [82, 0], sizes = [68, 128], strides = [1, 1]} : vector<156x128xbf16> to vector<68x128xbf16>
    %c0_135 = arith.constant 0 : index
    %c31 = arith.constant 31 : index
    %c0_136 = arith.constant 0 : index
    %c0_137 = arith.constant 0 : index
    %184 = vector.load %arg2[%c0_135, %c31, %c0_136, %c0_137] : memref<1x35x128x128xbf16, #tpu.memory_space<vmem>>, vector<1x1x128x128xbf16>
    %185 = vector.shape_cast %184 : vector<1x1x128x128xbf16> to vector<128x128xbf16>
    %cst_138 = arith.constant dense<0.000000e+00> : vector<68x128xf32>
    %186 = tpu.matmul %183, %185, %cst_138 {dimension_numbers = #tpu.dot_dimension_numbers<[1], [0], [0], [1], [0, 0, 1, 1], [], []>} : vector<68x128xbf16>, vector<128x128xbf16>, vector<68x128xf32> -> vector<68x128xf32>
    %187 = arith.addf %182, %186 : vector<68x128xf32>
    %188 = vector.extract_strided_slice %76 {offsets = [84, 0], sizes = [68, 128], strides = [1, 1]} : vector<156x128xbf16> to vector<68x128xbf16>
    %c0_139 = arith.constant 0 : index
    %c32 = arith.constant 32 : index
    %c0_140 = arith.constant 0 : index
    %c0_141 = arith.constant 0 : index
    %189 = vector.load %arg2[%c0_139, %c32, %c0_140, %c0_141] : memref<1x35x128x128xbf16, #tpu.memory_space<vmem>>, vector<1x1x128x128xbf16>
    %190 = vector.shape_cast %189 : vector<1x1x128x128xbf16> to vector<128x128xbf16>
    %cst_142 = arith.constant dense<0.000000e+00> : vector<68x128xf32>
    %191 = tpu.matmul %188, %190, %cst_142 {dimension_numbers = #tpu.dot_dimension_numbers<[1], [0], [0], [1], [0, 0, 1, 1], [], []>} : vector<68x128xbf16>, vector<128x128xbf16>, vector<68x128xf32> -> vector<68x128xf32>
    %192 = arith.addf %187, %191 : vector<68x128xf32>
    %193 = vector.extract_strided_slice %76 {offsets = [86, 0], sizes = [68, 128], strides = [1, 1]} : vector<156x128xbf16> to vector<68x128xbf16>
    %c0_143 = arith.constant 0 : index
    %c33 = arith.constant 33 : index
    %c0_144 = arith.constant 0 : index
    %c0_145 = arith.constant 0 : index
    %194 = vector.load %arg2[%c0_143, %c33, %c0_144, %c0_145] : memref<1x35x128x128xbf16, #tpu.memory_space<vmem>>, vector<1x1x128x128xbf16>
    %195 = vector.shape_cast %194 : vector<1x1x128x128xbf16> to vector<128x128xbf16>
    %cst_146 = arith.constant dense<0.000000e+00> : vector<68x128xf32>
    %196 = tpu.matmul %193, %195, %cst_146 {dimension_numbers = #tpu.dot_dimension_numbers<[1], [0], [0], [1], [0, 0, 1, 1], [], []>} : vector<68x128xbf16>, vector<128x128xbf16>, vector<68x128xf32> -> vector<68x128xf32>
    %197 = arith.addf %192, %196 : vector<68x128xf32>
    %198 = vector.extract_strided_slice %76 {offsets = [88, 0], sizes = [68, 128], strides = [1, 1]} : vector<156x128xbf16> to vector<68x128xbf16>
    %c0_147 = arith.constant 0 : index
    %c34 = arith.constant 34 : index
    %c0_148 = arith.constant 0 : index
    %c0_149 = arith.constant 0 : index
    %199 = vector.load %arg2[%c0_147, %c34, %c0_148, %c0_149] : memref<1x35x128x128xbf16, #tpu.memory_space<vmem>>, vector<1x1x128x128xbf16>
    %200 = vector.shape_cast %199 : vector<1x1x128x128xbf16> to vector<128x128xbf16>
    %cst_150 = arith.constant dense<0.000000e+00> : vector<68x128xf32>
    %201 = tpu.matmul %198, %200, %cst_150 {dimension_numbers = #tpu.dot_dimension_numbers<[1], [0], [0], [1], [0, 0, 1, 1], [], []>} : vector<68x128xbf16>, vector<128x128xbf16>, vector<68x128xf32> -> vector<68x128xf32>
    %202 = arith.addf %197, %201 : vector<68x128xf32>
    %203 = vector.extract_strided_slice %1 {offsets = [4, 0], sizes = [1, 128], strides = [1, 1]} : vector<8x128xf32> to vector<1x128xf32>
    %204 = vector.broadcast %203 : vector<1x128xf32> to vector<68x128xf32>
    %205 = arith.mulf %202, %204 : vector<68x128xf32>
    %206 = vector.extract_strided_slice %1 {offsets = [5, 0], sizes = [1, 128], strides = [1, 1]} : vector<8x128xf32> to vector<1x128xf32>
    %207 = vector.broadcast %206 : vector<1x128xf32> to vector<68x128xf32>
    %208 = arith.addf %205, %207 : vector<68x128xf32>
    %cst_151 = arith.constant 0.000000e+00 : f32
    %209 = vector.broadcast %cst_151 : f32 to vector<68x128xf32>
    %210 = arith.cmpf ogt, %208, %209 : vector<68x128xf32>
    %cst_152 = arith.constant 1.000000e-01 : f32
    %211 = vector.broadcast %cst_152 : f32 to vector<68x128xf32>
    %212 = arith.mulf %211, %208 : vector<68x128xf32>
    %213 = arith.select %210, %208, %212 : vector<68x128xi1>, vector<68x128xf32>
    %214 = vector.extract_strided_slice %213 {offsets = [0, 0], sizes = [2, 128], strides = [1, 1]} : vector<68x128xf32> to vector<2x128xf32>
    %215 = vector.extract_strided_slice %213 {offsets = [2, 0], sizes = [2, 128], strides = [1, 1]} : vector<68x128xf32> to vector<2x128xf32>
    %216 = arith.maximumf %214, %215 : vector<2x128xf32>
    %217 = vector.extract_strided_slice %213 {offsets = [4, 0], sizes = [2, 128], strides = [1, 1]} : vector<68x128xf32> to vector<2x128xf32>
    %218 = arith.maximumf %216, %217 : vector<2x128xf32>
    %219 = vector.extract_strided_slice %213 {offsets = [6, 0], sizes = [2, 128], strides = [1, 1]} : vector<68x128xf32> to vector<2x128xf32>
    %220 = arith.maximumf %218, %219 : vector<2x128xf32>
    %221 = vector.extract_strided_slice %213 {offsets = [20, 0], sizes = [2, 128], strides = [1, 1]} : vector<68x128xf32> to vector<2x128xf32>
    %222 = arith.maximumf %220, %221 : vector<2x128xf32>
    %223 = vector.extract_strided_slice %213 {offsets = [22, 0], sizes = [2, 128], strides = [1, 1]} : vector<68x128xf32> to vector<2x128xf32>
    %224 = arith.maximumf %222, %223 : vector<2x128xf32>
    %225 = vector.extract_strided_slice %213 {offsets = [24, 0], sizes = [2, 128], strides = [1, 1]} : vector<68x128xf32> to vector<2x128xf32>
    %226 = arith.maximumf %224, %225 : vector<2x128xf32>
    %227 = vector.extract_strided_slice %213 {offsets = [26, 0], sizes = [2, 128], strides = [1, 1]} : vector<68x128xf32> to vector<2x128xf32>
    %228 = arith.maximumf %226, %227 : vector<2x128xf32>
    %229 = vector.extract_strided_slice %213 {offsets = [40, 0], sizes = [2, 128], strides = [1, 1]} : vector<68x128xf32> to vector<2x128xf32>
    %230 = arith.maximumf %228, %229 : vector<2x128xf32>
    %231 = vector.extract_strided_slice %213 {offsets = [42, 0], sizes = [2, 128], strides = [1, 1]} : vector<68x128xf32> to vector<2x128xf32>
    %232 = arith.maximumf %230, %231 : vector<2x128xf32>
    %233 = vector.extract_strided_slice %213 {offsets = [44, 0], sizes = [2, 128], strides = [1, 1]} : vector<68x128xf32> to vector<2x128xf32>
    %234 = arith.maximumf %232, %233 : vector<2x128xf32>
    %235 = vector.extract_strided_slice %213 {offsets = [46, 0], sizes = [2, 128], strides = [1, 1]} : vector<68x128xf32> to vector<2x128xf32>
    %236 = arith.maximumf %234, %235 : vector<2x128xf32>
    %237 = vector.extract_strided_slice %213 {offsets = [60, 0], sizes = [2, 128], strides = [1, 1]} : vector<68x128xf32> to vector<2x128xf32>
    %238 = arith.maximumf %236, %237 : vector<2x128xf32>
    %239 = vector.extract_strided_slice %213 {offsets = [62, 0], sizes = [2, 128], strides = [1, 1]} : vector<68x128xf32> to vector<2x128xf32>
    %240 = arith.maximumf %238, %239 : vector<2x128xf32>
    %241 = vector.extract_strided_slice %213 {offsets = [64, 0], sizes = [2, 128], strides = [1, 1]} : vector<68x128xf32> to vector<2x128xf32>
    %242 = arith.maximumf %240, %241 : vector<2x128xf32>
    %243 = vector.extract_strided_slice %213 {offsets = [66, 0], sizes = [2, 128], strides = [1, 1]} : vector<68x128xf32> to vector<2x128xf32>
    %244 = arith.maximumf %242, %243 : vector<2x128xf32>
    %245 = vector.extract_strided_slice %1 {offsets = [6, 0], sizes = [1, 128], strides = [1, 1]} : vector<8x128xf32> to vector<1x128xf32>
    %246 = vector.broadcast %245 : vector<1x128xf32> to vector<2x128xf32>
    %247 = arith.mulf %244, %246 : vector<2x128xf32>
    %248 = vector.extract_strided_slice %1 {offsets = [7, 0], sizes = [1, 128], strides = [1, 1]} : vector<8x128xf32> to vector<1x128xf32>
    %249 = vector.broadcast %248 : vector<1x128xf32> to vector<2x128xf32>
    %250 = arith.addf %247, %249 : vector<2x128xf32>
    %cst_153 = arith.constant 0.000000e+00 : f32
    %251 = vector.broadcast %cst_153 : f32 to vector<2x128xf32>
    %252 = arith.cmpf ogt, %250, %251 : vector<2x128xf32>
    %cst_154 = arith.constant 1.000000e-01 : f32
    %253 = vector.broadcast %cst_154 : f32 to vector<2x128xf32>
    %254 = arith.mulf %253, %250 : vector<2x128xf32>
    %255 = arith.select %252, %250, %254 : vector<2x128xi1>, vector<2x128xf32>
    %c0_155 = arith.constant 0 : index
    %c0_156 = arith.constant 0 : index
    %c0_157 = arith.constant 0 : index
    %256 = vector.load %arg4[%c0_155, %c0_156, %c0_157] : memref<1x2x128xf32, #tpu.memory_space<vmem>>, vector<1x2x128xf32>
    %257 = vector.shape_cast %256 : vector<1x2x128xf32> to vector<2x128xf32>
    %258 = vector.shape_cast %255 : vector<2x128xf32> to vector<1x2x128xf32>
    tpu.vector_store %arg4[%c0_155, %c0_156, %c0_157], %258 {strides = array<i32>} : memref<1x2x128xf32, #tpu.memory_space<vmem>>, vector<1x2x128xf32>,
    return
  }
  func.func @transform_0(%arg0: i32) -> (i32, i32, i32) {
    %c0_i32 = arith.constant 0 : i32
    %c0_i32_0 = arith.constant 0 : i32
    %c0_i32_1 = arith.constant 0 : i32
    return %arg0, %c0_i32, %c0_i32_0 : i32, i32, i32
  }
  func.func @transform_1(%arg0: i32) -> (i32, i32, i32, i32) {
    %c0_i32 = arith.constant 0 : i32
    %c0_i32_0 = arith.constant 0 : i32
    %c0_i32_1 = arith.constant 0 : i32
    %c0_i32_2 = arith.constant 0 : i32
    return %arg0, %c0_i32, %c0_i32_0, %c0_i32_1 : i32, i32, i32, i32
  }
  func.func @transform_2(%arg0: i32) -> (i32, i32, i32) {
    %c0_i32 = arith.constant 0 : i32
    %c0_i32_0 = arith.constant 0 : i32
    %c0_i32_1 = arith.constant 0 : i32
    return %arg0, %c0_i32, %c0_i32_0 : i32, i32, i32
  }
  func.func @transform_3(%arg0: i32) -> (i32, i32, i32) {
    %c0_i32 = arith.constant 0 : i32
    %c0_i32_0 = arith.constant 0 : i32
    %c0_i32_1 = arith.constant 0 : i32
    return %arg0, %c0_i32, %c0_i32_0 : i32, i32, i32
  }
}

module attributes {stable_mosaic.version = 11 : i64} {
  func.func @_head_kernel(%arg0: memref<6x128xf32, #tpu.memory_space<vmem>>, %arg1: memref<12x128x128xbf16, #tpu.memory_space<vmem>>, %arg2: memref<18x128xf32, #tpu.memory_space<vmem>>, %arg3: memref<2x128xf32, #tpu.memory_space<vmem>>, %arg4: memref<2x128xf32, #tpu.memory_space<vmem>>, %arg5: memref<2x1xi32, #tpu.memory_space<vmem>>) attributes {dimension_semantics = [], scalar_prefetch = 0 : i64, scratch_operands = 0 : i64, tpu.core_type = #tpu.core_type<tc>} {
    %c0 = arith.constant 0 : index
    %c0_0 = arith.constant 0 : index
    %0 = vector.load %arg2[%c0, %c0_0] : memref<18x128xf32, #tpu.memory_space<vmem>>, vector<18x128xf32>
    %c0_1 = arith.constant 0 : index
    %c0_2 = arith.constant 0 : index
    %1 = vector.load %arg0[%c0_1, %c0_2] : memref<6x128xf32, #tpu.memory_space<vmem>>, vector<6x128xf32>
    %2 = arith.truncf %1 : vector<6x128xf32> to vector<6x128xbf16>
    %3 = vector.extract_strided_slice %2 {offsets = [0, 0], sizes = [2, 128], strides = [1, 1]} : vector<6x128xbf16> to vector<2x128xbf16>
    %c1 = arith.constant 1 : index
    %c0_3 = arith.constant 0 : index
    %c0_4 = arith.constant 0 : index
    %4 = vector.load %arg1[%c1, %c0_3, %c0_4] : memref<12x128x128xbf16, #tpu.memory_space<vmem>>, vector<1x128x128xbf16>
    %5 = vector.shape_cast %4 : vector<1x128x128xbf16> to vector<128x128xbf16>
    %cst = arith.constant dense<0.000000e+00> : vector<2x128xf32>
    %6 = tpu.matmul %3, %5, %cst {dimension_numbers = #tpu.dot_dimension_numbers<[1], [0], [0], [1], [0, 0, 1, 1], [], []>} : vector<2x128xbf16>, vector<128x128xbf16>, vector<2x128xf32> -> vector<2x128xf32>
    %c0_5 = arith.constant 0 : index
    %c0_6 = arith.constant 0 : index
    %c0_7 = arith.constant 0 : index
    %7 = vector.load %arg1[%c0_5, %c0_6, %c0_7] : memref<12x128x128xbf16, #tpu.memory_space<vmem>>, vector<1x128x128xbf16>
    %8 = vector.shape_cast %7 : vector<1x128x128xbf16> to vector<128x128xbf16>
    %cst_8 = arith.constant dense<0.000000e+00> : vector<6x128xf32>
    %9 = tpu.matmul %2, %8, %cst_8 {dimension_numbers = #tpu.dot_dimension_numbers<[1], [0], [0], [1], [0, 0, 1, 1], [], []>} : vector<6x128xbf16>, vector<128x128xbf16>, vector<6x128xf32> -> vector<6x128xf32>
    %10 = tpu.concatenate %6, %6, %6 in 0 : vector<2x128xf32>, vector<2x128xf32>, vector<2x128xf32> -> vector<6x128xf32>
    %11 = arith.addf %9, %10 : vector<6x128xf32>
    %12 = vector.extract_strided_slice %0 {offsets = [0, 0], sizes = [1, 128], strides = [1, 1]} : vector<18x128xf32> to vector<1x128xf32>
    %13 = vector.broadcast %12 : vector<1x128xf32> to vector<6x128xf32>
    %14 = arith.mulf %11, %13 : vector<6x128xf32>
    %15 = vector.extract_strided_slice %0 {offsets = [1, 0], sizes = [1, 128], strides = [1, 1]} : vector<18x128xf32> to vector<1x128xf32>
    %16 = vector.broadcast %15 : vector<1x128xf32> to vector<6x128xf32>
    %17 = arith.addf %14, %16 : vector<6x128xf32>
    %cst_9 = arith.constant 0.000000e+00 : f32
    %18 = vector.broadcast %cst_9 : f32 to vector<6x128xf32>
    %19 = arith.cmpf ogt, %17, %18 : vector<6x128xf32>
    %cst_10 = arith.constant 1.000000e-01 : f32
    %20 = vector.broadcast %cst_10 : f32 to vector<6x128xf32>
    %21 = arith.mulf %20, %17 : vector<6x128xf32>
    %22 = arith.select %19, %17, %21 : vector<6x128xi1>, vector<6x128xf32>
    %23 = arith.truncf %22 : vector<6x128xf32> to vector<6x128xbf16>
    %c2 = arith.constant 2 : index
    %c0_11 = arith.constant 0 : index
    %c0_12 = arith.constant 0 : index
    %24 = vector.load %arg1[%c2, %c0_11, %c0_12] : memref<12x128x128xbf16, #tpu.memory_space<vmem>>, vector<1x128x128xbf16>
    %25 = vector.shape_cast %24 : vector<1x128x128xbf16> to vector<128x128xbf16>
    %cst_13 = arith.constant dense<0.000000e+00> : vector<6x128xf32>
    %26 = tpu.matmul %23, %25, %cst_13 {dimension_numbers = #tpu.dot_dimension_numbers<[1], [0], [0], [1], [0, 0, 1, 1], [], []>} : vector<6x128xbf16>, vector<128x128xbf16>, vector<6x128xf32> -> vector<6x128xf32>
    %27 = vector.extract_strided_slice %0 {offsets = [2, 0], sizes = [1, 128], strides = [1, 1]} : vector<18x128xf32> to vector<1x128xf32>
    %28 = vector.broadcast %27 : vector<1x128xf32> to vector<6x128xf32>
    %29 = arith.mulf %26, %28 : vector<6x128xf32>
    %30 = vector.extract_strided_slice %0 {offsets = [3, 0], sizes = [1, 128], strides = [1, 1]} : vector<18x128xf32> to vector<1x128xf32>
    %31 = vector.broadcast %30 : vector<1x128xf32> to vector<6x128xf32>
    %32 = arith.addf %29, %31 : vector<6x128xf32>
    %cst_14 = arith.constant 0.000000e+00 : f32
    %33 = vector.broadcast %cst_14 : f32 to vector<6x128xf32>
    %34 = arith.cmpf ogt, %32, %33 : vector<6x128xf32>
    %cst_15 = arith.constant 1.000000e-01 : f32
    %35 = vector.broadcast %cst_15 : f32 to vector<6x128xf32>
    %36 = arith.mulf %35, %32 : vector<6x128xf32>
    %37 = arith.select %34, %32, %36 : vector<6x128xi1>, vector<6x128xf32>
    %38 = arith.truncf %37 : vector<6x128xf32> to vector<6x128xbf16>
    %c3 = arith.constant 3 : index
    %c0_16 = arith.constant 0 : index
    %c0_17 = arith.constant 0 : index
    %39 = vector.load %arg1[%c3, %c0_16, %c0_17] : memref<12x128x128xbf16, #tpu.memory_space<vmem>>, vector<1x128x128xbf16>
    %40 = vector.shape_cast %39 : vector<1x128x128xbf16> to vector<128x128xbf16>
    %cst_18 = arith.constant dense<0.000000e+00> : vector<6x128xf32>
    %41 = tpu.matmul %38, %40, %cst_18 {dimension_numbers = #tpu.dot_dimension_numbers<[1], [0], [0], [1], [0, 0, 1, 1], [], []>} : vector<6x128xbf16>, vector<128x128xbf16>, vector<6x128xf32> -> vector<6x128xf32>
    %42 = vector.extract_strided_slice %0 {offsets = [4, 0], sizes = [1, 128], strides = [1, 1]} : vector<18x128xf32> to vector<1x128xf32>
    %43 = vector.broadcast %42 : vector<1x128xf32> to vector<6x128xf32>
    %44 = arith.mulf %41, %43 : vector<6x128xf32>
    %45 = vector.extract_strided_slice %0 {offsets = [5, 0], sizes = [1, 128], strides = [1, 1]} : vector<18x128xf32> to vector<1x128xf32>
    %46 = vector.broadcast %45 : vector<1x128xf32> to vector<6x128xf32>
    %47 = arith.addf %44, %46 : vector<6x128xf32>
    %48 = arith.truncf %47 : vector<6x128xf32> to vector<6x128xbf16>
    %49 = vector.extract_strided_slice %48 {offsets = [0, 0], sizes = [2, 128], strides = [1, 1]} : vector<6x128xbf16> to vector<2x128xbf16>
    %c4 = arith.constant 4 : index
    %c0_19 = arith.constant 0 : index
    %c0_20 = arith.constant 0 : index
    %50 = vector.load %arg1[%c4, %c0_19, %c0_20] : memref<12x128x128xbf16, #tpu.memory_space<vmem>>, vector<1x128x128xbf16>
    %51 = vector.shape_cast %50 : vector<1x128x128xbf16> to vector<128x128xbf16>
    %cst_21 = arith.constant dense<0.000000e+00> : vector<2x128xf32>
    %52 = tpu.matmul %49, %51, %cst_21 {dimension_numbers = #tpu.dot_dimension_numbers<[1], [0], [0], [1], [0, 0, 1, 1], [], []>} : vector<2x128xbf16>, vector<128x128xbf16>, vector<2x128xf32> -> vector<2x128xf32>
    %53 = vector.extract_strided_slice %48 {offsets = [2, 0], sizes = [2, 128], strides = [1, 1]} : vector<6x128xbf16> to vector<2x128xbf16>
    %c5 = arith.constant 5 : index
    %c0_22 = arith.constant 0 : index
    %c0_23 = arith.constant 0 : index
    %54 = vector.load %arg1[%c5, %c0_22, %c0_23] : memref<12x128x128xbf16, #tpu.memory_space<vmem>>, vector<1x128x128xbf16>
    %55 = vector.shape_cast %54 : vector<1x128x128xbf16> to vector<128x128xbf16>
    %cst_24 = arith.constant dense<0.000000e+00> : vector<2x128xf32>
    %56 = tpu.matmul %53, %55, %cst_24 {dimension_numbers = #tpu.dot_dimension_numbers<[1], [0], [0], [1], [0, 0, 1, 1], [], []>} : vector<2x128xbf16>, vector<128x128xbf16>, vector<2x128xf32> -> vector<2x128xf32>
    %57 = arith.addf %52, %56 : vector<2x128xf32>
    %58 = vector.extract_strided_slice %48 {offsets = [4, 0], sizes = [2, 128], strides = [1, 1]} : vector<6x128xbf16> to vector<2x128xbf16>
    %c6 = arith.constant 6 : index
    %c0_25 = arith.constant 0 : index
    %c0_26 = arith.constant 0 : index
    %59 = vector.load %arg1[%c6, %c0_25, %c0_26] : memref<12x128x128xbf16, #tpu.memory_space<vmem>>, vector<1x128x128xbf16>
    %60 = vector.shape_cast %59 : vector<1x128x128xbf16> to vector<128x128xbf16>
    %cst_27 = arith.constant dense<0.000000e+00> : vector<2x128xf32>
    %61 = tpu.matmul %58, %60, %cst_27 {dimension_numbers = #tpu.dot_dimension_numbers<[1], [0], [0], [1], [0, 0, 1, 1], [], []>} : vector<2x128xbf16>, vector<128x128xbf16>, vector<2x128xf32> -> vector<2x128xf32>
    %62 = arith.addf %57, %61 : vector<2x128xf32>
    %63 = vector.extract_strided_slice %0 {offsets = [6, 0], sizes = [1, 128], strides = [1, 1]} : vector<18x128xf32> to vector<1x128xf32>
    %64 = vector.broadcast %63 : vector<1x128xf32> to vector<2x128xf32>
    %65 = arith.mulf %62, %64 : vector<2x128xf32>
    %66 = vector.extract_strided_slice %0 {offsets = [7, 0], sizes = [1, 128], strides = [1, 1]} : vector<18x128xf32> to vector<1x128xf32>
    %67 = vector.broadcast %66 : vector<1x128xf32> to vector<2x128xf32>
    %68 = arith.addf %65, %67 : vector<2x128xf32>
    %cst_28 = arith.constant 0.000000e+00 : f32
    %69 = vector.broadcast %cst_28 : f32 to vector<2x128xf32>
    %70 = arith.cmpf ogt, %68, %69 : vector<2x128xf32>
    %cst_29 = arith.constant 1.000000e-01 : f32
    %71 = vector.broadcast %cst_29 : f32 to vector<2x128xf32>
    %72 = arith.mulf %71, %68 : vector<2x128xf32>
    %73 = arith.select %70, %68, %72 : vector<2x128xi1>, vector<2x128xf32>
    %74 = arith.truncf %73 : vector<2x128xf32> to vector<2x128xbf16>
    %c7 = arith.constant 7 : index
    %c0_30 = arith.constant 0 : index
    %c0_31 = arith.constant 0 : index
    %75 = vector.load %arg1[%c7, %c0_30, %c0_31] : memref<12x128x128xbf16, #tpu.memory_space<vmem>>, vector<1x128x128xbf16>
    %76 = vector.shape_cast %75 : vector<1x128x128xbf16> to vector<128x128xbf16>
    %cst_32 = arith.constant dense<0.000000e+00> : vector<2x128xf32>
    %77 = tpu.matmul %74, %76, %cst_32 {dimension_numbers = #tpu.dot_dimension_numbers<[1], [0], [0], [1], [0, 0, 1, 1], [], []>} : vector<2x128xbf16>, vector<128x128xbf16>, vector<2x128xf32> -> vector<2x128xf32>
    %78 = vector.extract_strided_slice %0 {offsets = [8, 0], sizes = [1, 128], strides = [1, 1]} : vector<18x128xf32> to vector<1x128xf32>
    %79 = vector.broadcast %78 : vector<1x128xf32> to vector<2x128xf32>
    %80 = arith.mulf %77, %79 : vector<2x128xf32>
    %81 = vector.extract_strided_slice %0 {offsets = [9, 0], sizes = [1, 128], strides = [1, 1]} : vector<18x128xf32> to vector<1x128xf32>
    %82 = vector.broadcast %81 : vector<1x128xf32> to vector<2x128xf32>
    %83 = arith.addf %80, %82 : vector<2x128xf32>
    %cst_33 = arith.constant 0.000000e+00 : f32
    %84 = vector.broadcast %cst_33 : f32 to vector<2x128xf32>
    %85 = arith.cmpf ogt, %83, %84 : vector<2x128xf32>
    %cst_34 = arith.constant 1.000000e-01 : f32
    %86 = vector.broadcast %cst_34 : f32 to vector<2x128xf32>
    %87 = arith.mulf %86, %83 : vector<2x128xf32>
    %88 = arith.select %85, %83, %87 : vector<2x128xi1>, vector<2x128xf32>
    %89 = arith.truncf %88 : vector<2x128xf32> to vector<2x128xbf16>
    %c8 = arith.constant 8 : index
    %c0_35 = arith.constant 0 : index
    %c0_36 = arith.constant 0 : index
    %90 = vector.load %arg1[%c8, %c0_35, %c0_36] : memref<12x128x128xbf16, #tpu.memory_space<vmem>>, vector<1x128x128xbf16>
    %91 = vector.shape_cast %90 : vector<1x128x128xbf16> to vector<128x128xbf16>
    %cst_37 = arith.constant dense<0.000000e+00> : vector<2x128xf32>
    %92 = tpu.matmul %89, %91, %cst_37 {dimension_numbers = #tpu.dot_dimension_numbers<[1], [0], [0], [1], [0, 0, 1, 1], [], []>} : vector<2x128xbf16>, vector<128x128xbf16>, vector<2x128xf32> -> vector<2x128xf32>
    %93 = vector.extract_strided_slice %0 {offsets = [10, 0], sizes = [1, 128], strides = [1, 1]} : vector<18x128xf32> to vector<1x128xf32>
    %94 = vector.broadcast %93 : vector<1x128xf32> to vector<2x128xf32>
    %95 = arith.mulf %92, %94 : vector<2x128xf32>
    %96 = vector.extract_strided_slice %0 {offsets = [11, 0], sizes = [1, 128], strides = [1, 1]} : vector<18x128xf32> to vector<1x128xf32>
    %97 = vector.broadcast %96 : vector<1x128xf32> to vector<2x128xf32>
    %98 = arith.addf %95, %97 : vector<2x128xf32>
    %99 = arith.truncf %98 : vector<2x128xf32> to vector<2x128xbf16>
    %c9 = arith.constant 9 : index
    %c0_38 = arith.constant 0 : index
    %c0_39 = arith.constant 0 : index
    %100 = vector.load %arg1[%c9, %c0_38, %c0_39] : memref<12x128x128xbf16, #tpu.memory_space<vmem>>, vector<1x128x128xbf16>
    %101 = vector.shape_cast %100 : vector<1x128x128xbf16> to vector<128x128xbf16>
    %cst_40 = arith.constant dense<0.000000e+00> : vector<2x128xf32>
    %102 = tpu.matmul %99, %101, %cst_40 {dimension_numbers = #tpu.dot_dimension_numbers<[1], [0], [0], [1], [0, 0, 1, 1], [], []>} : vector<2x128xbf16>, vector<128x128xbf16>, vector<2x128xf32> -> vector<2x128xf32>
    %103 = vector.extract_strided_slice %0 {offsets = [12, 0], sizes = [1, 128], strides = [1, 1]} : vector<18x128xf32> to vector<1x128xf32>
    %104 = vector.broadcast %103 : vector<1x128xf32> to vector<2x128xf32>
    %105 = arith.mulf %102, %104 : vector<2x128xf32>
    %106 = vector.extract_strided_slice %0 {offsets = [13, 0], sizes = [1, 128], strides = [1, 1]} : vector<18x128xf32> to vector<1x128xf32>
    %107 = vector.broadcast %106 : vector<1x128xf32> to vector<2x128xf32>
    %108 = arith.addf %105, %107 : vector<2x128xf32>
    %cst_41 = arith.constant 0.000000e+00 : f32
    %109 = vector.broadcast %cst_41 : f32 to vector<2x128xf32>
    %110 = arith.cmpf ogt, %108, %109 : vector<2x128xf32>
    %cst_42 = arith.constant 1.000000e-01 : f32
    %111 = vector.broadcast %cst_42 : f32 to vector<2x128xf32>
    %112 = arith.mulf %111, %108 : vector<2x128xf32>
    %113 = arith.select %110, %108, %112 : vector<2x128xi1>, vector<2x128xf32>
    %114 = arith.truncf %113 : vector<2x128xf32> to vector<2x128xbf16>
    %c10 = arith.constant 10 : index
    %c0_43 = arith.constant 0 : index
    %c0_44 = arith.constant 0 : index
    %115 = vector.load %arg1[%c10, %c0_43, %c0_44] : memref<12x128x128xbf16, #tpu.memory_space<vmem>>, vector<1x128x128xbf16>
    %116 = vector.shape_cast %115 : vector<1x128x128xbf16> to vector<128x128xbf16>
    %cst_45 = arith.constant dense<0.000000e+00> : vector<2x128xf32>
    %117 = tpu.matmul %114, %116, %cst_45 {dimension_numbers = #tpu.dot_dimension_numbers<[1], [0], [0], [1], [0, 0, 1, 1], [], []>} : vector<2x128xbf16>, vector<128x128xbf16>, vector<2x128xf32> -> vector<2x128xf32>
    %118 = vector.extract_strided_slice %0 {offsets = [14, 0], sizes = [1, 128], strides = [1, 1]} : vector<18x128xf32> to vector<1x128xf32>
    %119 = vector.broadcast %118 : vector<1x128xf32> to vector<2x128xf32>
    %120 = arith.mulf %117, %119 : vector<2x128xf32>
    %121 = vector.extract_strided_slice %0 {offsets = [15, 0], sizes = [1, 128], strides = [1, 1]} : vector<18x128xf32> to vector<1x128xf32>
    %122 = vector.broadcast %121 : vector<1x128xf32> to vector<2x128xf32>
    %123 = arith.addf %120, %122 : vector<2x128xf32>
    %cst_46 = arith.constant 0.000000e+00 : f32
    %124 = vector.broadcast %cst_46 : f32 to vector<2x128xf32>
    %125 = arith.cmpf ogt, %123, %124 : vector<2x128xf32>
    %cst_47 = arith.constant 1.000000e-01 : f32
    %126 = vector.broadcast %cst_47 : f32 to vector<2x128xf32>
    %127 = arith.mulf %126, %123 : vector<2x128xf32>
    %128 = arith.select %125, %123, %127 : vector<2x128xi1>, vector<2x128xf32>
    %129 = arith.truncf %128 : vector<2x128xf32> to vector<2x128xbf16>
    %c11 = arith.constant 11 : index
    %c0_48 = arith.constant 0 : index
    %c0_49 = arith.constant 0 : index
    %130 = vector.load %arg1[%c11, %c0_48, %c0_49] : memref<12x128x128xbf16, #tpu.memory_space<vmem>>, vector<1x128x128xbf16>
    %131 = vector.shape_cast %130 : vector<1x128x128xbf16> to vector<128x128xbf16>
    %cst_50 = arith.constant dense<0.000000e+00> : vector<2x128xf32>
    %132 = tpu.matmul %129, %131, %cst_50 {dimension_numbers = #tpu.dot_dimension_numbers<[1], [0], [0], [1], [0, 0, 1, 1], [], []>} : vector<2x128xbf16>, vector<128x128xbf16>, vector<2x128xf32> -> vector<2x128xf32>
    %133 = vector.extract_strided_slice %0 {offsets = [16, 0], sizes = [1, 128], strides = [1, 1]} : vector<18x128xf32> to vector<1x128xf32>
    %134 = vector.broadcast %133 : vector<1x128xf32> to vector<2x128xf32>
    %135 = arith.mulf %132, %134 : vector<2x128xf32>
    %136 = vector.extract_strided_slice %0 {offsets = [17, 0], sizes = [1, 128], strides = [1, 1]} : vector<18x128xf32> to vector<1x128xf32>
    %137 = vector.broadcast %136 : vector<1x128xf32> to vector<2x128xf32>
    %138 = arith.addf %135, %137 : vector<2x128xf32>
    %139 = tpu.iota {dimensions = array<i32: 1>} : vector<2x128xi32>
    %c4_i32 = arith.constant 4 : i32
    %140 = vector.broadcast %c4_i32 : i32 to vector<2x128xi32>
    %141 = arith.cmpi slt, %139, %140 : vector<2x128xi32>
    %cst_51 = arith.constant -1.000000e+30 : f32
    %142 = vector.broadcast %cst_51 : f32 to vector<2x128xf32>
    %143 = arith.select %141, %138, %142 : vector<2x128xi1>, vector<2x128xf32>
    %cst_52 = arith.constant dense<0xFF800000> : vector<2xf32>
    %144 = vector.multi_reduction <maximumf>, %143, %cst_52 [1] : vector<2x128xf32> to vector<2xf32>
    %145 = vector.shape_cast %144 : vector<2xf32> to vector<2x1xf32>
    %146 = vector.broadcast %145 : vector<2x1xf32> to vector<2x128xf32>
    %147 = arith.subf %143, %146 : vector<2x128xf32>
    %148 = math.exp %147 : vector<2x128xf32>
    %cst_53 = arith.constant 0.000000e+00 : f32
    %149 = vector.broadcast %cst_53 : f32 to vector<2x128xf32>
    %150 = arith.select %141, %148, %149 : vector<2x128xi1>, vector<2x128xf32>
    %cst_54 = arith.constant dense<0.000000e+00> : vector<2xf32>
    %151 = vector.multi_reduction <add>, %150, %cst_54 [1] : vector<2x128xf32> to vector<2xf32>
    %152 = vector.shape_cast %151 : vector<2xf32> to vector<2x1xf32>
    %153 = vector.broadcast %152 : vector<2x1xf32> to vector<2x128xf32>
    %154 = arith.divf %150, %153 : vector<2x128xf32>
    %c0_55 = arith.constant 0 : index
    %c0_56 = arith.constant 0 : index
    %155 = vector.load %arg3[%c0_55, %c0_56] : memref<2x128xf32, #tpu.memory_space<vmem>>, vector<2x128xf32>
    tpu.vector_store %arg3[%c0_55, %c0_56], %154 {strides = array<i32>} : memref<2x128xf32, #tpu.memory_space<vmem>>, vector<2x128xf32>,
    %c0_57 = arith.constant 0 : index
    %c0_58 = arith.constant 0 : index
    %156 = vector.load %arg4[%c0_57, %c0_58] : memref<2x128xf32, #tpu.memory_space<vmem>>, vector<2x128xf32>
    tpu.vector_store %arg4[%c0_57, %c0_58], %98 {strides = array<i32>} : memref<2x128xf32, #tpu.memory_space<vmem>>, vector<2x128xf32>,
    %157 = vector.broadcast %145 : vector<2x1xf32> to vector<2x128xf32>
    %158 = arith.cmpf oge, %143, %157 : vector<2x128xf32>
    %c1073741824_i32 = arith.constant 1073741824 : i32
    %159 = vector.broadcast %c1073741824_i32 : i32 to vector<2x128xi32>
    %160 = arith.select %158, %139, %159 : vector<2x128xi1>, vector<2x128xi32>
    %cst_59 = arith.constant dense<2147483647> : vector<2xi32>
    %161 = vector.multi_reduction <minsi>, %160, %cst_59 [1] : vector<2x128xi32> to vector<2xi32>
    %162 = vector.shape_cast %161 : vector<2xi32> to vector<2x1xi32>
    %c0_60 = arith.constant 0 : index
    %c0_61 = arith.constant 0 : index
    %163 = vector.load %arg5[%c0_60, %c0_61] : memref<2x1xi32, #tpu.memory_space<vmem>>, vector<2x1xi32>
    tpu.vector_store %arg5[%c0_60, %c0_61], %162 {strides = array<i32>} : memref<2x1xi32, #tpu.memory_space<vmem>>, vector<2x1xi32>,
    return
  }
}

</mosaic_0001>

<bundles_post_ra>
// kernel: forward.3
= control target key start
LH: loop header
LB: loop body
LE: loop exit
PB: predicated region body
PF: predicated region fallthrough
CT: control target
= control target key end

     0   :  { %11 = vsyncpa [#allocation3], 0  ;;  %v2264_v1 = vmov 0.0   ;;  %vm2265_vm0 = vmmov 0   ;;  %s2817_s0 = inlined_call_operand.vmem [shape: f32[6,128], index: 0, kind: input, shape index: {}]   ;;  %s2818_s1 = inlined_call_operand.vmem [shape: bf16[12,128,128], index: 1, kind: input, shape index: {}]   ;;  %s2819_s2 = inlined_call_operand.vmem [shape: f32[18,128], index: 2, kind: input, shape index: {}]   ;;  %s2820_s3 = inlined_call_operand.hbm [shape: f32[2,128], index: 3, kind: output, shape index: {0}]   ;;  %s2821_s4 = inlined_call_operand.hbm [shape: f32[2,128], index: 4, kind: output, shape index: {1}]   ;;  %s2822_s5 = inlined_call_operand.vmem [shape: s32[2,1], index: 5, kind: output, shape index: {2}]  }
   0x1   :  { %v2116_v0 = vld [vmem:[%s2818_s1 + $0x40] sm:$0xff]   ;;  %1864 = vmatprep.subr.bf16.mxu0 %v2264_v1  ;;  %1884 = vmatprep.subr.bf16.mxu1 %v2264_v1  ;;  %v2118_v3 = vld [vmem:[%s2818_s1 + $0x48] sm:$0xff]   ;;  %v2120_v5 = vld [vmem:[%s2818_s1 + $0x50] sm:$0xff]  }
   0x2   :  { %v2117_v2 = vld [vmem:[%s2818_s1] sm:$0xff]   ;;  %1865 = vmatpush3.bf16.msra.mxu0 %v2116_v0  ;;  %1880 = vmatprep.mubr.msk.bf16.mxu0 %vm2265_vm0, %v2264_v1  ;;  %v2119_v4 = vld [vmem:[%s2818_s1 + $0x8] sm:$0xff]   ;;  %v2121_v6 = vld [vmem:[%s2818_s1 + $0x10] sm:$0xff]  }
   0x3   :  { %1885 = vmatpush3.bf16.msra.mxu1 %v2117_v2  ;;  %1866 = vmatprep.subr.bf16.mxu0 %v2264_v1  ;;  %v2122_v7 = vld [vmem:[%s2818_s1 + $0x58] sm:$0xff]   ;;  %v2124_v9 = vld [vmem:[%s2818_s1 + $0x60] sm:$0xff]   ;;  %v2126_v11 = vld [vmem:[%s2818_s1 + $0x68] sm:$0xff]  }
   0x4   :  { %1886 = vmatprep.subr.bf16.mxu1 %v2264_v1  ;;  %1900 = vmatprep.mubr.msk.bf16.mxu1 %vm2265_vm0, %v2264_v1  ;;  %v2123_v8 = vld [vmem:[%s2818_s1 + $0x18] sm:$0xff]   ;;  %v2125_v10 = vld [vmem:[%s2818_s1 + $0x20] sm:$0xff]   ;;  %v2127_v12 = vld [vmem:[%s2818_s1 + $0x28] sm:$0xff]  }
   0x5   :  { %v2128_v13 = vld [vmem:[%s2818_s1 + $0x70] sm:$0xff]   ;;  %v2130_v15 = vld [vmem:[%s2818_s1 + $0x78] sm:$0xff]   ;;  %v23_v16 = vld [vmem:[%s2817_s0] sm:$0x3f] }
   0x6   :  { %1867 = vmatpush3.bf16.msra.mxu0 %v2118_v3  ;;  %v2129_v14 = vld [vmem:[%s2818_s1 + $0x30] sm:$0xff]   ;;  %v2131_v17 = vld [vmem:[%s2818_s1 + $0x38] sm:$0xff]   ;;  %v2132_v18 = vld [vmem:[%s2818_s1 + $0x80] sm:$0xff]   ;;  %v24_v19 = vpack.c.bf16 %v23_v16, %v23_v16 }
   0x7   :  { %1887 = vmatpush3.bf16.msra.mxu1 %v2119_v4  ;;  %1868 = vmatprep.subr.bf16.mxu0 %v2264_v1  ;;  %v2133_v20 = vld [vmem:[%s2818_s1 + $0x88] sm:$0xff]   ;;  %v2134_v21 = vld [vmem:[%s2818_s1 + $0x90] sm:$0xff]   ;;  %v2135_v22 = vld [vmem:[%s2818_s1 + $0x98] sm:$0xff]  }
   0x8   :  { %1888 = vmatprep.subr.bf16.mxu1 %v2264_v1 }
   0xa   :  { %1869 = vmatpush3.bf16.msra.mxu0 %v2120_v5 }
   0xb   :  { %1889 = vmatpush3.bf16.msra.mxu1 %v2121_v6  ;;  %1870 = vmatprep.subr.bf16.mxu0 %v2264_v1 }
   0xc   :  { %1890 = vmatprep.subr.bf16.mxu1 %v2264_v1 }
   0xe   :  { %1871 = vmatpush3.bf16.msra.mxu0 %v2122_v7 }
   0xf   :  { %1891 = vmatpush3.bf16.msra.mxu1 %v2123_v8  ;;  %1872 = vmatprep.subr.bf16.mxu0 %v2264_v1 }
  0x10   :  { %1892 = vmatprep.subr.bf16.mxu1 %v2264_v1 }
  0x12   :  { %1873 = vmatpush3.bf16.msra.mxu0 %v2124_v9 }
  0x13   :  { %1893 = vmatpush3.bf16.msra.mxu1 %v2125_v10  ;;  %1874 = vmatprep.subr.bf16.mxu0 %v2264_v1 }
  0x14   :  { %1894 = vmatprep.subr.bf16.mxu1 %v2264_v1 }
  0x16   :  { %1875 = vmatpush3.bf16.msra.mxu0 %v2126_v11 }
  0x17   :  { %1895 = vmatpush3.bf16.msra.mxu1 %v2127_v12  ;;  %1876 = vmatprep.subr.bf16.mxu0 %v2264_v1 }
  0x18   :  { %1896 = vmatprep.subr.bf16.mxu1 %v2264_v1 }
  0x1a   :  { %1877 = vmatpush3.bf16.msra.mxu0 %v2128_v13 }
  0x1b   :  { %1897 = vmatpush3.bf16.msra.mxu1 %v2129_v14  ;;  %1878 = vmatprep.subr.bf16.mxu0 %v2264_v1 }
  0x1c   :  { %1898 = vmatprep.subr.bf16.mxu1 %v2264_v1 }
  0x1e   :  { %1879 = vmatpush3.bf16.msra.mxu0 %v2130_v15 }
  0x1f   :  { %1899 = vmatpush3.bf16.msra.mxu1 %v2131_v17  ;;  %1904 = vmatprep.subr.bf16.mxu0 %v2264_v1 }
  0x20   :  { %1924 = vmatprep.subr.bf16.mxu1 %v2264_v1 }
  0x21   :  { %1881 = vmatmul.mubr.bf16.vlgmr.msra.gmra.mrb[0].mxu0 %v24_v19 }
  0x22   :  { %1901 = vmatmul.mubr.bf16.vlgmr.msra.gmra.mrb[0].mxu1 %v24_v19  ;;  %1905 = vmatpush3.bf16.msra.mxu0 %v2132_v18 }
  0x23   :  { %1906 = vmatprep.subr.bf16.mxu0 %v2264_v1  ;;  %1920 = vmatprep.mubr.msk.bf16.mxu0 %vm2265_vm0, %v2264_v1 }
  0x24   :  { %1940 = vmatprep.mubr.msk.bf16.mxu1 %vm2265_vm0, %v2264_v1 }
  0x26   :  { %1907 = vmatpush3.bf16.msra.mxu0 %v2133_v20 }
  0x27   :  { %1908 = vmatprep.subr.bf16.mxu0 %v2264_v1 }
  0x2a   :  { %1909 = vmatpush3.bf16.msra.mxu0 %v2134_v21 }
  0x2b   :  { %1910 = vmatprep.subr.bf16.mxu0 %v2264_v1 }
  0x2e   :  { %1911 = vmatpush3.bf16.msra.mxu0 %v2135_v22 }
  0x2f   :  { %1912 = vmatprep.subr.bf16.mxu0 %v2264_v1 }
  0x30   :  { %12 = vsyncpa [#allocation5], 0  ;;  %v2136_v23 = vld [vmem:[%s2818_s1 + $0xa0] sm:$0xff]   ;;  %v2137_v24 = vld [vmem:[%s2818_s1 + $0xa8] sm:$0xff]   ;;  %v243_v33 = vlaneseq  ;;  %vm151_vm1 = vcmask 1041408   ;;  %vm153_vm2 = vcmask 1043456  }
  0x31   :  { %v2138_v25 = vld [vmem:[%s2818_s1 + $0xb0] sm:$0xff]   ;;  %v2139_v26 = vld [vmem:[%s2818_s1 + $0xb8] sm:$0xff]   ;;  %v2140_v27 = vld [vmem:[%s2818_s1 + $0xc0] sm:$0xff]   ;;  %s2267_s11 = smov [#allocation4]  }
  0x32   :  { %1913 = vmatpush3.bf16.msra.mxu0 %v2136_v23  ;;  %1925 = vmatpush3.bf16.msra.mxu1 %v2140_v27  ;;  %v2141_v28 = vld [vmem:[%s2818_s1 + $0xc8] sm:$0xff]   ;;  %v2142_v29 = vld [vmem:[%s2818_s1 + $0xd0] sm:$0xff]   ;;  %v2143_v30 = vld [vmem:[%s2818_s1 + $0xd8] sm:$0xff]   ;;  %v2432_v34 = vshrl.u32 %v243_v33, 7  ;;  %s1468_s12 = sshll.u32 %s2267_s11, 4  ;;  %s1469_s12 = int_to_ptr.vmem [resolvable:$true] %s1468_s12 }
  0x33   :  { %1914 = vmatprep.subr.bf16.mxu0 %v2264_v1  ;;  %1926 = vmatprep.subr.bf16.mxu1 %v2264_v1  ;;  %v2144_v31 = vld [vmem:[%s2818_s1 + $0xe0] sm:$0xff]   ;;  %v2145_v32 = vld [vmem:[%s2818_s1 + $0xe8] sm:$0xff]   ;;  %v2146_v58 = vld [vmem:[%s2818_s1 + $0xf0] sm:$0xff]   ;;  %s2216_s13 = scalar_lea.vmem %s1469_s12, 32  ;;  %p2221_p1 = scmp.lt.s32.totalorder %s1469_s12, %s1469_s12 }
  0x34   :  { %v2435_v35 = vsub.s32 0, %v2432_v34  ;;  %v2440_v37 = vld [vmem:[%s2819_s2] sm:$0xff]  ;;  %v2443_v42 = vsub.s32 1, %v2432_v34  ;;  %v2147_v59 = vld [vmem:[%s2818_s1 + $0xf8] sm:$0xff]   ;;  %v2149_v61 = vld [vmem:[%s2818_s1 + $0x148] sm:$0xff]   ;;  %v364_v3 = vsub.s32 2, %v2432_v34  ;;  %p2217_p0 = scmp.ne.s32.totalorder %s1469_s12, %s2216_s13  ;;  %p2222_p2 = scmp.lt.s32.totalorder %s2216_s13, %s2216_s13 }
  0x35   :  { %v2148_v60 = vld [vmem:[%s2818_s1 + $0x140] sm:$0xff]   ;;  %v2150_v62 = vld [vmem:[%s2818_s1 + $0x150] sm:$0xff]   ;;  %v2151_v63 = vld [vmem:[%s2818_s1 + $0x158] sm:$0xff]   ;;  %v369_v4 = vsub.s32 3, %v2432_v34 }
  0x36   :  { %1915 = vmatpush3.bf16.msra.mxu0 %v2137_v24  ;;  %1927 = vmatpush3.bf16.msra.mxu1 %v2141_v28  ;;  %v246_v46 = vrot.slane %v2440_v37, %v2435_v35  ;;  %v251_v52 = vrot.slane %v2440_v37, %v2443_v42  ;;  %v2152_v0 = vld [vmem:[%s2818_s1 + $0x160] sm:$0xff]   ;;  %v2153_v2 = vld [vmem:[%s2818_s1 + $0x168] sm:$0xff]   ;;  %v365_v5 = vrot.slane %v2440_v37, %v364_v3  ;;  %v2154_v16 = vld [vmem:[%s2818_s1 + $0x170] sm:$0xff]   ;;  %v483_v24 = vsub.s32 4, %v2432_v34  ;;  %p2223_p3 = por %p2222_p2, %p2221_p1 }
  0x37   :  { %1916 = vmatprep.subr.bf16.mxu0 %v2264_v1  ;;  %1928 = vmatprep.subr.bf16.mxu1 %v2264_v1  ;;  %v370_v6 = vrot.slane %v2440_v37, %v369_v4  ;;  %v2155_v17 = vld [vmem:[%s2818_s1 + $0x178] sm:$0xff]   ;;  %v2172_v18 = vld [vmem:[%s2818_s1 + $0x1c0] sm:$0xff]   ;;  %v2173_v19 = vld [vmem:[%s2818_s1 + $0x1c8] sm:$0xff]  }
  0x38   :  { %v2174_v20 = vld [vmem:[%s2818_s1 + $0x1d0] sm:$0xff]   ;;  %v2175_v21 = vld [vmem:[%s2818_s1 + $0x1d8] sm:$0xff]   ;;  %v2176_v22 = vld [vmem:[%s2818_s1 + $0x1e0] sm:$0xff]   ;;  %p2224_p4 = pnand %p2223_p3, %p2217_p0 }
  0x39   :  { %v2177_v23 = vld [vmem:[%s2818_s1 + $0x1e8] sm:$0xff]  }
  0x3a   :  { %1917 = vmatpush3.bf16.msra.mxu0 %v2138_v25  ;;  %1929 = vmatpush3.bf16.msra.mxu1 %v2142_v29  ;;  %v488_v25 = vsub.s32 5, %v2432_v34 }
  0x3b   :  { %1918 = vmatprep.subr.bf16.mxu0 %v2264_v1  ;;  %1930 = vmatprep.subr.bf16.mxu1 %v2264_v1 }
  0x3c   :  { %v489_v27 = vrot.slane %v2440_v37, %v488_v25 }
  0x3e   :  { %1919 = vmatpush3.bf16.msra.mxu0 %v2139_v26  ;;  %1931 = vmatpush3.bf16.msra.mxu1 %v2143_v30  ;;  %v484_v26 = vrot.slane %v2440_v37, %v483_v24 }
  0x3f   :  { %1944 = vmatprep.subr.bf16.mxu0 %v2264_v1  ;;  %1932 = vmatprep.subr.bf16.mxu1 %v2264_v1 }
  0x42   :  { %1933 = vmatpush3.bf16.msra.mxu1 %v2144_v31 }
  0x43   :  { %1934 = vmatprep.subr.bf16.mxu1 %v2264_v1 }
  0x46   :  { %1935 = vmatpush3.bf16.msra.mxu1 %v2145_v32 }
  0x47   :  { %1936 = vmatprep.subr.bf16.mxu1 %v2264_v1 }
  0x4a   :  { %1937 = vmatpush3.bf16.msra.mxu1 %v2146_v58  ;;  %v2178_v58 = vld [vmem:[%s2818_s1 + $0x1f0] sm:$0xff]  }
  0x4b   :  { %1938 = vmatprep.subr.bf16.mxu1 %v2264_v1 }
  0x4e   :  { %1939 = vmatpush3.bf16.msra.mxu1 %v2147_v59  ;;  %v2179_v59 = vld [vmem:[%s2818_s1 + $0x1f8] sm:$0xff]  }
  0x4f   :  { %2004 = vmatprep.subr.bf16.mxu1 %v2264_v1 }
  0xf4   :  { %v124_v36 = vpop.f32.mrb[0].mxu0 }
  0xf5   :  { %v147_v38 = vrot.slane %v124_v36, 6  ;;  %v149_v39 = vrot.slane %v124_v36, 4  ;;  %v1882_v40 = vpop.f32.mrb[1].mxu0  ;;  %v237_v41 = vpop.f32.mrb[0].mxu1 }
  0xf6   :  { %v127_v43 = vpop.f32.mrb[2].mxu0  ;;  %v1902_v44 = vpop.f32.mrb[1].mxu1 }
  0xf7   :  { %v152_v45 = vsel %vm151_vm1, %v124_v36, %v147_v38  ;;  %v1883_v47 = vpop.f32.mrb[3].mxu0  ;;  %v240_v48 = vpop.f32.mrb[2].mxu1  ;;  %v2158_v43 = vld [vmem:[%s2818_s1 + $0x110] sm:$0xff]   ;;  %v2159_v44 = vld [vmem:[%s2818_s1 + $0x118] sm:$0xff]  }
  0xf8   :  { %v154_v49 = vsel %vm153_vm2, %v152_v45, %v149_v39  ;;  %v1903_v50 = vpop.f32.mrb[3].mxu1  ;;  %v2156_v39 = vld [vmem:[%s2818_s1 + $0x100] sm:$0xff]   ;;  %v2162_v47 = vld [vmem:[%s2818_s1 + $0x130] sm:$0xff]   ;;  %v2163_v48 = vld [vmem:[%s2818_s1 + $0x138] sm:$0xff]  }
  0xf9   :  { %v238_v51 = vadd.f32 %v237_v41, %v154_v49  ;;  %v2157_v41 = vld [vmem:[%s2818_s1 + $0x108] sm:$0xff]   ;;  %v2160_v45 = vld [vmem:[%s2818_s1 + $0x120] sm:$0xff]  }
  0xfa   :  { %v2164_v49 = vld [vmem:[%s2818_s1 + $0x180] sm:$0xff]   ;;  %v2165_v50 = vld [vmem:[%s2818_s1 + $0x188] sm:$0xff]  }
  0xfb   :  { %v247_v53 = vmul.f32 %v246_v46, %v238_v51  ;;  %v2161_v46 = vld [vmem:[%s2818_s1 + $0x128] sm:$0xff]   ;;  %v2166_v51 = vld [vmem:[%s2818_s1 + $0x190] sm:$0xff]  }
  0xfd   :  { %v252_v54 = vadd.f32 %v251_v52, %v247_v53  ;;  %v2167_v52 = vld [vmem:[%s2818_s1 + $0x198] sm:$0xff]   ;;  %v2168_v53 = vld [vmem:[%s2818_s1 + $0x1a0] sm:$0xff]  }
  0xff   :  { %vm253_vm3 = vcmp.gt.f32.partialorder %v252_v54, 0.0  ;;  %v254_v55 = vmul.f32 0.1, %v252_v54 }
 0x101   :  { %v255_v56 = vsel %vm253_vm3, %v252_v54, %v254_v55  ;;  %v2169_v54 = vld [vmem:[%s2818_s1 + $0x1a8] sm:$0xff]   ;;  %v2170_v55 = vld [vmem:[%s2818_s1 + $0x1b0] sm:$0xff]  }
 0x102   :  { %v256_v57 = vpack.c.bf16 %v255_v56, %v255_v56  ;;  %v2171_v56 = vld [vmem:[%s2818_s1 + $0x1b8] sm:$0xff]  }
 0x104   :  { %1921 = vmatmul.mubr.bf16.vlgmr.msra.gmra.mrb[4].mxu0 %v256_v57 }
 0x105   :  { %1960 = vmatprep.mubr.msk.bf16.mxu0 %vm2265_vm0, %v2264_v1  ;;  %1945 = vmatpush3.bf16.msra.mxu0 %v2148_v60  ;;  %v815_v60 = vsub.s32 6, %v2432_v34 }
 0x106   :  { %1946 = vmatprep.subr.bf16.mxu0 %v2264_v1 }
 0x109   :  { %1947 = vmatpush3.bf16.msra.mxu0 %v2149_v61  ;;  %v820_v61 = vsub.s32 7, %v2432_v34  ;;  %v1416_v34 = vand.u32 127, %v243_v33 }
 0x10a   :  { %1948 = vmatprep.subr.bf16.mxu0 %v2264_v1 }
 0x10b   :  { %vm1417_vm9 = vcmp.lt.s32.totalorder %v1416_v34, 4 }
 0x10d   :  { %1949 = vmatpush3.bf16.msra.mxu0 %v2150_v62  ;;  %v816_v62 = vrot.slane %v2440_v37, %v815_v60 }
 0x10e   :  { %1950 = vmatprep.subr.bf16.mxu0 %v2264_v1 }
 0x111   :  { %1951 = vmatpush3.bf16.msra.mxu0 %v2151_v63  ;;  %v821_v63 = vrot.slane %v2440_v37, %v820_v61  ;;  %v2181_v37 = vld [vmem:[%s2818_s1 + $0x208] sm:$0xff]  }
 0x112   :  { %1952 = vmatprep.subr.bf16.mxu0 %v2264_v1 }
 0x115   :  { %1953 = vmatpush3.bf16.msra.mxu0 %v2152_v0 }
 0x116   :  { %1954 = vmatprep.subr.bf16.mxu0 %v2264_v1 }
 0x119   :  { %1955 = vmatpush3.bf16.msra.mxu0 %v2153_v2 }
 0x11a   :  { %1956 = vmatprep.subr.bf16.mxu0 %v2264_v1 }
 0x11d   :  { %1957 = vmatpush3.bf16.msra.mxu0 %v2154_v16  ;;  %v2185_v16 = vld [vmem:[%s2818_s1 + $0x228] sm:$0xff]  }
 0x11e   :  { %1958 = vmatprep.subr.bf16.mxu0 %v2264_v1 }
 0x121   :  { %1959 = vmatpush3.bf16.msra.mxu0 %v2155_v17  ;;  %v2186_v17 = vld [vmem:[%s2818_s1 + $0x230] sm:$0xff]  }
 0x122   :  { %1964 = vmatprep.subr.bf16.mxu0 %v2264_v1 }
 0x1d7   :  { %v356_v7 = vpop.f32.mrb[4].mxu0 }
 0x1d8   :  { %v366_v8 = vmul.f32 %v365_v5, %v356_v7  ;;  %v1922_v9 = vpop.f32.mrb[5].mxu0 }
 0x1d9   :  { %v359_v10 = vpop.f32.mrb[6].mxu0 }
 0x1da   :  { %v371_v11 = vadd.f32 %v370_v6, %v366_v8  ;;  %v1923_v12 = vpop.f32.mrb[7].mxu0 }
 0x1dc   :  { %vm372_vm4 = vcmp.gt.f32.partialorder %v371_v11, 0.0  ;;  %v373_v13 = vmul.f32 0.1, %v371_v11 }
 0x1de   :  { %v374_v14 = vsel %vm372_vm4, %v371_v11, %v373_v13  ;;  %v2180_v11 = vld [vmem:[%s2818_s1 + $0x200] sm:$0xff]   ;;  %v2182_v13 = vld [vmem:[%s2818_s1 + $0x210] sm:$0xff]  }
 0x1df   :  { %v375_v15 = vpack.c.bf16 %v374_v14, %v374_v14  ;;  %v2183_v14 = vld [vmem:[%s2818_s1 + $0x218] sm:$0xff]  }
 0x1e1   :  { %1941 = vmatmul.mubr.bf16.vlgmr.msra.gmra.mrb[4].mxu1 %v375_v15  ;;  %v2184_v15 = vld [vmem:[%s2818_s1 + $0x220] sm:$0xff]  }
 0x1e2   :  { %2020 = vmatprep.mubr.msk.bf16.mxu1 %vm2265_vm0, %v2264_v1  ;;  %2005 = vmatpush3.bf16.msra.mxu1 %v2172_v18  ;;  %v2187_v18 = vld [vmem:[%s2818_s1 + $0x238] sm:$0xff]  }
 0x1e3   :  { %2006 = vmatprep.subr.bf16.mxu1 %v2264_v1 }
 0x1e6   :  { %2007 = vmatpush3.bf16.msra.mxu1 %v2173_v19  ;;  %v2657_v19 = vld [vmem:[%s2819_s2 + $0x8] sm:$0xff] }
 0x1e7   :  { %2008 = vmatprep.subr.bf16.mxu1 %v2264_v1 }
 0x1ea   :  { %2009 = vmatpush3.bf16.msra.mxu1 %v2174_v20  ;;  %v935_v20 = vrot.slane %v2657_v19, %v2435_v35 }
 0x1eb   :  { %2010 = vmatprep.subr.bf16.mxu1 %v2264_v1 }
 0x1ee   :  { %2011 = vmatpush3.bf16.msra.mxu1 %v2175_v21  ;;  %v940_v21 = vrot.slane %v2657_v19, %v2443_v42 }
 0x1ef   :  { %2012 = vmatprep.subr.bf16.mxu1 %v2264_v1 }
 0x1f2   :  { %2013 = vmatpush3.bf16.msra.mxu1 %v2176_v22 }
 0x1f3   :  { %2014 = vmatprep.subr.bf16.mxu1 %v2264_v1 }
 0x1f6   :  { %2015 = vmatpush3.bf16.msra.mxu1 %v2177_v23 }
 0x1f7   :  { %2016 = vmatprep.subr.bf16.mxu1 %v2264_v1 }
 0x1fa   :  { %2017 = vmatpush3.bf16.msra.mxu1 %v2178_v58 }
 0x1fb   :  { %2018 = vmatprep.subr.bf16.mxu1 %v2264_v1 }
 0x1fe   :  { %2019 = vmatpush3.bf16.msra.mxu1 %v2179_v59 }
 0x1ff   :  { %2024 = vmatprep.subr.bf16.mxu1 %v2264_v1 }
 0x2b4   :  { %v475_v28 = vpop.f32.mrb[4].mxu1 }
 0x2b5   :  { %v485_v29 = vmul.f32 %v484_v26, %v475_v28  ;;  %v1942_v30 = vpop.f32.mrb[5].mxu1 }
 0x2b6   :  { %v478_v31 = vpop.f32.mrb[6].mxu1 }
 0x2b7   :  { %v490_v32 = vadd.f32 %v489_v27, %v485_v29  ;;  %v1943_v36 = vpop.f32.mrb[7].mxu1 }
 0x2b9   :  { %v491_v38 = vpack.c.bf16 %v490_v32, %v490_v32  ;;  %v2188_v32 = vld [vmem:[%s2818_s1 + $0x240] sm:$0xff]  }
 0x2bb   :  { %v527_v40 = vrot.slane %v491_v38, 1  ;;  %v722_v57 = vrot.slane %v491_v38, 2 }
 0x2bd   :  { %1961 = vmatmul.mubr.bf16.vlgmr.msra.gmra.mrb[8].mxu0 %v527_v40  ;;  %v2191_v40 = vld [vmem:[%s2818_s1 + $0x258] sm:$0xff]  }
 0x2be   :  { %1965 = vmatpush3.bf16.msra.mxu0 %v2156_v39  ;;  %1980 = vmatprep.mubr.msk.bf16.mxu0 %vm2265_vm0, %v2264_v1  ;;  %v2190_v39 = vld [vmem:[%s2818_s1 + $0x250] sm:$0xff]  }
 0x2bf   :  { %1966 = vmatprep.subr.bf16.mxu0 %v2264_v1 }
 0x2c2   :  { %1967 = vmatpush3.bf16.msra.mxu0 %v2157_v41  ;;  %v2192_v41 = vld [vmem:[%s2818_s1 + $0x260] sm:$0xff]  }
 0x2c3   :  { %1968 = vmatprep.subr.bf16.mxu0 %v2264_v1 }
 0x2c6   :  { %1969 = vmatpush3.bf16.msra.mxu0 %v2158_v43  ;;  %v2193_v43 = vld [vmem:[%s2818_s1 + $0x268] sm:$0xff]  }
 0x2c7   :  { %1970 = vmatprep.subr.bf16.mxu0 %v2264_v1 }
 0x2ca   :  { %1971 = vmatpush3.bf16.msra.mxu0 %v2159_v44  ;;  %v2194_v44 = vld [vmem:[%s2818_s1 + $0x270] sm:$0xff]  }
 0x2cb   :  { %1972 = vmatprep.subr.bf16.mxu0 %v2264_v1 }
 0x2ce   :  { %1973 = vmatpush3.bf16.msra.mxu0 %v2160_v45  ;;  %v2195_v45 = vld [vmem:[%s2818_s1 + $0x278] sm:$0xff]  }
 0x2cf   :  { %1974 = vmatprep.subr.bf16.mxu0 %v2264_v1 }
 0x2d2   :  { %1975 = vmatpush3.bf16.msra.mxu0 %v2161_v46  ;;  %v2196_v46 = vld [vmem:[%s2818_s1 + $0x280] sm:$0xff]  }
 0x2d3   :  { %1976 = vmatprep.subr.bf16.mxu0 %v2264_v1 }
 0x2d6   :  { %1977 = vmatpush3.bf16.msra.mxu0 %v2162_v47  ;;  %v2197_v47 = vld [vmem:[%s2818_s1 + $0x288] sm:$0xff]  }
 0x2d7   :  { %1978 = vmatprep.subr.bf16.mxu0 %v2264_v1 }
 0x2da   :  { %1979 = vmatpush3.bf16.msra.mxu0 %v2163_v48  ;;  %v2198_v48 = vld [vmem:[%s2818_s1 + $0x290] sm:$0xff]  }
 0x2db   :  { %1984 = vmatprep.subr.bf16.mxu0 %v2264_v1 }
 0x2dd   :  { %1981 = vmatmul.mubr.bf16.vlgmr.msra.gmra.mrb[8].mxu0 %v491_v38  ;;  %v2189_v38 = vld [vmem:[%s2818_s1 + $0x248] sm:$0xff]  }
 0x2de   :  { %1985 = vmatpush3.bf16.msra.mxu0 %v2164_v49  ;;  %2000 = vmatprep.mubr.msk.bf16.mxu0 %vm2265_vm0, %v2264_v1  ;;  %v2199_v49 = vld [vmem:[%s2818_s1 + $0x298] sm:$0xff]  }
 0x2df   :  { %1986 = vmatprep.subr.bf16.mxu0 %v2264_v1 }
 0x2e2   :  { %1987 = vmatpush3.bf16.msra.mxu0 %v2165_v50  ;;  %v2200_v50 = vld [vmem:[%s2818_s1 + $0x2a0] sm:$0xff]  }
 0x2e3   :  { %1988 = vmatprep.subr.bf16.mxu0 %v2264_v1 }
 0x2e6   :  { %1989 = vmatpush3.bf16.msra.mxu0 %v2166_v51  ;;  %v2201_v51 = vld [vmem:[%s2818_s1 + $0x2a8] sm:$0xff]  }
 0x2e7   :  { %1990 = vmatprep.subr.bf16.mxu0 %v2264_v1 }
 0x2ea   :  { %1991 = vmatpush3.bf16.msra.mxu0 %v2167_v52  ;;  %v1054_v52 = vrot.slane %v2657_v19, %v364_v3  ;;  %v2202_v3 = vld [vmem:[%s2818_s1 + $0x2b0] sm:$0xff]  }
 0x2eb   :  { %1992 = vmatprep.subr.bf16.mxu0 %v2264_v1 }
 0x2ee   :  { %1993 = vmatpush3.bf16.msra.mxu0 %v2168_v53  ;;  %v1059_v53 = vrot.slane %v2657_v19, %v369_v4  ;;  %v2203_v4 = vld [vmem:[%s2818_s1 + $0x2b8] sm:$0xff]  }
 0x2ef   :  { %1994 = vmatprep.subr.bf16.mxu0 %v2264_v1 }
 0x2f2   :  { %1995 = vmatpush3.bf16.msra.mxu0 %v2169_v54 }
 0x2f3   :  { %1996 = vmatprep.subr.bf16.mxu0 %v2264_v1 }
 0x2f6   :  { %1997 = vmatpush3.bf16.msra.mxu0 %v2170_v55 }
 0x2f7   :  { %1998 = vmatprep.subr.bf16.mxu0 %v2264_v1 }
 0x2fa   :  { %1999 = vmatpush3.bf16.msra.mxu0 %v2171_v56 }
 0x2fb   :  { %2064 = vmatprep.subr.bf16.mxu0 %v2264_v1 }
 0x2fd   :  { %2001 = vmatmul.mubr.bf16.vlgmr.msra.gmra.mrb[8].mxu0 %v722_v57 }
 0x2fe   :  { %2080 = vmatprep.mubr.msk.bf16.mxu0 %vm2265_vm0, %v2264_v1  ;;  %2065 = vmatpush3.bf16.msra.mxu0 %v2196_v46 }
 0x2ff   :  { %2066 = vmatprep.subr.bf16.mxu0 %v2264_v1 }
 0x302   :  { %2067 = vmatpush3.bf16.msra.mxu0 %v2197_v47 }
 0x303   :  { %2068 = vmatprep.subr.bf16.mxu0 %v2264_v1 }
 0x306   :  { %2069 = vmatpush3.bf16.msra.mxu0 %v2198_v48 }
 0x307   :  { %2070 = vmatprep.subr.bf16.mxu0 %v2264_v1 }
 0x30a   :  { %2071 = vmatpush3.bf16.msra.mxu0 %v2199_v49 }
 0x30b   :  { %2072 = vmatprep.subr.bf16.mxu0 %v2264_v1 }
 0x30e   :  { %2073 = vmatpush3.bf16.msra.mxu0 %v2200_v50 }
 0x30f   :  { %2074 = vmatprep.subr.bf16.mxu0 %v2264_v1 }
 0x312   :  { %2075 = vmatpush3.bf16.msra.mxu0 %v2201_v51 }
 0x313   :  { %2076 = vmatprep.subr.bf16.mxu0 %v2264_v1 }
 0x316   :  { %2077 = vmatpush3.bf16.msra.mxu0 %v2202_v3 }
 0x317   :  { %2078 = vmatprep.subr.bf16.mxu0 %v2264_v1 }
 0x31a   :  { %2079 = vmatpush3.bf16.msra.mxu0 %v2203_v4 }
 0x3d0   :  { %v806_v0 = vpop.f32.mrb[8].mxu0 }
 0x3d1   :  { %v817_v2 = vmul.f32 %v816_v62, %v806_v0  ;;  %v2002_v5 = vpop.f32.mrb[9].mxu0  ;;  %v2205_v0 = vld [vmem:[%s2818_s1 + $0x2c8] sm:$0xff]  }
 0x3d2   :  { %v809_v6 = vpop.f32.mrb[10].mxu0  ;;  %v2207_v5 = vld [vmem:[%s2818_s1 + $0x2d8] sm:$0xff]  }
 0x3d3   :  { %v822_v7 = vadd.f32 %v821_v63, %v817_v2  ;;  %v2003_v8 = vpop.f32.mrb[11].mxu0  ;;  %v2204_v63 = vld [vmem:[%s2818_s1 + $0x2c0] sm:$0xff]   ;;  %v2206_v2 = vld [vmem:[%s2818_s1 + $0x2d0] sm:$0xff]  }
 0x3d4   :  { %v2208_v6 = vld [vmem:[%s2818_s1 + $0x2e0] sm:$0xff]   ;;  %v1170_v8 = vrot.slane %v2657_v19, %v483_v24  ;;  %v2211_v24 = vld [vmem:[%s2818_s1 + $0x2f8] sm:$0xff]  }
 0x3d5   :  { %vm823_vm5 = vcmp.gt.f32.partialorder %v822_v7, 0.0  ;;  %v824_v9 = vmul.f32 0.1, %v822_v7 }
 0x3d7   :  { %v825_v10 = vsel %vm823_vm5, %v822_v7, %v824_v9  ;;  %v2209_v7 = vld [vmem:[%s2818_s1 + $0x2e8] sm:$0xff]   ;;  %v1175_v9 = vrot.slane %v2657_v19, %v488_v25  ;;  %v1289_v25 = vrot.slane %v2657_v19, %v815_v60 }
 0x3d8   :  { %v826_v12 = vpack.c.bf16 %v825_v10, %v825_v10 }
 0x3da   :  { %2021 = vmatmul.mubr.bf16.vlgmr.msra.gmra.mrb[8].mxu1 %v826_v12 }
 0x3db   :  { %2025 = vmatpush3.bf16.msra.mxu1 %v2180_v11  ;;  %2040 = vmatprep.mubr.msk.bf16.mxu1 %vm2265_vm0, %v2264_v1 }
 0x3dc   :  { %2026 = vmatprep.subr.bf16.mxu1 %v2264_v1 }
 0x3df   :  { %2027 = vmatpush3.bf16.msra.mxu1 %v2181_v37 }
 0x3e0   :  { %2028 = vmatprep.subr.bf16.mxu1 %v2264_v1 }
 0x3e3   :  { %2029 = vmatpush3.bf16.msra.mxu1 %v2182_v13 }
 0x3e4   :  { %2030 = vmatprep.subr.bf16.mxu1 %v2264_v1 }
 0x3e7   :  { %2031 = vmatpush3.bf16.msra.mxu1 %v2183_v14 }
 0x3e8   :  { %2032 = vmatprep.subr.bf16.mxu1 %v2264_v1 }
 0x3eb   :  { %2033 = vmatpush3.bf16.msra.mxu1 %v2184_v15 }
 0x3ec   :  { %2034 = vmatprep.subr.bf16.mxu1 %v2264_v1 }
 0x3ef   :  { %2035 = vmatpush3.bf16.msra.mxu1 %v2185_v16 }
 0x3f0   :  { %2036 = vmatprep.subr.bf16.mxu1 %v2264_v1 }
 0x3f3   :  { %2037 = vmatpush3.bf16.msra.mxu1 %v2186_v17 }
 0x3f4   :  { %2038 = vmatprep.subr.bf16.mxu1 %v2264_v1 }
 0x3f7   :  { %2039 = vmatpush3.bf16.msra.mxu1 %v2187_v18  ;;  %v2210_v18 = vld [vmem:[%s2818_s1 + $0x2f0] sm:$0xff]  }
 0x3f8   :  { %2044 = vmatprep.subr.bf16.mxu1 %v2264_v1 }
 0x4ad   :  { %v926_v22 = vpop.f32.mrb[8].mxu1 }
 0x4ae   :  { %v936_v23 = vmul.f32 %v935_v20, %v926_v22  ;;  %v2022_v26 = vpop.f32.mrb[9].mxu1  ;;  %v1294_v20 = vrot.slane %v2657_v19, %v820_v61 }
 0x4af   :  { %v929_v27 = vpop.f32.mrb[10].mxu1 }
 0x4b0   :  { %v941_v28 = vadd.f32 %v940_v21, %v936_v23  ;;  %v2023_v29 = vpop.f32.mrb[11].mxu1 }
 0x4b2   :  { %vm942_vm6 = vcmp.gt.f32.partialorder %v941_v28, 0.0  ;;  %v943_v30 = vmul.f32 0.1, %v941_v28 }
 0x4b4   :  { %v944_v31 = vsel %vm942_vm6, %v941_v28, %v943_v30 }
 0x4b5   :  { %v945_v36 = vpack.c.bf16 %v944_v31, %v944_v31  ;;  %v22_v31 = vld [vmem:[%s2819_s2 + $0x10] sm:$0x3]  ;;  %s2266_s2 = smov [#allocation2]  }
 0x4b6   :  { %v1408_v60 = vrot.slane %v22_v31, %v2435_v35  ;;  %v1413_v61 = vrot.slane %v22_v31, %v2443_v42  ;;  %s1458_s10 = sshll.u32 %s2266_s2, 4  ;;  %s1459_s10 = int_to_ptr.vmem [resolvable:$true] %s1458_s10 }
 0x4b7   :  { %2041 = vmatmul.mubr.bf16.vlgmr.msra.gmra.mrb[12].mxu1 %v945_v36 }
 0x4b8   :  { %2045 = vmatpush3.bf16.msra.mxu1 %v2188_v32  ;;  %2060 = vmatprep.mubr.msk.bf16.mxu1 %vm2265_vm0, %v2264_v1 }
 0x4b9   :  { %2046 = vmatprep.subr.bf16.mxu1 %v2264_v1 }
 0x4bc   :  { %2047 = vmatpush3.bf16.msra.mxu1 %v2189_v38 }
 0x4bd   :  { %2048 = vmatprep.subr.bf16.mxu1 %v2264_v1 }
 0x4c0   :  { %2049 = vmatpush3.bf16.msra.mxu1 %v2190_v39 }
 0x4c1   :  { %2050 = vmatprep.subr.bf16.mxu1 %v2264_v1 }
 0x4c4   :  { %2051 = vmatpush3.bf16.msra.mxu1 %v2191_v40 }
 0x4c5   :  { %2052 = vmatprep.subr.bf16.mxu1 %v2264_v1 }
 0x4c8   :  { %2053 = vmatpush3.bf16.msra.mxu1 %v2192_v41 }
 0x4c9   :  { %2054 = vmatprep.subr.bf16.mxu1 %v2264_v1 }
 0x4cc   :  { %2055 = vmatpush3.bf16.msra.mxu1 %v2193_v43 }
 0x4cd   :  { %2056 = vmatprep.subr.bf16.mxu1 %v2264_v1 }
 0x4d0   :  { %2057 = vmatpush3.bf16.msra.mxu1 %v2194_v44 }
 0x4d1   :  { %2058 = vmatprep.subr.bf16.mxu1 %v2264_v1 }
 0x4d4   :  { %2059 = vmatpush3.bf16.msra.mxu1 %v2195_v45 }
 0x4d5   :  { %2084 = vmatprep.subr.bf16.mxu1 %v2264_v1 }
 0x58a   :  { %v1045_v54 = vpop.f32.mrb[12].mxu1 }
 0x58b   :  { %v1055_v55 = vmul.f32 %v1054_v52, %v1045_v54  ;;  %v2042_v56 = vpop.f32.mrb[13].mxu1 }
 0x58c   :  { %v1048_v57 = vpop.f32.mrb[14].mxu1 }
 0x58d   :  { %v1060_v58 = vadd.f32 %v1059_v53, %v1055_v55  ;;  %v2043_v59 = vpop.f32.mrb[15].mxu1 }
 0x58f   :  { %v1061_v62 = vpack.c.bf16 %v1060_v58, %v1060_v58  ;;  %1432 = vst [vmem:[#allocation4] sm:$0x3] %v1060_v58 }
 0x591   :  { %2061 = vmatmul.mubr.bf16.vlgmr.msra.gmra.mrb[16].mxu1 %v1061_v62 }
 0x592   :  { %2100 = vmatprep.mubr.msk.bf16.mxu1 %vm2265_vm0, %v2264_v1  ;;  %2085 = vmatpush3.bf16.msra.mxu1 %v2204_v63 }
 0x593   :  { %2086 = vmatprep.subr.bf16.mxu1 %v2264_v1 }
 0x596   :  { %2087 = vmatpush3.bf16.msra.mxu1 %v2205_v0 }
 0x597   :  { %2088 = vmatprep.subr.bf16.mxu1 %v2264_v1 }
 0x59a   :  { %2089 = vmatpush3.bf16.msra.mxu1 %v2206_v2 }
 0x59b   :  { %2090 = vmatprep.subr.bf16.mxu1 %v2264_v1 }
 0x59e   :  { %2091 = vmatpush3.bf16.msra.mxu1 %v2207_v5 }
 0x59f   :  { %2092 = vmatprep.subr.bf16.mxu1 %v2264_v1 }
 0x5a2   :  { %2093 = vmatpush3.bf16.msra.mxu1 %v2208_v6 }
 0x5a3   :  { %2094 = vmatprep.subr.bf16.mxu1 %v2264_v1 }
 0x5a6   :  { %2095 = vmatpush3.bf16.msra.mxu1 %v2209_v7 }
 0x5a7   :  { %2096 = vmatprep.subr.bf16.mxu1 %v2264_v1 }
 0x5aa   :  { %2097 = vmatpush3.bf16.msra.mxu1 %v2210_v18 }
 0x5ab   :  { %2098 = vmatprep.subr.bf16.mxu1 %v2264_v1 }
 0x5ae   :  { %2099 = vmatpush3.bf16.msra.mxu1 %v2211_v24 }
 0x664   :  { %v1161_v10 = vpop.f32.mrb[16].mxu1 }
 0x665   :  { %v1171_v11 = vmul.f32 %v1170_v8, %v1161_v10  ;;  %v2062_v12 = vpop.f32.mrb[17].mxu1 }
 0x666   :  { %v1164_v37 = vpop.f32.mrb[18].mxu1 }
 0x667   :  { %v1176_v13 = vadd.f32 %v1175_v9, %v1171_v11  ;;  %v2063_v14 = vpop.f32.mrb[19].mxu1 }
 0x669   :  { %vm1177_vm7 = vcmp.gt.f32.partialorder %v1176_v13, 0.0  ;;  %v1178_v15 = vmul.f32 0.1, %v1176_v13 }
 0x66b   :  { %v1179_v16 = vsel %vm1177_vm7, %v1176_v13, %v1178_v15 }
 0x66c   :  { %v1180_v17 = vpack.c.bf16 %v1179_v16, %v1179_v16 }
 0x66e   :  { %2081 = vmatmul.mubr.bf16.vlgmr.msra.gmra.mrb[12].mxu0 %v1180_v17 }
 0x741   :  { %v1280_v21 = vpop.f32.mrb[12].mxu0 }
 0x742   :  { %v1290_v22 = vmul.f32 %v1289_v25, %v1280_v21  ;;  %v2082_v23 = vpop.f32.mrb[13].mxu0 }
 0x743   :  { %v1283_v26 = vpop.f32.mrb[14].mxu0 }
 0x744   :  { %v1295_v27 = vadd.f32 %v1294_v20, %v1290_v22  ;;  %v2083_v28 = vpop.f32.mrb[15].mxu0 }
 0x746   :  { %vm1296_vm8 = vcmp.gt.f32.partialorder %v1295_v27, 0.0  ;;  %v1297_v1 = vmul.f32 0.1, %v1295_v27 }
 0x748   :  { %v1298_v29 = vsel %vm1296_vm8, %v1295_v27, %v1297_v1 }
 0x749   :  { %v1299_v30 = vpack.c.bf16 %v1298_v29, %v1298_v29 }
 0x74b   :  { %2101 = vmatmul.mubr.bf16.vlgmr.msra.gmra.mrb[20].mxu1 %v1299_v30 }
 0x81e   :  { %v1399_v19 = vpop.f32.mrb[20].mxu1 }
 0x81f   :  { %v1409_v32 = vmul.f32 %v1408_v60, %v1399_v19  ;;  %v2102_v36 = vpop.f32.mrb[21].mxu1 }
 0x820   :  { %v1402_v38 = vpop.f32.mrb[22].mxu1 }
 0x821   :  { %v1414_v39 = vadd.f32 %v1413_v61, %v1409_v32  ;;  %v2103_v40 = vpop.f32.mrb[23].mxu1 }
 0x823   :  { %v1418_v41 = vsel %vm1417_vm9, %v1414_v39, -1e+30 }
 0x824   :  { %v1419_v43 = vsel %vm151_vm1, %v1418_v41, -inf }
 0x825   :  { %1420 = vmax.xlane.f32.xlu0 %v1419_v43 }
 0x8b2   :  { %v1421_v44 = vpop.xlane.xlu0 %1420 }
 0x8b3   :  { %v1422_v45 = vsub.f32 %v1418_v41, %v1421_v44  ;;  %vm1433_vm10 = vcmp.ge.f32.partialorder %v1418_v41, %v1421_v44 }
 0x8b4   :  { %v1434_v35 = vsel %vm1433_vm10, %v1416_v34, 1073741824 }
 0x8b5   :  { %v1423_v46 = vmul.f32 1.442695, %v1422_v45  ;;  %v1435_v33 = vsel %vm151_vm1, %v1434_v35, 2147483647 }
 0x8b6   :  { %v1437_v42 = vshra.s32 %v1435_v33, 16  ;;  %v1436_v51 = vand.u32 65535, %v1435_v33 }
 0x8b7   :  { %2212 = vpow2.f32 %v1423_v46 }
 0x8b8   :  { %v1439_v47 = vcvt.s32.f32 %v1437_v42  ;;  %v1438_v53 = vcvt.s32.f32 %v1436_v51 }
 0x8ba   :  { %1440 = vmin.xlane.f32.xlu0 %v1439_v47 }
 0x8c1   :  { %v2213_v48 = vpop.eup %2212 }
 0x8c2   :  { %v1425_v49 = vsel %vm1417_vm9, %v2213_v48, 0.0 }
 0x8c3   :  { %v1426_v50 = vsel %vm151_vm1, %v1425_v49, 0.0 }
 0x8c4   :  { %1427 = vadd.xlane.f32.xlu1 %v1426_v50 }
 0x947   :  { %v1441_v52 = vpop.xlane.xlu0 %1440 }
 0x948   :  { %vm1442_vm11 = vcmp.eq.f32.partialorder %v1439_v47, %v1441_v52 }
 0x949   :  { %v1443_v54 = vsel %vm1442_vm11, %v1438_v53, inf }
 0x94a   :  { %1444 = vmin.xlane.f32.xlu1 %v1443_v54 }
 0x951   :  { %v1428_v55 = vpop.xlane.xlu1 %1427 }
 0x952   :  { %2214 = vrcp.f32 %v1428_v55 }
 0x95c   :  { %v2215_v56 = vpop.eup %2214 }
 0x95d   :  { %2227 = shalt.err (!%p2224_p4)
}
 0x95e   :  { %s2228_s16 = scalar_lea.hbm %s2821_s4, 32 }
 0x95f   :  { %p2229_p5 = scmp.ne.s32.totalorder %s2821_s4, %s2228_s16  ;;  %p2232_p6 = scmp.lt.u32.totalorder %s2228_s16, %s2821_s4 }
 0x961   :  { %p2234_p7 = pnand %p2232_p6, %p2229_p5 }
 0x963   :  { %2237 = shalt.err (!%p2234_p7)
}
 0x964   :  { %1471 = dma.vmem_to_hbm [thread:$0]  %s1469_s12, 32, %s2821_s4, [#allocation5]   ;;  %v1430_v57 = vmul.f32 %v2215_v56, %v1425_v49 }
 0x965   :  { %s2238_s23 = scalar_lea.vmem %s1459_s10, 32  ;;  %p2243_p9 = scmp.lt.s32.totalorder %s1459_s10, %s1459_s10 }
 0x966   :  { %1431 = vst [vmem:[#allocation2] sm:$0x3] %v1430_v57  ;;  %p2239_p8 = scmp.ne.s32.totalorder %s1459_s10, %s2238_s23  ;;  %p2244_p10 = scmp.lt.s32.totalorder %s2238_s23, %s2238_s23 }
 0x968   :  { %p2245_p11 = por %p2244_p10, %p2243_p9 }
 0x96a   :  { %p2246_p12 = pnand %p2245_p11, %p2239_p8 }
 0x96c   :  { %2249 = shalt.err (!%p2246_p12)
}
 0x96d   :  { %s2250_s26 = scalar_lea.hbm %s2820_s3, 32 }
 0x96e   :  { %p2251_p13 = scmp.ne.s32.totalorder %s2820_s3, %s2250_s26  ;;  %p2254_p0 = scmp.lt.u32.totalorder %s2250_s26, %s2820_s3 }
 0x970   :  { %p2256_p1 = pnand %p2254_p0, %p2251_p13 }
 0x972   :  { %2259 = shalt.err (!%p2256_p1)
}
 0x973   :  { %1461 = dma.vmem_to_hbm [thread:$0]  %s1459_s10, 32, %s2820_s3, [#allocation3]   ;;  %v1447_v58 = vcvt.f32.s32 %v1441_v52  ;;  %vm1450_vm12 = vcmask 1024  }
 0x975   :  { %v1448_v62 = vshll.u32 %v1447_v58, 16 }
 0x9d7   :  { %v1445_v59 = vpop.xlane.xlu1 %1444 }
 0x9d8   :  { %v1446_v3 = vcvt.f32.s32 %v1445_v59 }
 0x9da   :  { %v1449_v4 = vadd.s32 %v1448_v62, %v1446_v3 }
 0x9dc   :  { %1451 = vst.msk [vmem:[%s2822_s5] sm:$0x3] %vm1450_vm12, %v1449_v4 }
 0x9dd   :  { %2260 = dma.done.wait [#allocation3], 32  }
 0x9de   :  { %2261 = vsyncadd [#allocation3], 4294967264 }
 0x9df   :  { %2262 = dma.done.wait [#allocation5], 32  }
 0x9e0   :  { %2263 = vsyncadd [#allocation5], 4294967264 }
 0x9e1   :  { %1482 = vsyncpa [#allocation3], 1 }
 0x9e2   :  { %1483 = vsyncpa [#allocation5], 1 }

// kernel: forward.2
= control target key start
LH: loop header
LB: loop body
LE: loop exit
PB: predicated region body
PF: predicated region fallthrough
CT: control target
= control target key end

     0   :  { %8 = vsyncpa [#allocation3], 0  ;;  %s12221_s0 = inlined_call_operand.vmem [shape: bf16[3,200,128], index: 0, kind: input, shape index: {}]   ;;  %s12222_s1 = inlined_call_operand.hbm [shape: bf16[3,35,128,128], index: 1, kind: input, shape index: {}]   ;;  %s12223_s2 = inlined_call_operand.hbm [shape: f32[3,8,128], index: 2, kind: input, shape index: {}]   ;;  %s12224_s3 = inlined_call_operand.vmem [shape: f32[3,2,128], index: 3, kind: output, shape index: {}]  }
   0x1   :  { %10 = vsyncpa [#allocation3 + $0x1], 0 }
   0x2   :  { %11 = vsyncpa [#allocation5], 0 }
   0x3   :  { %13 = vsyncpa [#allocation5 + $0x1], 0  ;;  %s10403_s12 = smov 0   ;;  %s10405_s13 = smov 0  }
   0x4   :  { %s10407_s14 = smov 0   ;;  %s10409_s15 = smov 0  }
   0x5 LB: > { %s10422_s16 = sadd.s32 4294967295, %s10375_s15   ;;  %s10425_s17 = sadd.s32 1, %s10375_s15   ;;  %s10375_s15 = sphi %s10409_s15, %s12250_s15   ;;  %s10371_s14 = sphi %s10407_s14, %s12249_s14   ;;  %s10367_s13 = sphi %s10405_s13, %s12248_s13   ;;  %s10363_s12 = sphi %s10403_s12, %s12247_s12  }
   0x6   : > { %s49_s18 = ssub.s32 %s10375_s15, %s10425_s17  ;;  %s52_s19 = sadd.s32 1, %s10371_s14 }
   0x7   : > { %p50_p0 = scmp.eq.s32.totalorder %s49_s18, 0  ;;  %p59_p1 = scmp.ne.s32.totalorder %s10371_s14, %s10367_s13 }
   0x8   : > { %p60_p2 = scmp.eq.s32.totalorder %s10375_s15, 0  ;;  %p65_p3 = scmp.ne.s32.totalorder %s10367_s13, %s10363_s12 }
   0x9   : > { %s10435_s20 = scalar_select %p50_p0, %s10371_s14, %s52_s19  }
   0xa   : > { %p61_p4 = por %p60_p2, %p59_p1  ;;  %p66_p5 = scmp.eq.s32.totalorder %s10422_s16, 0 }
   0xb   : > { %p9939_p6 = scmp.lt.s32.totalorder %s10375_s15, 3  ;;  %s10444_s22 = sand.u32 1, %s10371_s14  }
   0xc   : > { %p10439_p7 = por %p66_p5, %p65_p3  ;;  %s9924_s23 = smul.u32 2240, %s10444_s22 }
   0xd   : > { %s9925_s24 = smul.u32 35840, %s10375_s15  ;;  %p10448_p8 = pnand %p9939_p6, %p61_p4 }
   0xe   : > { %s12234_s21 = scalar_select %p10439_p7, 1, 0 }
   0xf   : > { %s10455_s28 = scalar_lea.hbm %s12222_s1, %s9925_s24  ;;  %s153_s29 = scalar_lea.vmem [#allocation2], %s9924_s23 }
  0x10   : > { %s160_s30 = sshll.u32 %s153_s29, 4  ;;  %s150_s4 = scalar_lea.sflag [#allocation3], %s10444_s22  ;;  %s10457_s30 = int_to_ptr.vmem [resolvable:$true] %s160_s30 }
  0x11   : > { %s10277_s5 = scalar_lea.hbm %s10455_s28, 35840  ;;  %p10279_p11 = pneg %p10448_p8 }
  0x12   : > { %p10278_p10 = scmp.ne.s32.totalorder %s10455_s28, %s10277_s5  ;;  %s10282_s8 = scalar_lea.hbm %s12222_s1, 107520 }
  0x13   : > { %p10283_p0 = scmp.lt.u32.totalorder %s10455_s28, %s12222_s1  ;;  %p10284_p1 = scmp.lt.u32.totalorder %s10282_s8, %s10277_s5 }
  0x14   : > { %p10280_p12 = pnand %p10279_p11, %p10278_p10  ;;  %p10286_p3 = scmp.lt.u32.totalorder %s10277_s5, %s10455_s28 }
  0x15   : > { %p10285_p2 = por %p10284_p1, %p10283_p0 }
  0x16   : > { %p10281_p13 = pneg %p10280_p12 }
  0x17   : > { %p10287_p4 = por %p10286_p3, %p10285_p2 }
  0x19   : > { %p10288_p5 = pnand %p10287_p4, %p10281_p13 }
  0x1b   : > { %10291 = shalt.err (!%p10288_p5)
}
  0x1c   : > { %s10292_s11 = scalar_lea.vmem %s10457_s30, 35840  ;;  %s10377_s12 = smov [#allocation2]  }
  0x1d   : > { %p10293_p6 = scmp.ne.s32.totalorder %s10457_s30, %s10292_s11  ;;  %s10297_s18 = sshll.u32 %s10377_s12, 4  ;;  %s10298_s18 = int_to_ptr.vmem [resolvable:$false] %s10297_s18 }
  0x1e   : > { %s10299_s19 = scalar_lea.vmem %s10298_s18, 71680  ;;  %p10300_p9 = scmp.lt.s32.totalorder %s10457_s30, %s10298_s18 }
  0x1f   : > { %p10295_p10 = pnand %p10293_p6, %p10279_p11  ;;  %p10301_p0 = scmp.lt.s32.totalorder %s10299_s19, %s10292_s11 }
  0x21   : > { %p10296_p12 = pneg %p10295_p10  ;;  %p10302_p1 = por %p10301_p0, %p10300_p9 }
  0x23   : > { %p10303_p2 = pnand %p10302_p1, %p10296_p12 }
  0x25   : > { %10306 = shalt.err (!%p10303_p2)
}
  0x26   : > { %s10378_s23 = smov 64   ;;  %s10379_s24 = smov 4  }
  0x27   : > { %9935 = dma.hbm_to_vmem [thread:$0]  (!%p10448_p8), %s10455_s28, 35840, %s10457_s30, %s150_s4, %s10378_s23, %s10378_s23, %s10379_s24  }
  0x28   : > { %p186_p13 = scmp.lt.s32.totalorder %s10375_s15, 4  ;;  %s6648_s26 = sshll.u32 %s10444_s22, 3 }
  0x29   : > { %s6649_s27 = sshll.u32 %s10375_s15, 7  ;;  %p12236_p9 = scmp.ge.s32.totalorder %s10375_s15, 1 }
  0x2a   : > { %s10500_s7 = scalar_lea.hbm %s12223_s2, %s6649_s27  ;;  %s174_s8 = scalar_lea.vmem [#allocation4], %s6648_s26 }
  0x2b   : > { %p10493_p3 = pnand %p12236_p9, %p186_p13  ;;  %s181_s9 = sshll.u32 %s174_s8, 4  ;;  %s182_s9 = int_to_ptr.vmem [resolvable:$true] %s181_s9 }
  0x2c   : > { %s171_s28 = scalar_lea.sflag [#allocation5], %s10444_s22  ;;  %s10307_s30 = scalar_lea.hbm %s10500_s7, 128 }
  0x2d   : > { %s12237_s29 = scalar_select %p10493_p3, 1, 0 }
  0x2e   : > { %p10308_p4 = scmp.ne.s32.totalorder %s10500_s7, %s10307_s30  ;;  %s10312_s10 = scalar_lea.hbm %s12223_s2, 384 }
  0x2f   : > { %p10313_p10 = scmp.lt.u32.totalorder %s10500_s7, %s12223_s2  ;;  %p10314_p12 = scmp.lt.u32.totalorder %s10312_s10, %s10307_s30 }
  0x30   : > { %p10310_p5 = pnand %p10308_p4, %p10279_p11  ;;  %p10316_p1 = scmp.lt.u32.totalorder %s10307_s30, %s10500_s7 }
  0x31   : > { %p10315_p0 = por %p10314_p12, %p10313_p10 }
  0x32   : > { %p10311_p6 = pneg %p10310_p5 }
  0x33   : > { %p10317_p2 = por %p10316_p1, %p10315_p0 }
  0x35   : > { %p10318_p13 = pnand %p10317_p2, %p10311_p6 }
  0x37   : > { %10321 = shalt.err (!%p10318_p13)
}
  0x38   : > { %s10322_s22 = scalar_lea.vmem %s182_s9, 128  ;;  %s10380_s18 = smov [#allocation4]  }
  0x39   : > { %p10323_p9 = scmp.ne.s32.totalorder %s182_s9, %s10322_s22  ;;  %s10327_s19 = sshll.u32 %s10380_s18, 4  ;;  %s10328_s19 = int_to_ptr.vmem [resolvable:$false] %s10327_s19 }
  0x3a   : > { %s10329_s23 = scalar_lea.vmem %s10328_s19, 256  ;;  %p10330_p7 = scmp.lt.s32.totalorder %s182_s9, %s10328_s19 }
  0x3b   : > { %p10325_p4 = pnand %p10323_p9, %p10279_p11  ;;  %p10331_p3 = scmp.lt.s32.totalorder %s10329_s23, %s10322_s22 }
  0x3d   : > { %p10326_p5 = pneg %p10325_p4  ;;  %p10332_p10 = por %p10331_p3, %p10330_p7 }
  0x3f   : > { %p10333_p12 = pnand %p10332_p10, %p10326_p5 }
  0x41   : > { %10336 = shalt.err (!%p10333_p12)
}
  0x42   : > { %9938 = dma.hbm_to_vmem [thread:$0]  (!%p10448_p8), %s10500_s7, 128, %s182_s9, %s171_s28  }
  0x43   : > { %p12238_p6 = scmp.ne.s32.totalorder %s12237_s29, 0 }
  0x44   : > { %s192_s24 = sand.u32 (!%p12238_p6), 1, %s10367_s13   ;;  %p12239_p11 = scmp.ne.s32.totalorder (!%p12238_p6), %s12234_s21, 0 }
  0x45   : > { %190 = sbr.rel (%p12238_p6) target bundleno = 1918 (0x77e), region = 32  ;;  %s193_s27 = scalar_lea.sflag (!%p12238_p6), [#allocation3], %s192_s24 }
  0x46   : > { %s9926_s26 = smul.u32 (!%p12238_p6), 2240, %s192_s24 }
  0x48   : > { %s10525_s5 = scalar_lea.vmem (!%p12238_p6), [#allocation2], %s9926_s26 }
  0x4c   : > { %10354 = dma.done.wait (%p12239_p11), %s193_s27, 35840  }
  0x4d   : > { %10356 = vsyncadd (%p12239_p11), %s193_s27, 4294931456  ;;  %s6651_s6 = sshll.u32 %s192_s24, 3  ;;  %s202_s25 = scalar_lea.sflag [#allocation5], %s192_s24 }
  0x4e   : > { %s10531_s8 = scalar_lea.vmem [#allocation4], %s6651_s6 }
  0x4f   : > { %10358 = dma.done.wait (%p12239_p11), %s202_s25, 128  }
  0x50   : > { %10360 = vsyncadd (%p12239_p11), %s202_s25, 4294967168  ;;  %v12228_v0 = vmov 0.0   ;;  %vm10382_vm0 = vmmov 0   ;;  %p237_p7 = scmp.lt.s32.totalorder %s10422_s16, 2  ;;  %v9976_v1 = vld [vmem:[%s10525_s5] sm:$0xff]   ;;  %v9977_v2 = vld [vmem:[%s10525_s5 + $0x8] sm:$0xff]   ;;  %v549_v31 = vlaneseq }
  0x51   : > { %8001 = vmatprep.subr.bf16.mxu1 %v12228_v0  ;;  %8017 = vmatprep.mubr.msk.bf16.mxu1 %vm10382_vm0, %v12228_v0  ;;  %v9978_v3 = vld [vmem:[%s10525_s5 + $0x10] sm:$0xff]   ;;  %v9979_v4 = vld [vmem:[%s10525_s5 + $0x18] sm:$0xff]   ;;  %v9980_v5 = vld [vmem:[%s10525_s5 + $0x20] sm:$0xff]   ;;  %vm739_vm5 = vcmask 1046528   ;;  %vm1108_vm14 = vcmask 1045504   ;;  %vm1540_vm15 = vcmask 1044480  }
  0x52   : > { %8609 = vmatprep.subr.bf16.mxu0 %v12228_v0  ;;  %8625 = vmatprep.mubr.msk.bf16.mxu0 %vm10382_vm0, %v12228_v0  ;;  %s12252_s16 = smov (!%p237_p7, %s10422_s16), 2  ;;  %v9981_v6 = vld [vmem:[%s10525_s5 + $0x28] sm:$0xff]   ;;  %v9982_v7 = vld [vmem:[%s10525_s5 + $0x30] sm:$0xff]   ;;  %v9983_v8 = vld [vmem:[%s10525_s5 + $0x38] sm:$0xff]   ;;  %v10617_v32 = vshrl.u32 %v549_v31, 7 }
  0x53   : > { %8002 = vmatpush3.bf16.msra.mxu1 %v9976_v1  ;;  %s9927_s21 = smul.u32 100, %s12252_s16  ;;  %v9995_v9 = vld [vmem:[%s10525_s5 + $0x80] sm:$0xff]   ;;  %v9996_v11 = vld [vmem:[%s10525_s5 + $0x88] sm:$0xff]   ;;  %v9998_v12 = vld [vmem:[%s10525_s5 + $0x90] sm:$0xff]   ;;  %s6653_s28 = sshll.u32 %s12252_s16, 1 }
  0x54   : > { %8003 = vmatprep.subr.bf16.mxu1 %v12228_v0  ;;  %v9999_v14 = vld [vmem:[%s10525_s5 + $0x98] sm:$0xff]   ;;  %v10000_v25 = vld [vmem:[%s10525_s5 + $0xa0] sm:$0xff]   ;;  %v10001_v26 = vld [vmem:[%s10525_s5 + $0xa8] sm:$0xff]   ;;  %v551_v33 = vsub.s32 0, %v10617_v32  ;;  %v580_v35 = vsub.s32 1, %v10617_v32  ;;  %s245_s4 = scalar_lea.vmem %s12224_s3, %s6653_s28 }
  0x55   : > { %s10556_s9 = scalar_lea.vmem %s12221_s0, %s9927_s21  ;;  %v10003_v28 = vld [vmem:[%s10525_s5 + $0xb0] sm:$0xff]   ;;  %v10004_v29 = vld [vmem:[%s10525_s5 + $0xb8] sm:$0xff]   ;;  %v10614_v30 = vld [vmem:[%s10525_s5 + $0x40] sm:$0xff]  }
  0x56   : > { %v9984_v10 = vld [vmem:[%s10556_s9] sm:$0xff]   ;;  %v9985_v13 = vld [vmem:[%s10556_s9 + $0x8] sm:$0xff]   ;;  %v9986_v15 = vld [vmem:[%s10556_s9 + $0x10] sm:$0xff]  }
  0x57   : > { %8004 = vmatpush3.bf16.msra.mxu1 %v9977_v2  ;;  %v9987_v16 = vld [vmem:[%s10556_s9 + $0x18] sm:$0xff]   ;;  %v9988_v17 = vld [vmem:[%s10556_s9 + $0x20] sm:$0xff]   ;;  %v9989_v18 = vld [vmem:[%s10556_s9 + $0x28] sm:$0xff]  }
  0x58   : > { %8005 = vmatprep.subr.bf16.mxu1 %v12228_v0  ;;  %v9990_v19 = vld [vmem:[%s10556_s9 + $0x30] sm:$0xff]   ;;  %v9991_v20 = vld [vmem:[%s10556_s9 + $0x38] sm:$0xff]   ;;  %v9992_v21 = vld [vmem:[%s10556_s9 + $0x40] sm:$0xff]  }
  0x59   : > { %v9993_v22 = vld [vmem:[%s10556_s9 + $0x48] sm:$0xff]   ;;  %v9994_v23 = vld [vmem:[%s10556_s9 + $0x50] sm:$0xff]   ;;  %v9997_v24 = vld [vmem:[%s10556_s9 + $0x58] sm:$0xff]  }
  0x5a   : > { %v10002_v27 = vld [vmem:[%s10556_s9 + $0x60] ss:$0 sps:$4 sm:$0xff]  }
  0x5b   : > { %8006 = vmatpush3.bf16.msra.mxu1 %v9978_v3  ;;  %v247_v34 = vld [vmem:[%s10531_s8] sm:$0xff] }
  0x5c   : > { %8007 = vmatprep.subr.bf16.mxu1 %v12228_v0  ;;  %v10622_v36 = vrot.slane %v247_v34, %v551_v33  ;;  %v10624_v37 = vrot.slane %v247_v34, %v580_v35 }
  0x5f   : > { %8008 = vmatpush3.bf16.msra.mxu1 %v9979_v4 }
  0x60   : > { %8009 = vmatprep.subr.bf16.mxu1 %v12228_v0 }
  0x63   : > { %8010 = vmatpush3.bf16.msra.mxu1 %v9980_v5 }
  0x64   : > { %8011 = vmatprep.subr.bf16.mxu1 %v12228_v0 }
  0x67   : > { %8012 = vmatpush3.bf16.msra.mxu1 %v9981_v6 }
  0x68   : > { %8013 = vmatprep.subr.bf16.mxu1 %v12228_v0 }
  0x6b   : > { %8014 = vmatpush3.bf16.msra.mxu1 %v9982_v7 }
  0x6c   : > { %8015 = vmatprep.subr.bf16.mxu1 %v12228_v0 }
  0x6f   : > { %8016 = vmatpush3.bf16.msra.mxu1 %v9983_v8 }
  0x70   : > { %8069 = vmatprep.subr.bf16.mxu1 %v9995_v9 }
  0x72   : > { %8018 = vmatmul.mubr.bf16.vlgmr.msra.gmra.mrb[0].mxu1 %v9984_v10 }
  0x73   : > { %8021 = vmatprep.mubr.msk.bf16.mxu1 %vm10382_vm0, %v12228_v0  ;;  %8070 = vmatpush3.bf16.msra.mxu1 %v9995_v9 }
  0x74   : > { %8071 = vmatprep.subr.bf16.mxu1 %v9996_v11 }
  0x77   : > { %8072 = vmatpush3.bf16.msra.mxu1 %v9996_v11 }
  0x78   : > { %8073 = vmatprep.subr.bf16.mxu1 %v9998_v12 }
  0x7a   : > { %8022 = vmatmul.mubr.bf16.gmra.mrb[4].mxu1 %v9985_v13 }
  0x7b   : > { %8025 = vmatprep.mubr.msk.bf16.mxu1 %vm10382_vm0, %v12228_v0  ;;  %8074 = vmatpush3.bf16.msra.mxu1 %v9998_v12 }
  0x7c   : > { %8075 = vmatprep.subr.bf16.mxu1 %v9999_v14 }
  0x7f   : > { %8076 = vmatpush3.bf16.msra.mxu1 %v9999_v14 }
  0x80   : > { %8077 = vmatprep.subr.bf16.mxu1 %v10000_v25 }
  0x82   : > { %8026 = vmatmul.mubr.bf16.gmra.mrb[8].mxu1 %v9986_v15 }
  0x83   : > { %8029 = vmatprep.mubr.msk.bf16.mxu1 %vm10382_vm0, %v12228_v0  ;;  %8078 = vmatpush3.bf16.msra.mxu1 %v10000_v25 }
  0x84   : > { %8079 = vmatprep.subr.bf16.mxu1 %v10001_v26 }
  0x87   : > { %8080 = vmatpush3.bf16.msra.mxu1 %v10001_v26 }
  0x88   : > { %8081 = vmatprep.subr.bf16.mxu1 %v10003_v28 }
  0x8a   : > { %8030 = vmatmul.mubr.bf16.gmra.mrb[12].mxu1 %v9987_v16 }
  0x8b   : > { %8033 = vmatprep.mubr.msk.bf16.mxu1 %vm10382_vm0, %v12228_v0  ;;  %8082 = vmatpush3.bf16.msra.mxu1 %v10003_v28 }
  0x8c   : > { %8083 = vmatprep.subr.bf16.mxu1 %v10004_v29 }
  0x8f   : > { %8084 = vmatpush3.bf16.msra.mxu1 %v10004_v29 }
  0x90   : > { %8105 = vmatprep.subr.bf16.mxu1 %v10614_v30 }
  0x92   : > { %8034 = vmatmul.mubr.bf16.gmra.mrb[16].mxu1 %v9988_v17 }
  0x93   : > { %8037 = vmatprep.mubr.msk.bf16.mxu1 %vm10382_vm0, %v12228_v0 }
  0x9a   : > { %8038 = vmatmul.mubr.bf16.gmra.mrb[20].mxu1 %v9989_v18 }
  0x9b   : > { %8041 = vmatprep.mubr.msk.bf16.mxu1 %vm10382_vm0, %v12228_v0 }
  0xa2   : > { %8042 = vmatmul.mubr.bf16.gmra.mrb[24].mxu1 %v9990_v19 }
  0xa3   : > { %8045 = vmatprep.mubr.msk.bf16.mxu1 %vm10382_vm0, %v12228_v0 }
  0xaa   : > { %8046 = vmatmul.mubr.bf16.gmra.mrb[28].mxu1 %v9991_v20 }
  0xab   : > { %8049 = vmatprep.mubr.msk.bf16.mxu1 %vm10382_vm0, %v12228_v0 }
  0xb2   : > { %8050 = vmatmul.mubr.bf16.gmra.mrb[32].mxu1 %v9992_v21 }
  0xb3   : > { %8053 = vmatprep.mubr.msk.bf16.mxu1 %vm10382_vm0, %v12228_v0 }
  0xba   : > { %8054 = vmatmul.mubr.bf16.gmra.mrb[36].mxu1 %v9993_v22 }
  0xbb   : > { %8057 = vmatprep.mubr.msk.bf16.mxu1 %vm10382_vm0, %v12228_v0 }
  0xc2   : > { %8058 = vmatmul.mubr.bf16.gmra.mrb[40].mxu1 %v9994_v23 }
  0xc3   : > { %8061 = vmatprep.mubr.msk.bf16.mxu1 %vm10382_vm0, %v12228_v0 }
  0xca   : > { %8062 = vmatmul.mubr.bf16.gmra.mrb[44].mxu1 %v9997_v24 }
  0xcb   : > { %8065 = vmatprep.mubr.msk.bf16.mxu1 %vm10382_vm0, %v12228_v0 }
  0xd2   : > { %8066 = vmatmul.mubr.bf16.gmra.mrb[48].mxu1 %v10002_v27  ;;  %v10006_v27 = vld [vmem:[%s10525_s5 + $0x48] sm:$0xff]  }
 0x145   : > { %v447_v38 = vpop.f32.mrb[0].mxu1 }
 0x146   : > { %v553_v39 = vmul.f32 %v10622_v36, %v447_v38  ;;  %v8019_v40 = vpop.f32.mrb[1].mxu1 }
 0x147   : > { %v450_v41 = vpop.f32.mrb[2].mxu1 }
 0x148   : > { %v582_v42 = vadd.f32 %v10624_v37, %v553_v39  ;;  %v554_v43 = vmul.f32 %v10622_v36, %v450_v41  ;;  %v8020_v44 = vpop.f32.mrb[3].mxu1  ;;  %v10007_v39 = vld [vmem:[%s10525_s5 + $0x50] sm:$0xff]  }
 0x14a   : > { %v632_v45 = vmul.f32 0.1, %v582_v42  ;;  %v583_v46 = vadd.f32 %v10624_v37, %v554_v43  ;;  %vm607_vm1 = vcmp.gt.f32.partialorder %v582_v42, 0.0 }
 0x14c   : > { %vm608_vm2 = vcmp.gt.f32.partialorder %v583_v46, 0.0  ;;  %v633_v47 = vmul.f32 0.1, %v583_v46  ;;  %v657_v49 = vsel %vm607_vm1, %v582_v42, %v632_v45  ;;  %vm1770_vm1 = vcmask 1043456  }
 0x14d   : > { %v455_v48 = vpop.f32.mrb[4].mxu1 }
 0x14e   : > { %v658_v50 = vsel %vm608_vm2, %v583_v46, %v633_v47  ;;  %v555_v51 = vmul.f32 %v10622_v36, %v455_v48  ;;  %v8023_v52 = vpop.f32.mrb[5].mxu1  ;;  %v10008_v47 = vld [vmem:[%s10525_s5 + $0x58] sm:$0xff]   ;;  %vm2202_vm2 = vcmask 1042432  }
 0x14f   : > { %v10631_v53 = vpack.c.bf16 %v658_v50, %v657_v49  ;;  %v458_v54 = vpop.f32.mrb[6].mxu1 }
 0x150   : > { %v584_v55 = vadd.f32 %v10624_v37, %v555_v51  ;;  %v556_v56 = vmul.f32 %v10622_v36, %v458_v54  ;;  %v8024_v57 = vpop.f32.mrb[7].mxu1 }
 0x151   : > { %v740_v8 = vrot.slane %v10631_v53, 1 }
 0x152   : > { %v634_v58 = vmul.f32 0.1, %v584_v55  ;;  %v585_v59 = vadd.f32 %v10624_v37, %v556_v56  ;;  %vm609_vm3 = vcmp.gt.f32.partialorder %v584_v55, 0.0  ;;  %v10009_v56 = vld [vmem:[%s10525_s5 + $0x60] sm:$0xff]  }
 0x154   : > { %vm610_vm4 = vcmp.gt.f32.partialorder %v585_v59, 0.0  ;;  %v635_v60 = vmul.f32 0.1, %v585_v59  ;;  %v659_v62 = vsel %vm609_vm3, %v584_v55, %v634_v58 }
 0x155   : > { %v463_v61 = vpop.f32.mrb[8].mxu1 }
 0x156   : > { %v660_v63 = vsel %vm610_vm4, %v585_v59, %v635_v60  ;;  %v557_v1 = vmul.f32 %v10622_v36, %v463_v61  ;;  %v8027_v2 = vpop.f32.mrb[9].mxu1 }
 0x157   : > { %v10637_v3 = vpack.c.bf16 %v660_v63, %v659_v62  ;;  %v466_v4 = vpop.f32.mrb[10].mxu1  ;;  %v10010_v2 = vld [vmem:[%s10525_s5 + $0x68] sm:$0xff]  }
 0x158   : > { %v586_v5 = vadd.f32 %v10624_v37, %v557_v1  ;;  %v558_v6 = vmul.f32 %v10622_v36, %v466_v4  ;;  %v8028_v7 = vpop.f32.mrb[11].mxu1 }
 0x159   : > { %v741_v9 = vrot.slane %v10637_v3, 1 }
 0x15a   : > { %v636_v10 = vmul.f32 0.1, %v586_v5  ;;  %v587_v11 = vadd.f32 %v10624_v37, %v558_v6  ;;  %vm611_vm6 = vcmp.gt.f32.partialorder %v586_v5, 0.0 }
 0x15b   : > { %v742_v12 = vsel %vm739_vm5, %v740_v8, %v741_v9 }
 0x15c   : > { %vm612_vm7 = vcmp.gt.f32.partialorder %v587_v11, 0.0  ;;  %v637_v13 = vmul.f32 0.1, %v587_v11  ;;  %8085 = vmatprep.mubr.bf16.mxu1 %v742_v12  ;;  %v661_v15 = vsel %vm611_vm6, %v586_v5, %v636_v10  ;;  %vm2432_vm6 = vcmask 1041408  }
 0x15d   : > { %v471_v14 = vpop.f32.mrb[12].mxu1 }
 0x15e   : > { %v662_v16 = vsel %vm612_vm7, %v587_v11, %v637_v13  ;;  %v559_v17 = vmul.f32 %v10622_v36, %v471_v14  ;;  %v8031_v18 = vpop.f32.mrb[13].mxu1  ;;  %v10011_v11 = vld [vmem:[%s10525_s5 + $0x70] sm:$0xff]  }
 0x15f   : > { %v10646_v19 = vpack.c.bf16 %v662_v16, %v661_v15  ;;  %v474_v20 = vpop.f32.mrb[14].mxu1 }
 0x160   : > { %v588_v21 = vadd.f32 %v10624_v37, %v559_v17  ;;  %v560_v22 = vmul.f32 %v10622_v36, %v474_v20  ;;  %v8032_v23 = vpop.f32.mrb[15].mxu1 }
 0x161   : > { %v743_v24 = vrot.slane %v10646_v19, 1 }
 0x162   : > { %v638_v25 = vmul.f32 0.1, %v588_v21  ;;  %v589_v26 = vadd.f32 %v10624_v37, %v560_v22  ;;  %vm613_vm8 = vcmp.gt.f32.partialorder %v588_v21, 0.0 }
 0x163   : > { %v744_v28 = vsel %vm739_vm5, %v741_v9, %v743_v24 }
 0x164   : > { %vm614_vm9 = vcmp.gt.f32.partialorder %v589_v26, 0.0  ;;  %v639_v29 = vmul.f32 0.1, %v589_v26  ;;  %8086 = vmatmul.mubr.bf16.vlgmr.msra.gmra.mrb[52].mxu1 %v744_v28  ;;  %v663_v33 = vsel %vm613_vm8, %v588_v21, %v638_v25  ;;  %v10012_v28 = vld [vmem:[%s10525_s5 + $0x78] sm:$0xff]  }
 0x165   : > { %v479_v31 = vpop.f32.mrb[16].mxu1  ;;  %8106 = vmatpush3.bf16.msra.mxu1 %v10614_v30 }
 0x166   : > { %v664_v34 = vsel %vm614_vm9, %v589_v26, %v639_v29  ;;  %v561_v35 = vmul.f32 %v10622_v36, %v479_v31  ;;  %v8035_v38 = vpop.f32.mrb[17].mxu1  ;;  %8107 = vmatprep.subr.bf16.mxu1 %v10006_v27 }
 0x167   : > { %v10657_v40 = vpack.c.bf16 %v664_v34, %v663_v33  ;;  %v482_v41 = vpop.f32.mrb[18].mxu1 }
 0x168   : > { %v590_v42 = vadd.f32 %v10624_v37, %v561_v35  ;;  %v562_v43 = vmul.f32 %v10622_v36, %v482_v41  ;;  %v8036_v44 = vpop.f32.mrb[19].mxu1 }
 0x169   : > { %v745_v45 = vrot.slane %v10657_v40, 1  ;;  %8108 = vmatpush3.bf16.msra.mxu1 %v10006_v27 }
 0x16a   : > { %v640_v30 = vmul.f32 0.1, %v590_v42  ;;  %v591_v46 = vadd.f32 %v10624_v37, %v562_v43  ;;  %8109 = vmatprep.subr.bf16.mxu1 %v10007_v39  ;;  %vm615_vm10 = vcmp.gt.f32.partialorder %v590_v42, 0.0 }
 0x16b   : > { %v746_v48 = vsel %vm739_vm5, %v743_v24, %v745_v45 }
 0x16c   : > { %vm616_vm11 = vcmp.gt.f32.partialorder %v591_v46, 0.0  ;;  %v641_v49 = vmul.f32 0.1, %v591_v46  ;;  %8089 = vmatprep.mubr.bf16.mxu1 %v746_v48  ;;  %v665_v51 = vsel %vm615_vm10, %v590_v42, %v640_v30 }
 0x16d   : > { %v487_v50 = vpop.f32.mrb[20].mxu1  ;;  %8110 = vmatpush3.bf16.msra.mxu1 %v10007_v39 }
 0x16e   : > { %v666_v52 = vsel %vm616_vm11, %v591_v46, %v641_v49  ;;  %v563_v54 = vmul.f32 %v10622_v36, %v487_v50  ;;  %v8039_v55 = vpop.f32.mrb[21].mxu1  ;;  %8111 = vmatprep.subr.bf16.mxu1 %v10008_v47 }
 0x16f   : > { %v10667_v57 = vpack.c.bf16 %v666_v52, %v665_v51  ;;  %v490_v58 = vpop.f32.mrb[22].mxu1 }
 0x170   : > { %v592_v59 = vadd.f32 %v10624_v37, %v563_v54  ;;  %v564_v60 = vmul.f32 %v10622_v36, %v490_v58  ;;  %v8040_v61 = vpop.f32.mrb[23].mxu1 }
 0x171   : > { %v747_v62 = vrot.slane %v10667_v57, 1  ;;  %8112 = vmatpush3.bf16.msra.mxu1 %v10008_v47  ;;  %v12233_v14 = vrot.slane %v10667_v57, 2  ;;  %v12231_v15 = vrot.slane %v10667_v57, 3  ;;  %v12230_v20 = vrot.slane %v10667_v57, 4  ;;  %v10718_v47 = vld [vmem:[%s10525_s5 + $0xc0] sm:$0xff]  }
 0x172   : > { %v642_v63 = vmul.f32 0.1, %v592_v59  ;;  %v593_v1 = vadd.f32 %v10624_v37, %v564_v60  ;;  %8113 = vmatprep.subr.bf16.mxu1 %v10009_v56  ;;  %vm617_vm12 = vcmp.gt.f32.partialorder %v592_v59, 0.0  ;;  %v12227_v21 = vrot.slane %v10667_v57, 5 }
 0x173   : > { %v748_v4 = vsel %vm739_vm5, %v745_v45, %v747_v62  ;;  %v12226_v42 = vrot.slane %v10667_v57, 6 }
 0x174   : > { %vm618_vm13 = vcmp.gt.f32.partialorder %v593_v1, 0.0  ;;  %v643_v5 = vmul.f32 0.1, %v593_v1  ;;  %8090 = vmatmul.mubr.bf16.gmra.mrb[56].mxu1 %v748_v4  ;;  %v667_v7 = vsel %vm617_vm12, %v592_v59, %v642_v63 }
 0x175   : > { %v495_v6 = vpop.f32.mrb[24].mxu1  ;;  %8114 = vmatpush3.bf16.msra.mxu1 %v10009_v56 }
 0x176   : > { %v668_v8 = vsel %vm618_vm13, %v593_v1, %v643_v5  ;;  %v565_v9 = vmul.f32 %v10622_v36, %v495_v6  ;;  %v8043_v10 = vpop.f32.mrb[25].mxu1  ;;  %8115 = vmatprep.subr.bf16.mxu1 %v10010_v2 }
 0x177   : > { %v10677_v12 = vpack.c.bf16 %v668_v8, %v667_v7  ;;  %v498_v13 = vpop.f32.mrb[26].mxu1 }
 0x178   : > { %v594_v16 = vadd.f32 %v10624_v37, %v565_v9  ;;  %v566_v17 = vmul.f32 %v10622_v36, %v498_v13  ;;  %v8044_v18 = vpop.f32.mrb[27].mxu1 }
 0x179   : > { %v749_v22 = vrot.slane %v10677_v12, 1  ;;  %8116 = vmatpush3.bf16.msra.mxu1 %v10010_v2  ;;  %v1118_v23 = vrot.slane %v10677_v12, 2  ;;  %v1548_v24 = vrot.slane %v10677_v12, 3  ;;  %v1778_v25 = vrot.slane %v10677_v12, 4 }
 0x17a   : > { %vm619_vm3 = vcmp.gt.f32.partialorder %v594_v16, 0.0  ;;  %v644_v26 = vmul.f32 0.1, %v594_v16  ;;  %v595_v27 = vadd.f32 %v10624_v37, %v566_v17  ;;  %8117 = vmatprep.subr.bf16.mxu1 %v10011_v11  ;;  %v2208_v29 = vrot.slane %v10677_v12, 5 }
 0x17b   : > { %v750_v31 = vsel %vm739_vm5, %v747_v62, %v749_v22  ;;  %v10696_v33 = vsel %vm1108_vm14, %v12233_v14, %v1118_v23  ;;  %v10701_v34 = vsel %vm1540_vm15, %v12231_v15, %v1548_v24  ;;  %v10706_v35 = vsel %vm1770_vm1, %v12230_v20, %v1778_v25 }
 0x17c   : > { %vm620_vm4 = vcmp.gt.f32.partialorder %v595_v27, 0.0  ;;  %v645_v38 = vmul.f32 0.1, %v595_v27  ;;  %8093 = vmatprep.mubr.bf16.mxu1 %v750_v31  ;;  %v10711_v39 = vsel %vm2202_vm2, %v12227_v21, %v2208_v29  ;;  %v2438_v43 = vrot.slane %v10677_v12, 6 }
 0x17d   : > { %v503_v41 = vpop.f32.mrb[28].mxu1  ;;  %8118 = vmatpush3.bf16.msra.mxu1 %v10011_v11  ;;  %v669_v44 = vsel %vm619_vm3, %v594_v16, %v644_v26 }
 0x17e   : > { %v670_v45 = vsel %vm620_vm4, %v595_v27, %v645_v38  ;;  %v567_v30 = vmul.f32 %v10622_v36, %v503_v41  ;;  %v8047_v46 = vpop.f32.mrb[29].mxu1  ;;  %8119 = vmatprep.subr.bf16.mxu1 %v10012_v28  ;;  %v10725_v50 = vsel %vm2432_vm6, %v12226_v42, %v2438_v43 }
 0x17f   : > { %v10720_v48 = vpack.c.bf16 %v670_v45, %v669_v44  ;;  %v506_v49 = vpop.f32.mrb[30].mxu1 }
 0x180   : > { %v596_v51 = vadd.f32 %v10624_v37, %v567_v30  ;;  %v568_v52 = vmul.f32 %v10622_v36, %v506_v49  ;;  %v8048_v54 = vpop.f32.mrb[31].mxu1 }
 0x181   : > { %v751_v55 = vrot.slane %v10720_v48, 1  ;;  %8120 = vmatpush3.bf16.msra.mxu1 %v10012_v28  ;;  %v1120_v56 = vrot.slane %v10720_v48, 2  ;;  %v1550_v58 = vrot.slane %v10720_v48, 3  ;;  %v1780_v59 = vrot.slane %v10720_v48, 4 }
 0x182   : > { %vm621_vm7 = vcmp.gt.f32.partialorder %v596_v51, 0.0  ;;  %v646_v60 = vmul.f32 0.1, %v596_v51  ;;  %v597_v61 = vadd.f32 %v10624_v37, %v568_v52  ;;  %8141 = vmatprep.subr.bf16.mxu1 %v10718_v47  ;;  %v2210_v62 = vrot.slane %v10720_v48, 5 }
 0x183   : > { %v752_v63 = vsel %vm739_vm5, %v749_v22, %v751_v55  ;;  %v10738_v1 = vsel %vm1108_vm14, %v1118_v23, %v1120_v56  ;;  %v10741_v2 = vsel %vm1540_vm15, %v1548_v24, %v1550_v58  ;;  %v10744_v4 = vsel %vm1770_vm1, %v1778_v25, %v1780_v59 }
 0x184   : > { %vm622_vm8 = vcmp.gt.f32.partialorder %v597_v61, 0.0  ;;  %v647_v5 = vmul.f32 0.1, %v597_v61  ;;  %8094 = vmatmul.mubr.bf16.gmra.mrb[60].mxu1 %v752_v63  ;;  %v10747_v6 = vsel %vm2202_vm2, %v2208_v29, %v2210_v62  ;;  %v2440_v8 = vrot.slane %v10720_v48, 6 }
 0x185   : > { %v511_v7 = vpop.f32.mrb[32].mxu1  ;;  %v671_v9 = vsel %vm621_vm7, %v596_v51, %v646_v60 }
 0x186   : > { %v672_v10 = vsel %vm622_vm8, %v597_v61, %v647_v5  ;;  %v569_v11 = vmul.f32 %v10622_v36, %v511_v7  ;;  %v8051_v13 = vpop.f32.mrb[33].mxu1  ;;  %v10754_v18 = vsel %vm2432_vm6, %v2438_v43, %v2440_v8 }
 0x187   : > { %v10751_v16 = vpack.c.bf16 %v672_v10, %v671_v9  ;;  %v514_v17 = vpop.f32.mrb[34].mxu1 }
 0x188   : > { %v598_v22 = vadd.f32 %v10624_v37, %v569_v11  ;;  %v570_v23 = vmul.f32 %v10622_v36, %v514_v17  ;;  %v8052_v24 = vpop.f32.mrb[35].mxu1 }
 0x189   : > { %v753_v25 = vrot.slane %v10751_v16, 1  ;;  %v1122_v26 = vrot.slane %v10751_v16, 2  ;;  %v1552_v27 = vrot.slane %v10751_v16, 3  ;;  %v1782_v28 = vrot.slane %v10751_v16, 4 }
 0x18a   : > { %vm623_vm9 = vcmp.gt.f32.partialorder %v598_v22, 0.0  ;;  %v648_v29 = vmul.f32 0.1, %v598_v22  ;;  %v599_v31 = vadd.f32 %v10624_v37, %v570_v23  ;;  %v2212_v38 = vrot.slane %v10751_v16, 5 }
 0x18b   : > { %v754_v41 = vsel %vm739_vm5, %v751_v55, %v753_v25  ;;  %v10766_v43 = vsel %vm1108_vm14, %v1120_v56, %v1122_v26  ;;  %v10769_v44 = vsel %vm1540_vm15, %v1550_v58, %v1552_v27  ;;  %v10772_v45 = vsel %vm1770_vm1, %v1780_v59, %v1782_v28 }
 0x18c   : > { %vm624_vm10 = vcmp.gt.f32.partialorder %v599_v31, 0.0  ;;  %v649_v30 = vmul.f32 0.1, %v599_v31  ;;  %8097 = vmatprep.mubr.bf16.mxu1 %v754_v41  ;;  %v10775_v46 = vsel %vm2202_vm2, %v2210_v62, %v2212_v38  ;;  %v2442_v51 = vrot.slane %v10751_v16, 6 }
 0x18d   : > { %v519_v49 = vpop.f32.mrb[36].mxu1  ;;  %v673_v52 = vsel %vm623_vm9, %v598_v22, %v648_v29 }
 0x18e   : > { %v674_v54 = vsel %vm624_vm10, %v599_v31, %v649_v30  ;;  %v571_v55 = vmul.f32 %v10622_v36, %v519_v49  ;;  %v8055_v56 = vpop.f32.mrb[37].mxu1  ;;  %v10782_v59 = vsel %vm2432_vm6, %v2440_v8, %v2442_v51 }
 0x18f   : > { %v10779_v60 = vpack.c.bf16 %v674_v54, %v673_v52  ;;  %v522_v58 = vpop.f32.mrb[38].mxu1 }
 0x190   : > { %v600_v61 = vadd.f32 %v10624_v37, %v571_v55  ;;  %v572_v63 = vmul.f32 %v10622_v36, %v522_v58  ;;  %v8056_v62 = vpop.f32.mrb[39].mxu1 }
 0x191   : > { %v755_v5 = vrot.slane %v10779_v60, 1  ;;  %v1124_v7 = vrot.slane %v10779_v60, 2  ;;  %v1554_v9 = vrot.slane %v10779_v60, 3  ;;  %v1784_v10 = vrot.slane %v10779_v60, 4 }
 0x192   : > { %vm625_vm11 = vcmp.gt.f32.partialorder %v600_v61, 0.0  ;;  %v650_v11 = vmul.f32 0.1, %v600_v61  ;;  %v601_v13 = vadd.f32 %v10624_v37, %v572_v63  ;;  %v2214_v8 = vrot.slane %v10779_v60, 5 }
 0x193   : > { %v756_v17 = vsel %vm739_vm5, %v753_v25, %v755_v5  ;;  %v10794_v22 = vsel %vm1108_vm14, %v1122_v26, %v1124_v7  ;;  %v10797_v23 = vsel %vm1540_vm15, %v1552_v27, %v1554_v9  ;;  %v10800_v24 = vsel %vm1770_vm1, %v1782_v28, %v1784_v10 }
 0x194   : > { %vm626_vm12 = vcmp.gt.f32.partialorder %v601_v13, 0.0  ;;  %v651_v29 = vmul.f32 0.1, %v601_v13  ;;  %8098 = vmatmul.mubr.bf16.gmra.mrb[64].mxu1 %v756_v17  ;;  %v10803_v31 = vsel %vm2202_vm2, %v2212_v38, %v2214_v8  ;;  %v2444_v30 = vrot.slane %v10779_v60, 6 }
 0x195   : > { %v527_v41 = vpop.f32.mrb[40].mxu1  ;;  %v675_v49 = vsel %vm625_vm11, %v600_v61, %v650_v11 }
 0x196   : > { %v676_v25 = vsel %vm626_vm12, %v601_v13, %v651_v29  ;;  %v573_v26 = vmul.f32 %v10622_v36, %v527_v41  ;;  %v8059_v52 = vpop.f32.mrb[41].mxu1  ;;  %v10810_v28 = vsel %vm2432_vm6, %v2442_v51, %v2444_v30 }
 0x197   : > { %v10807_v54 = vpack.c.bf16 %v676_v25, %v675_v49  ;;  %v530_v27 = vpop.f32.mrb[42].mxu1 }
 0x198   : > { %v602_v55 = vadd.f32 %v10624_v37, %v573_v26  ;;  %v574_v56 = vmul.f32 %v10622_v36, %v530_v27  ;;  %v8060_v38 = vpop.f32.mrb[43].mxu1 }
 0x199   : > { %v757_v58 = vrot.slane %v10807_v54, 1  ;;  %v10816_v63 = vrot.slane %v10807_v54, 2  ;;  %v1556_v61 = vrot.slane %v10807_v54, 3  ;;  %v1786_v62 = vrot.slane %v10807_v54, 4 }
 0x19a   : > { %vm627_vm13 = vcmp.gt.f32.partialorder %v602_v55, 0.0  ;;  %v652_v11 = vmul.f32 0.1, %v602_v55  ;;  %v603_v13 = vadd.f32 %v10624_v37, %v574_v56  ;;  %v2216_v51 = vrot.slane %v10807_v54, 5 }
 0x19b   : > { %v758_v17 = vsel %vm739_vm5, %v755_v5, %v757_v58  ;;  %v10825_v29 = vsel %vm1108_vm14, %v1124_v7, %v10816_v63  ;;  %v10828_v41 = vsel %vm1540_vm15, %v1554_v9, %v1556_v61  ;;  %v10831_v49 = vsel %vm1770_vm1, %v1784_v10, %v1786_v62 }
 0x19c   : > { %v677_v25 = vsel %vm627_vm13, %v602_v55, %v652_v11  ;;  %vm628_vm3 = vcmp.gt.f32.partialorder %v603_v13, 0.0  ;;  %v653_v26 = vmul.f32 0.1, %v603_v13  ;;  %8101 = vmatprep.mubr.bf16.mxu1 %v758_v17  ;;  %v10834_v52 = vsel %vm2202_vm2, %v2214_v8, %v2216_v51 }
 0x19d   : > { %8102 = vmatmul.mubr.bf16.gmra.mrb[68].mxu1 %v757_v58  ;;  %v535_v27 = vpop.f32.mrb[44].mxu1  ;;  %v2446_v5 = vrot.slane %v10807_v54, 6 }
 0x19e   : > { %v678_v56 = vsel %vm628_vm3, %v603_v13, %v653_v26  ;;  %8121 = vmatprep.mubr.bf16.mxu1 %v10631_v53  ;;  %v575_v7 = vmul.f32 %v10622_v36, %v535_v27  ;;  %v8063_v9 = vpop.f32.mrb[45].mxu1 }
 0x19f   : > { %v10839_v10 = vpack.c.bf16 %v678_v56, %v677_v25  ;;  %v538_v55 = vpop.f32.mrb[46].mxu1  ;;  %v10842_v38 = vsel %vm2432_vm6, %v2444_v30, %v2446_v5  ;;  %v10014_v9 = vld [vmem:[%s10525_s5 + $0xc8] sm:$0xff]  }
 0x1a0   : > { %v604_v8 = vadd.f32 %v10624_v37, %v575_v7  ;;  %v576_v58 = vmul.f32 %v10622_v36, %v538_v55  ;;  %v8064_v11 = vpop.f32.mrb[47].mxu1 }
 0x1a1   : > { %v12232_v17 = vrot.slane %v10839_v10, 2  ;;  %v1558_v13 = vrot.slane %v10839_v10, 3  ;;  %v1788_v26 = vrot.slane %v10839_v10, 4  ;;  %v2218_v27 = vrot.slane %v10839_v10, 5 }
 0x1a2   : > { %vm629_vm4 = vcmp.gt.f32.partialorder %v604_v8, 0.0  ;;  %v654_v25 = vmul.f32 0.1, %v604_v8  ;;  %v605_v56 = vadd.f32 %v10624_v37, %v576_v58  ;;  %v2448_v30 = vrot.slane %v10839_v10, 6 }
 0x1a3   : > { %v10857_v7 = vsel %vm1108_vm14, %v10816_v63, %v12232_v17  ;;  %v10860_v55 = vsel %vm1540_vm15, %v1556_v61, %v1558_v13  ;;  %v10863_v11 = vsel %vm1770_vm1, %v1786_v62, %v1788_v26  ;;  %v10866_v42 = vsel %vm2202_vm2, %v2216_v51, %v2218_v27  ;;  %v10015_v62 = vld [vmem:[%s10525_s5 + $0xd0] sm:$0xff]  }
 0x1a4   : > { %v679_v58 = vsel %vm629_vm4, %v604_v8, %v654_v25  ;;  %vm630_vm7 = vcmp.gt.f32.partialorder %v605_v56, 0.0  ;;  %v655_v21 = vmul.f32 0.1, %v605_v56  ;;  %v10869_v0 = vsel %vm2432_vm6, %v2446_v5, %v2448_v30  ;;  %v10016_v25 = vld [vmem:[%s10525_s5 + $0xd8] sm:$0xff]  }
 0x1a5   : > { %8122 = vmatmul.mubr.bf16.vlgmr.msra.gmra.mrb[52].mxu1 %v10637_v3 }
 0x1a6   : > { %8142 = vmatpush3.bf16.msra.mxu1 %v10718_v47  ;;  %8125 = vmatprep.mubr.bf16.mxu1 %v10646_v19  ;;  %v680_v61 = vsel %vm630_vm7, %v605_v56, %v655_v21  ;;  %v543_v56 = vpop.f32.mrb[48].mxu1 }
 0x1a7   : > { %8143 = vmatprep.subr.bf16.mxu1 %v10014_v9  ;;  %v693_v20 = vpack.c.bf16 %v680_v61, %v679_v58  ;;  %v10018_v58 = vld [vmem:[%s10525_s5 + $0xe8] sm:$0xff]  }
 0x1a9   : > { %v1560_v15 = vrot.slane %v693_v20, 3  ;;  %v1790_v51 = vrot.slane %v693_v20, 4  ;;  %v2220_v17 = vrot.slane %v693_v20, 5  ;;  %v2450_v8 = vrot.slane %v693_v20, 6 }
 0x1aa   : > { %8144 = vmatpush3.bf16.msra.mxu1 %v10014_v9  ;;  %v577_v20 = vmul.f32 %v10622_v36, %v543_v56  ;;  %v10019_v36 = vld [vmem:[%s10525_s5 + $0xf0] sm:$0xff]  }
 0x1ab   : > { %8145 = vmatprep.subr.bf16.mxu1 %v10015_v62  ;;  %v10877_v5 = vsel %vm1540_vm15, %v1558_v13, %v1560_v15  ;;  %v10880_v14 = vsel %vm1770_vm1, %v1788_v26, %v1790_v51  ;;  %v10883_v47 = vsel %vm2202_vm2, %v2218_v27, %v2220_v17  ;;  %v10886_v21 = vsel %vm2432_vm6, %v2448_v30, %v2450_v8  ;;  %v8067_v15 = vpop.f32.mrb[49].mxu1  ;;  %v10017_v13 = vld [vmem:[%s10525_s5 + $0xe0] sm:$0xff]  }
 0x1ac   : > { %v546_v26 = vpop.f32.mrb[50].mxu1  ;;  %v606_v27 = vadd.f32 %v10624_v37, %v577_v20 }
 0x1ad   : > { %8126 = vmatmul.mubr.bf16.gmra.mrb[56].mxu1 %v10657_v40  ;;  %v8068_v9 = vpop.f32.mrb[51].mxu1  ;;  %v10020_v26 = vld [vmem:[%s10525_s5 + $0xf8] sm:$0xff]  }
 0x1ae   : > { %8129 = vmatprep.mubr.bf16.mxu1 %v10667_v57  ;;  %8146 = vmatpush3.bf16.msra.mxu1 %v10015_v62  ;;  %vm631_vm8 = vcmp.gt.f32.partialorder %v606_v27, 0.0  ;;  %v656_v30 = vmul.f32 0.1, %v606_v27 }
 0x1af   : > { %8147 = vmatprep.subr.bf16.mxu1 %v10016_v25 }
 0x1b0   : > { %v681_v61 = vsel %vm631_vm8, %v606_v27, %v656_v30  ;;  %v12240_v30 = vrot.slane %v10667_v57, 2 }
 0x1b1   : > { %v694_v62 = vpack.c.bf16 %v681_v61, %v681_v61  ;;  %v10025_v61 = vld [vmem:[%s10525_s5 + $0x120] sm:$0xff]  }
 0x1b2   : > { %8148 = vmatpush3.bf16.msra.mxu1 %v10016_v25 }
 0x1b3   : > { %8149 = vmatprep.subr.bf16.mxu1 %v10017_v13  ;;  %v2001_v56 = vrot.slane %v694_v62, 4  ;;  %v2222_v15 = vrot.slane %v694_v62, 5  ;;  %v2452_v20 = vrot.slane %v694_v62, 6  ;;  %v10026_v62 = vld [vmem:[%s10525_s5 + $0x128] sm:$0xff]  }
 0x1b5   : > { %8130 = vmatmul.mubr.bf16.gmra.mrb[60].mxu1 %v10677_v12  ;;  %v10898_v37 = vsel %vm1770_vm1, %v1790_v51, %v2001_v56  ;;  %v10901_v25 = vsel %vm2202_vm2, %v2220_v17, %v2222_v15  ;;  %v10905_v12 = vsel %vm2432_vm6, %v2450_v8, %v2452_v20  ;;  %v1110_v51 = vrot.slane %v10637_v3, 2  ;;  %v10028_v56 = vld [vmem:[%s10525_s5 + $0x138] sm:$0xff]   ;;  %v10029_v15 = vld [vmem:[%s10525_s5 + $0x140] sm:$0xff]   ;;  %v10030_v20 = vld [vmem:[%s10525_s5 + $0x148] sm:$0xff]  }
 0x1b6   : > { %8133 = vmatprep.mubr.bf16.mxu1 %v10720_v48  ;;  %8150 = vmatpush3.bf16.msra.mxu1 %v10017_v13  ;;  %v10021_v48 = vld [vmem:[%s10525_s5 + $0x100] sm:$0xff]   ;;  %v1109_v17 = vrot.slane %v10631_v53, 2  ;;  %v10022_v13 = vld [vmem:[%s10525_s5 + $0x108] sm:$0xff]   ;;  %v10023_v53 = vld [vmem:[%s10525_s5 + $0x110] sm:$0xff]  }
 0x1b7   : > { %8151 = vmatprep.subr.bf16.mxu1 %v10018_v58 }
 0x1b8   : > { %v1111_v8 = vsel %vm1108_vm14, %v1109_v17, %v1110_v51  ;;  %v10035_v17 = vld [vmem:[%s10525_s5 + $0x170] sm:$0xff]  }
 0x1ba   : > { %8152 = vmatpush3.bf16.msra.mxu1 %v10018_v58 }
 0x1bb   : > { %8153 = vmatprep.subr.bf16.mxu1 %v10019_v36 }
 0x1bd   : > { %8134 = vmatmul.mubr.bf16.gmra.mrb[64].mxu1 %v10751_v16  ;;  %v1112_v16 = vrot.slane %v10646_v19, 2 }
 0x1be   : > { %8137 = vmatprep.mubr.bf16.mxu1 %v10779_v60  ;;  %8154 = vmatpush3.bf16.msra.mxu1 %v10019_v36  ;;  %v1114_v60 = vrot.slane %v10657_v40, 2  ;;  %v10027_v36 = vld [vmem:[%s10525_s5 + $0x130] sm:$0xff]  }
 0x1bf   : > { %8155 = vmatprep.subr.bf16.mxu1 %v10020_v26  ;;  %v1113_v27 = vsel %vm1108_vm14, %v1110_v51, %v1112_v16  ;;  %v10034_v51 = vld [vmem:[%s10525_s5 + $0x168] sm:$0xff]  }
 0x1c0   : > { %v1115_v9 = vsel %vm1108_vm14, %v1112_v16, %v1114_v60  ;;  %v1117_v58 = vsel %vm1108_vm14, %v1114_v60, %v12240_v30  ;;  %v10043_v30 = vld [vmem:[%s10525_s5 + $0x1b0] sm:$0xff]  }
 0x1c2   : > { %8156 = vmatpush3.bf16.msra.mxu1 %v10020_v26  ;;  %v10031_v26 = vld [vmem:[%s10525_s5 + $0x150] sm:$0xff]  }
 0x1c3   : > { %8177 = vmatprep.subr.bf16.mxu1 %v10021_v48 }
 0x1c5   : > { %8138 = vmatmul.mubr.bf16.gmra.mrb[68].mxu1 %v10807_v54  ;;  %v10024_v54 = vld [vmem:[%s10525_s5 + $0x118] sm:$0xff]  }
 0x1c6   : > { %8157 = vmatprep.mubr.bf16.mxu1 %v1111_v8  ;;  %v1542_v8 = vrot.slane %v10646_v19, 3 }
 0x1cd   : > { %8158 = vmatmul.mubr.bf16.vlgmr.msra.gmra.mrb[52].mxu1 %v1113_v27 }
 0x1ce   : > { %8178 = vmatpush3.bf16.msra.mxu1 %v10021_v48  ;;  %8161 = vmatprep.mubr.bf16.mxu1 %v1115_v9  ;;  %v10032_v48 = vld [vmem:[%s10525_s5 + $0x158] sm:$0xff]  }
 0x1cf   : > { %8179 = vmatprep.subr.bf16.mxu1 %v10022_v13 }
 0x1d2   : > { %8180 = vmatpush3.bf16.msra.mxu1 %v10022_v13  ;;  %v12242_v13 = vrot.slane %v10667_v57, 3 }
 0x1d3   : > { %8181 = vmatprep.subr.bf16.mxu1 %v10023_v53 }
 0x1d5   : > { %8162 = vmatmul.mubr.bf16.gmra.mrb[56].mxu1 %v1117_v58 }
 0x1d6   : > { %8165 = vmatprep.mubr.bf16.mxu1 %v10696_v33  ;;  %8182 = vmatpush3.bf16.msra.mxu1 %v10023_v53  ;;  %v10041_v53 = vld [vmem:[%s10525_s5 + $0x1a0] sm:$0xff]  }
 0x1d7   : > { %8183 = vmatprep.subr.bf16.mxu1 %v10024_v54 }
 0x1da   : > { %8184 = vmatpush3.bf16.msra.mxu1 %v10024_v54  ;;  %v10042_v54 = vld [vmem:[%s10525_s5 + $0x1a8] sm:$0xff]  }
 0x1db   : > { %8185 = vmatprep.subr.bf16.mxu1 %v10025_v61 }
 0x1dd   : > { %8166 = vmatmul.mubr.bf16.gmra.mrb[60].mxu1 %v10738_v1 }
 0x1de   : > { %8169 = vmatprep.mubr.bf16.mxu1 %v10766_v43  ;;  %8186 = vmatpush3.bf16.msra.mxu1 %v10025_v61 }
 0x1df   : > { %8187 = vmatprep.subr.bf16.mxu1 %v10026_v62 }
 0x1e2   : > { %8188 = vmatpush3.bf16.msra.mxu1 %v10026_v62  ;;  %v12243_v62 = vrot.slane %v10667_v57, 4 }
 0x1e3   : > { %8189 = vmatprep.subr.bf16.mxu1 %v10027_v36 }
 0x1e5   : > { %8170 = vmatmul.mubr.bf16.gmra.mrb[64].mxu1 %v10794_v22 }
 0x1e6   : > { %8173 = vmatprep.mubr.bf16.mxu1 %v10825_v29  ;;  %8190 = vmatpush3.bf16.msra.mxu1 %v10027_v36 }
 0x1e7   : > { %8191 = vmatprep.subr.bf16.mxu1 %v10028_v56 }
 0x1ea   : > { %8192 = vmatpush3.bf16.msra.mxu1 %v10028_v56  ;;  %v10049_v56 = vld [vmem:[%s10525_s5 + $0x1e0] sm:$0xff]  }
 0x1eb   : > { %8213 = vmatprep.subr.bf16.mxu1 %v10029_v15 }
 0x1ed   : > { %8174 = vmatmul.mubr.bf16.gmra.mrb[68].mxu1 %v10816_v63  ;;  %v10033_v63 = vld [vmem:[%s10525_s5 + $0x160] sm:$0xff]  }
 0x1ee   : > { %8193 = vmatprep.mubr.bf16.mxu1 %v1113_v27 }
 0x1f5   : > { %8194 = vmatmul.mubr.bf16.vlgmr.msra.gmra.mrb[52].mxu1 %v1115_v9  ;;  %v10040_v9 = vld [vmem:[%s10525_s5 + $0x198] sm:$0xff]  }
 0x1f6   : > { %8214 = vmatpush3.bf16.msra.mxu1 %v10029_v15  ;;  %8197 = vmatprep.mubr.bf16.mxu1 %v1117_v58  ;;  %v1772_v58 = vrot.slane %v10646_v19, 4  ;;  %v10050_v15 = vld [vmem:[%s10525_s5 + $0x1e8] sm:$0xff]  }
 0x1f7   : > { %8215 = vmatprep.subr.bf16.mxu1 %v10030_v20 }
 0x1fa   : > { %8216 = vmatpush3.bf16.msra.mxu1 %v10030_v20  ;;  %v10051_v20 = vld [vmem:[%s10525_s5 + $0x1f0] sm:$0xff]  }
 0x1fb   : > { %8217 = vmatprep.subr.bf16.mxu1 %v10031_v26 }
 0x1fd   : > { %8198 = vmatmul.mubr.bf16.gmra.mrb[56].mxu1 %v10696_v33  ;;  %v10036_v33 = vld [vmem:[%s10525_s5 + $0x178] sm:$0xff]  }
 0x1fe   : > { %8201 = vmatprep.mubr.bf16.mxu1 %v10738_v1  ;;  %8218 = vmatpush3.bf16.msra.mxu1 %v10031_v26  ;;  %v10037_v1 = vld [vmem:[%s10525_s5 + $0x180] sm:$0xff]   ;;  %v10052_v26 = vld [vmem:[%s10525_s5 + $0x1f8] sm:$0xff]  }
 0x1ff   : > { %8219 = vmatprep.subr.bf16.mxu1 %v10032_v48 }
 0x202   : > { %8220 = vmatpush3.bf16.msra.mxu1 %v10032_v48  ;;  %v10071_v48 = vld [vmem:[%s10525_s5 + $0x400] sm:$0xff]  }
 0x203   : > { %8221 = vmatprep.subr.bf16.mxu1 %v10033_v63  ;;  %8610 = vmatpush3.bf16.msra.mxu0 %v10071_v48 }
 0x205   : > { %8202 = vmatmul.mubr.bf16.gmra.mrb[60].mxu1 %v10766_v43  ;;  %v1541_v43 = vrot.slane %v10637_v3, 3 }
 0x206   : > { %8205 = vmatprep.mubr.bf16.mxu1 %v10794_v22  ;;  %8222 = vmatpush3.bf16.msra.mxu1 %v10033_v63  ;;  %v12241_v22 = vrot.slane %v10839_v10, 2  ;;  %v10039_v10 = vld [vmem:[%s10525_s5 + $0x190] sm:$0xff]   ;;  %v10053_v63 = vld [vmem:[%s10525_s5 + $0x200] sm:$0xff]  }
 0x207   : > { %8223 = vmatprep.subr.bf16.mxu1 %v10034_v51  ;;  %v1543_v16 = vsel %vm1540_vm15, %v1541_v43, %v1542_v8  ;;  %v10057_v43 = vld [vmem:[%s10525_s5 + $0x220] sm:$0xff]  }
 0x20a   : > { %8224 = vmatpush3.bf16.msra.mxu1 %v10034_v51  ;;  %v10073_v51 = vld [vmem:[%s10525_s5 + $0x408] sm:$0xff]  }
 0x20b   : > { %8225 = vmatprep.subr.bf16.mxu1 %v10035_v17 }
 0x20d   : > { %8206 = vmatmul.mubr.bf16.gmra.mrb[64].mxu1 %v10825_v29  ;;  %v1544_v29 = vrot.slane %v10657_v40, 3 }
 0x20e   : > { %8209 = vmatprep.mubr.bf16.mxu1 %v10857_v7  ;;  %8226 = vmatpush3.bf16.msra.mxu1 %v10035_v17  ;;  %v10038_v7 = vld [vmem:[%s10525_s5 + $0x188] sm:$0xff]   ;;  %v12244_v17 = vmov 0.0  }
 0x20f   : > { %8227 = vmatprep.subr.bf16.mxu1 %v10036_v33  ;;  %v1545_v60 = vsel %vm1540_vm15, %v1542_v8, %v1544_v29  ;;  %v1547_v27 = vsel %vm1540_vm15, %v1544_v29, %v12242_v13  ;;  %8611 = vmatprep.subr.bf16.mxu0 %v12244_v17  ;;  %v10056_v8 = vld [vmem:[%s10525_s5 + $0x218] sm:$0xff]   ;;  %v10066_v13 = vld [vmem:[%s10525_s5 + $0x268] sm:$0xff]  }
 0x210   : > { %8612 = vmatpush3.bf16.msra.mxu0 %v10073_v51 }
 0x211   : > { %8613 = vmatprep.subr.bf16.mxu0 %v12244_v17 }
 0x212   : > { %8228 = vmatpush3.bf16.msra.mxu1 %v10036_v33  ;;  %v10054_v33 = vld [vmem:[%s10525_s5 + $0x208] sm:$0xff]  }
 0x213   : > { %8249 = vmatprep.subr.bf16.mxu1 %v10037_v1 }
 0x215   : > { %8210 = vmatmul.mubr.bf16.gmra.mrb[68].mxu1 %v12241_v22  ;;  %v10058_v22 = vld [vmem:[%s10525_s5 + $0x228] sm:$0xff]  }
 0x216   : > { %8229 = vmatprep.mubr.bf16.mxu1 %v1543_v16  ;;  %v2204_v16 = vrot.slane %v10657_v40, 5 }
 0x21d   : > { %8230 = vmatmul.mubr.bf16.vlgmr.msra.gmra.mrb[52].mxu1 %v1545_v60  ;;  %v10065_v60 = vld [vmem:[%s10525_s5 + $0x260] sm:$0xff]  }
 0x21e   : > { %8250 = vmatpush3.bf16.msra.mxu1 %v10037_v1  ;;  %8233 = vmatprep.mubr.bf16.mxu1 %v1547_v27  ;;  %v10055_v1 = vld [vmem:[%s10525_s5 + $0x210] sm:$0xff]   ;;  %v10068_v27 = vld [vmem:[%s10525_s5 + $0x278] sm:$0xff]  }
 0x21f   : > { %8251 = vmatprep.subr.bf16.mxu1 %v10038_v7 }
 0x222   : > { %8252 = vmatpush3.bf16.msra.mxu1 %v10038_v7  ;;  %v10063_v7 = vld [vmem:[%s10525_s5 + $0x250] sm:$0xff]  }
 0x223   : > { %8253 = vmatprep.subr.bf16.mxu1 %v10039_v10 }
 0x225   : > { %8234 = vmatmul.mubr.bf16.gmra.mrb[56].mxu1 %v10701_v34  ;;  %v10044_v34 = vld [vmem:[%s10525_s5 + $0x1b8] sm:$0xff]  }
 0x226   : > { %8237 = vmatprep.mubr.bf16.mxu1 %v10741_v2  ;;  %8254 = vmatpush3.bf16.msra.mxu1 %v10039_v10  ;;  %v10045_v2 = vld [vmem:[%s10525_s5 + $0x1c0] sm:$0xff]   ;;  %v10084_v10 = vld [vmem:[%s10525_s5 + $0x438] sm:$0xff]  }
 0x227   : > { %8255 = vmatprep.subr.bf16.mxu1 %v10040_v9 }
 0x22a   : > { %8256 = vmatpush3.bf16.msra.mxu1 %v10040_v9  ;;  %v2647_v9 = vsub.s32 2, %v10617_v32 }
 0x22b   : > { %8257 = vmatprep.subr.bf16.mxu1 %v10041_v53 }
 0x22d   : > { %8238 = vmatmul.mubr.bf16.gmra.mrb[60].mxu1 %v10769_v44  ;;  %v1771_v44 = vrot.slane %v10637_v3, 4  ;;  %v10047_v3 = vld [vmem:[%s10525_s5 + $0x1d0] sm:$0xff]  }
 0x22e   : > { %8241 = vmatprep.mubr.bf16.mxu1 %v10797_v23  ;;  %8258 = vmatpush3.bf16.msra.mxu1 %v10041_v53  ;;  %v2671_v53 = vsub.s32 3, %v10617_v32 }
 0x22f   : > { %8259 = vmatprep.subr.bf16.mxu1 %v10042_v54  ;;  %v1773_v23 = vsel %vm1770_vm1, %v1771_v44, %v1772_v58 }
 0x232   : > { %8260 = vmatpush3.bf16.msra.mxu1 %v10042_v54  ;;  %v10269_v54 = vld [vmem:[%s10531_s8] sm:$0xff] }
 0x233   : > { %8261 = vmatprep.subr.bf16.mxu1 %v10043_v30 }
 0x235   : > { %8242 = vmatmul.mubr.bf16.gmra.mrb[64].mxu1 %v10828_v41  ;;  %v1774_v41 = vrot.slane %v10657_v40, 4 }
 0x236   : > { %8245 = vmatprep.mubr.bf16.mxu1 %v10860_v55  ;;  %8262 = vmatpush3.bf16.msra.mxu1 %v10043_v30  ;;  %v10046_v55 = vld [vmem:[%s10525_s5 + $0x1c8] sm:$0xff]   ;;  %v11086_v30 = vrot.slane %v10269_v54, %v2647_v9 }
 0x237   : > { %8263 = vmatprep.subr.bf16.mxu1 %v10044_v34  ;;  %v1775_v61 = vsel %vm1770_vm1, %v1772_v58, %v1774_v41  ;;  %v1777_v36 = vsel %vm1770_vm1, %v1774_v41, %v12243_v62 }
 0x23a   : > { %8264 = vmatpush3.bf16.msra.mxu1 %v10044_v34  ;;  %v11088_v34 = vrot.slane %v10269_v54, %v2671_v53 }
 0x23b   : > { %8285 = vmatprep.subr.bf16.mxu1 %v10045_v2 }
 0x23d   : > { %8246 = vmatmul.mubr.bf16.gmra.mrb[68].mxu1 %v10877_v5  ;;  %v10048_v5 = vld [vmem:[%s10525_s5 + $0x1d8] sm:$0xff]  }
 0x23e   : > { %8265 = vmatprep.mubr.bf16.mxu1 %v1773_v23 }
 0x245   : > { %8266 = vmatmul.mubr.bf16.vlgmr.msra.gmra.mrb[52].mxu1 %v1775_v61 }
 0x246   : > { %8286 = vmatpush3.bf16.msra.mxu1 %v10045_v2  ;;  %8269 = vmatprep.mubr.bf16.mxu1 %v1777_v36 }
 0x247   : > { %8287 = vmatprep.subr.bf16.mxu1 %v10046_v55 }
 0x24a   : > { %8288 = vmatpush3.bf16.msra.mxu1 %v10046_v55 }
 0x24b   : > { %8289 = vmatprep.subr.bf16.mxu1 %v10047_v3 }
 0x24d   : > { %8270 = vmatmul.mubr.bf16.gmra.mrb[56].mxu1 %v10706_v35 }
 0x24e   : > { %8273 = vmatprep.mubr.bf16.mxu1 %v10744_v4  ;;  %8290 = vmatpush3.bf16.msra.mxu1 %v10047_v3 }
 0x24f   : > { %8291 = vmatprep.subr.bf16.mxu1 %v10048_v5 }
 0x252   : > { %8292 = vmatpush3.bf16.msra.mxu1 %v10048_v5 }
 0x253   : > { %8293 = vmatprep.subr.bf16.mxu1 %v10049_v56 }
 0x255   : > { %8274 = vmatmul.mubr.bf16.gmra.mrb[60].mxu1 %v10772_v45 }
 0x256   : > { %8277 = vmatprep.mubr.bf16.mxu1 %v10800_v24  ;;  %8294 = vmatpush3.bf16.msra.mxu1 %v10049_v56 }
 0x257   : > { %8295 = vmatprep.subr.bf16.mxu1 %v10050_v15 }
 0x25a   : > { %8296 = vmatpush3.bf16.msra.mxu1 %v10050_v15 }
 0x25b   : > { %8297 = vmatprep.subr.bf16.mxu1 %v10051_v20 }
 0x25d   : > { %8278 = vmatmul.mubr.bf16.gmra.mrb[64].mxu1 %v10831_v49 }
 0x25e   : > { %8281 = vmatprep.mubr.bf16.mxu1 %v10863_v11  ;;  %8298 = vmatpush3.bf16.msra.mxu1 %v10051_v20 }
 0x25f   : > { %8299 = vmatprep.subr.bf16.mxu1 %v10052_v26 }
 0x262   : > { %8300 = vmatpush3.bf16.msra.mxu1 %v10052_v26 }
 0x263   : > { %8321 = vmatprep.subr.bf16.mxu1 %v10053_v63 }
 0x265   : > { %8282 = vmatmul.mubr.bf16.gmra.mrb[68].mxu1 %v10880_v14 }
 0x266   : > { %8301 = vmatprep.mubr.bf16.mxu1 %v1775_v61 }
 0x26d   : > { %8302 = vmatmul.mubr.bf16.vlgmr.msra.gmra.mrb[52].mxu1 %v1777_v36 }
 0x26e   : > { %8322 = vmatpush3.bf16.msra.mxu1 %v10053_v63  ;;  %8305 = vmatprep.mubr.bf16.mxu1 %v10706_v35  ;;  %v10059_v35 = vld [vmem:[%s10525_s5 + $0x230] sm:$0xff]  }
 0x26f   : > { %8323 = vmatprep.subr.bf16.mxu1 %v10054_v33 }
 0x272   : > { %8324 = vmatpush3.bf16.msra.mxu1 %v10054_v33 }
 0x273   : > { %8325 = vmatprep.subr.bf16.mxu1 %v10055_v1 }
 0x275   : > { %8306 = vmatmul.mubr.bf16.gmra.mrb[56].mxu1 %v10744_v4  ;;  %v10060_v4 = vld [vmem:[%s10525_s5 + $0x238] sm:$0xff]  }
 0x276   : > { %8309 = vmatprep.mubr.bf16.mxu1 %v10772_v45  ;;  %8326 = vmatpush3.bf16.msra.mxu1 %v10055_v1  ;;  %v10061_v45 = vld [vmem:[%s10525_s5 + $0x240] sm:$0xff]  }
 0x277   : > { %8327 = vmatprep.subr.bf16.mxu1 %v10056_v8 }
 0x27a   : > { %8328 = vmatpush3.bf16.msra.mxu1 %v10056_v8 }
 0x27b   : > { %8329 = vmatprep.subr.bf16.mxu1 %v10057_v43 }
 0x27d   : > { %8310 = vmatmul.mubr.bf16.gmra.mrb[60].mxu1 %v10800_v24  ;;  %v2203_v24 = vrot.slane %v10646_v19, 5 }
 0x27e   : > { %8313 = vmatprep.mubr.bf16.mxu1 %v10831_v49  ;;  %8330 = vmatpush3.bf16.msra.mxu1 %v10057_v43 }
 0x27f   : > { %8331 = vmatprep.subr.bf16.mxu1 %v10058_v22  ;;  %v2205_v49 = vsel %vm2202_vm2, %v2203_v24, %v2204_v16 }
 0x282   : > { %8332 = vmatpush3.bf16.msra.mxu1 %v10058_v22 }
 0x283   : > { %8333 = vmatprep.subr.bf16.mxu1 %v10059_v35 }
 0x285   : > { %8314 = vmatmul.mubr.bf16.gmra.mrb[64].mxu1 %v10863_v11  ;;  %v10062_v11 = vld [vmem:[%s10525_s5 + $0x248] sm:$0xff]  }
 0x286   : > { %8317 = vmatprep.mubr.bf16.mxu1 %v10880_v14  ;;  %8334 = vmatpush3.bf16.msra.mxu1 %v10059_v35  ;;  %v12245_v14 = vrot.slane %v10667_v57, 5 }
 0x287   : > { %8335 = vmatprep.subr.bf16.mxu1 %v10060_v4 }
 0x288   : > { %v2207_v29 = vsel %vm2202_vm2, %v2204_v16, %v12245_v14 }
 0x28a   : > { %8336 = vmatpush3.bf16.msra.mxu1 %v10060_v4 }
 0x28b   : > { %8357 = vmatprep.subr.bf16.mxu1 %v10061_v45 }
 0x28d   : > { %8318 = vmatmul.mubr.bf16.gmra.mrb[68].mxu1 %v10898_v37  ;;  %v10064_v37 = vld [vmem:[%s10525_s5 + $0x258] sm:$0xff]  }
 0x28e   : > { %8337 = vmatprep.mubr.bf16.mxu1 %v2205_v49 }
 0x295   : > { %8338 = vmatmul.mubr.bf16.vlgmr.msra.gmra.mrb[52].mxu1 %v2207_v29 }
 0x296   : > { %8358 = vmatpush3.bf16.msra.mxu1 %v10061_v45  ;;  %8341 = vmatprep.mubr.bf16.mxu1 %v10711_v39  ;;  %v10067_v39 = vld [vmem:[%s10525_s5 + $0x270] sm:$0xff]  }
 0x297   : > { %8359 = vmatprep.subr.bf16.mxu1 %v10062_v11 }
 0x29a   : > { %8360 = vmatpush3.bf16.msra.mxu1 %v10062_v11 }
 0x29b   : > { %8361 = vmatprep.subr.bf16.mxu1 %v10063_v7 }
 0x29d   : > { %8342 = vmatmul.mubr.bf16.gmra.mrb[56].mxu1 %v10747_v6  ;;  %v2434_v6 = vrot.slane %v10657_v40, 6  ;;  %v10070_v40 = vld [vmem:[%s10525_s5 + $0x2c8] sm:$0xff]  }
 0x29e   : > { %8345 = vmatprep.mubr.bf16.mxu1 %v10775_v46  ;;  %8362 = vmatpush3.bf16.msra.mxu1 %v10063_v7  ;;  %v2433_v46 = vrot.slane %v10646_v19, 6  ;;  %v10072_v19 = vld [vmem:[%s10525_s5 + $0x2d0] sm:$0xff]  }
 0x29f   : > { %8363 = vmatprep.subr.bf16.mxu1 %v10064_v37 }
 0x2a2   : > { %8364 = vmatpush3.bf16.msra.mxu1 %v10064_v37 }
 0x2a3   : > { %8365 = vmatprep.subr.bf16.mxu1 %v10065_v60 }
 0x2a5   : > { %8346 = vmatmul.mubr.bf16.gmra.mrb[60].mxu1 %v10803_v31  ;;  %v2435_v31 = vsel %vm2432_vm6, %v2433_v46, %v2434_v6 }
 0x2a6   : > { %8349 = vmatprep.mubr.bf16.mxu1 %v10834_v52  ;;  %8366 = vmatpush3.bf16.msra.mxu1 %v10065_v60  ;;  %v12246_v52 = vrot.slane %v10667_v57, 6  ;;  %v10074_v57 = vld [vmem:[%s10525_s5 + $0x2d8] sm:$0xff]  }
 0x2a7   : > { %8367 = vmatprep.subr.bf16.mxu1 %v10066_v13 }
 0x2aa   : > { %8368 = vmatpush3.bf16.msra.mxu1 %v10066_v13 }
 0x2ab   : > { %8369 = vmatprep.subr.bf16.mxu1 %v10067_v39 }
 0x2ad   : > { %8350 = vmatmul.mubr.bf16.gmra.mrb[64].mxu1 %v10866_v42  ;;  %v10069_v42 = vld [vmem:[%s10525_s5 + $0x2c0] sm:$0xff]  }
 0x2ae   : > { %8353 = vmatprep.mubr.bf16.mxu1 %v10883_v47  ;;  %8370 = vmatpush3.bf16.msra.mxu1 %v10067_v39  ;;  %v2437_v47 = vsel %vm2432_vm6, %v2434_v6, %v12246_v52  ;;  %v10086_v39 = vld [vmem:[%s10525_s5 + $0x280] sm:$0xff]  }
 0x2af   : > { %8371 = vmatprep.subr.bf16.mxu1 %v10068_v27 }
 0x2b2   : > { %8372 = vmatpush3.bf16.msra.mxu1 %v10068_v27 }
 0x2b3   : > { %8393 = vmatprep.subr.bf16.mxu1 %v12244_v17 }
 0x2b5   : > { %8354 = vmatmul.mubr.bf16.gmra.mrb[68].mxu1 %v10901_v25  ;;  %v10082_v25 = vld [vmem:[%s10525_s5 + $0x2f8] sm:$0xff]  }
 0x2b6   : > { %8373 = vmatprep.mubr.bf16.mxu1 %v2435_v31 }
 0x2bd   : > { %8374 = vmatmul.mubr.bf16.vlgmr.msra.gmra.mrb[52].mxu1 %v2437_v47 }
 0x2be   : > { %8377 = vmatprep.mubr.bf16.mxu1 %v10725_v50  ;;  %8394 = vmatpush3.bf16.msra.mxu1 %v10069_v42  ;;  %v10075_v50 = vld [vmem:[%s10525_s5 + $0x410] sm:$0xff]  }
 0x2bf   : > { %8395 = vmatprep.subr.bf16.mxu1 %v12244_v17  ;;  %8614 = vmatpush3.bf16.msra.mxu0 %v10075_v50 }
 0x2c0   : > { %8615 = vmatprep.subr.bf16.mxu0 %v12244_v17 }
 0x2c2   : > { %8396 = vmatpush3.bf16.msra.mxu1 %v10070_v40 }
 0x2c3   : > { %8397 = vmatprep.subr.bf16.mxu1 %v12244_v17 }
 0x2c5   : > { %8378 = vmatmul.mubr.bf16.gmra.mrb[56].mxu1 %v10754_v18  ;;  %v10076_v18 = vld [vmem:[%s10525_s5 + $0x2e0] sm:$0xff]  }
 0x2c6   : > { %8381 = vmatprep.mubr.bf16.mxu1 %v10782_v59  ;;  %8398 = vmatpush3.bf16.msra.mxu1 %v10072_v19  ;;  %v10078_v59 = vld [vmem:[%s10525_s5 + $0x2e8] sm:$0xff]  }
 0x2c7   : > { %8399 = vmatprep.subr.bf16.mxu1 %v12244_v17 }
 0x2ca   : > { %8400 = vmatpush3.bf16.msra.mxu1 %v10074_v57 }
 0x2cb   : > { %8401 = vmatprep.subr.bf16.mxu1 %v12244_v17 }
 0x2cd   : > { %8382 = vmatmul.mubr.bf16.gmra.mrb[60].mxu1 %v10810_v28  ;;  %v10079_v28 = vld [vmem:[%s10525_s5 + $0x420] sm:$0xff]  }
 0x2ce   : > { %8385 = vmatprep.mubr.bf16.mxu1 %v10842_v38  ;;  %8402 = vmatpush3.bf16.msra.mxu1 %v10076_v18  ;;  %v10080_v38 = vld [vmem:[%s10525_s5 + $0x2f0] sm:$0xff]   ;;  %v10087_v18 = vld [vmem:[%s10525_s5 + $0x288] sm:$0xff]  }
 0x2cf   : > { %8403 = vmatprep.subr.bf16.mxu1 %v12244_v17 }
 0x2d2   : > { %8404 = vmatpush3.bf16.msra.mxu1 %v10078_v59 }
 0x2d3   : > { %8405 = vmatprep.subr.bf16.mxu1 %v12244_v17 }
 0x2d5   : > { %8386 = vmatmul.mubr.bf16.gmra.mrb[64].mxu1 %v10869_v0  ;;  %v10077_v0 = vld [vmem:[%s10525_s5 + $0x418] sm:$0xff]  }
 0x2d6   : > { %8389 = vmatprep.mubr.bf16.mxu1 %v10886_v21  ;;  %8616 = vmatpush3.bf16.msra.mxu0 %v10077_v0  ;;  %v10081_v21 = vld [vmem:[%s10525_s5 + $0x428] sm:$0xff]  }
 0x2d7   : > { %8617 = vmatprep.subr.bf16.mxu0 %v12244_v17  ;;  %8406 = vmatpush3.bf16.msra.mxu1 %v10080_v38 }
 0x2d8   : > { %8407 = vmatprep.subr.bf16.mxu1 %v12244_v17 }
 0x2da   : > { %8618 = vmatpush3.bf16.msra.mxu0 %v10079_v28 }
 0x2db   : > { %8619 = vmatprep.subr.bf16.mxu0 %v12244_v17  ;;  %8408 = vmatpush3.bf16.msra.mxu1 %v10082_v25 }
 0x2dc   : > { %8429 = vmatprep.subr.bf16.mxu1 %v12244_v17 }
 0x2dd   : > { %8390 = vmatmul.mubr.bf16.gmra.mrb[68].mxu1 %v10905_v12  ;;  %v10083_v12 = vld [vmem:[%s10525_s5 + $0x430] sm:$0xff]  }
 0x2de   : > { %8409 = vmatprep.mubr.msk.bf16.mxu1 %vm10382_vm0, %v12244_v17  ;;  %8620 = vmatpush3.bf16.msra.mxu0 %v10081_v21 }
 0x2df   : > { %8621 = vmatprep.subr.bf16.mxu0 %v12244_v17 }
 0x2e2   : > { %8622 = vmatpush3.bf16.msra.mxu0 %v10083_v12 }
 0x2e3   : > { %8623 = vmatprep.subr.bf16.mxu0 %v12244_v17 }
 0x2e6   : > { %8624 = vmatpush3.bf16.msra.mxu0 %v10084_v10 }
 0x2e7   : > { %8645 = vmatprep.subr.bf16.mxu0 %v12244_v17 }
 0x390   : > { %v8375_v2 = vpop.f32.mrb[52].mxu1 }
 0x391   : > { %v2651_v58 = vmul.f32 %v8375_v2, %v11086_v30  ;;  %v2546_v44 = vpop.f32.mrb[53].mxu1 }
 0x392   : > { %v2649_v23 = vmul.f32 %v11086_v30, %v2546_v44  ;;  %v8376_v41 = vpop.f32.mrb[54].mxu1 }
 0x393   : > { %v2675_v55 = vadd.f32 %v11088_v34, %v2651_v58  ;;  %v2652_v61 = vmul.f32 %v8376_v41, %v11086_v30  ;;  %v2549_v62 = vpop.f32.mrb[55].mxu1 }
 0x394   : > { %v2673_v36 = vadd.f32 %v11088_v34, %v2649_v23  ;;  %v2650_v3 = vmul.f32 %v11086_v30, %v2549_v62 }
 0x395   : > { %v2715_v5 = vmul.f32 0.1, %v2675_v55  ;;  %v2676_v56 = vadd.f32 %v11088_v34, %v2652_v61  ;;  %vm2695_vm9 = vcmp.gt.f32.partialorder %v2675_v55, 0.0 }
 0x396   : > { %v2713_v15 = vmul.f32 0.1, %v2673_v36  ;;  %v2674_v20 = vadd.f32 %v11088_v34, %v2650_v3  ;;  %vm2693_vm10 = vcmp.gt.f32.partialorder %v2673_v36, 0.0  ;;  %v10085_v3 = vld [vmem:[%s10525_s5 + $0x440] sm:$0xff]  }
 0x397   : > { %vm2696_vm11 = vcmp.gt.f32.partialorder %v2676_v56, 0.0  ;;  %v2716_v26 = vmul.f32 0.1, %v2676_v56  ;;  %v2735_v51 = vsel %vm2695_vm9, %v2675_v55, %v2715_v5 }
 0x398   : > { %vm2694_vm12 = vcmp.gt.f32.partialorder %v2674_v20, 0.0  ;;  %v2714_v48 = vmul.f32 0.1, %v2674_v20  ;;  %v8379_v63 = vpop.f32.mrb[56].mxu1  ;;  %v2733_v43 = vsel %vm2693_vm10, %v2673_v36, %v2713_v15 }
 0x399   : > { %v2736_v33 = vsel %vm2696_vm11, %v2676_v56, %v2716_v26  ;;  %v2655_v1 = vmul.f32 %v8379_v63, %v11086_v30  ;;  %v2562_v8 = vpop.f32.mrb[57].mxu1  ;;  %v10089_v63 = vld [vmem:[%s10525_s5 + $0x290] sm:$0xff]  }
 0x39a   : > { %v11099_v22 = vpack.c.bf16 %v2736_v33, %v2735_v51  ;;  %v2734_v35 = vsel %vm2694_vm12, %v2674_v20, %v2714_v48  ;;  %v2653_v4 = vmul.f32 %v11086_v30, %v2562_v8  ;;  %v8380_v45 = vpop.f32.mrb[58].mxu1 }
 0x39b   : > { %v11102_v16 = vpack.c.bf16 %v2734_v35, %v2733_v43  ;;  %v2679_v24 = vadd.f32 %v11088_v34, %v2655_v1  ;;  %v2656_v49 = vmul.f32 %v8380_v45, %v11086_v30  ;;  %v2565_v11 = vpop.f32.mrb[59].mxu1 }
 0x39c   : > { %v2677_v14 = vadd.f32 %v11088_v34, %v2653_v4  ;;  %v2654_v29 = vmul.f32 %v11086_v30, %v2565_v11  ;;  %v2803_v7 = vrot.slane %v11099_v22, 1  ;;  %v3068_v0 = vrot.slane %v11099_v22, 2 }
 0x39d   : > { %v2719_v37 = vmul.f32 0.1, %v2679_v24  ;;  %v2680_v60 = vadd.f32 %v11088_v34, %v2656_v49  ;;  %v2802_v13 = vrot.slane %v11102_v16, 1  ;;  %vm2699_vm13 = vcmp.gt.f32.partialorder %v2679_v24, 0.0  ;;  %v10088_v49 = vld [vmem:[%s10525_s5 + $0x448] sm:$0xff]  }
 0x39e   : > { %v2717_v27 = vmul.f32 0.1, %v2677_v14  ;;  %v2678_v6 = vadd.f32 %v11088_v34, %v2654_v29  ;;  %vm2697_vm3 = vcmp.gt.f32.partialorder %v2677_v14, 0.0  ;;  %v3067_v47 = vrot.slane %v11102_v16, 2 }
 0x39f   : > { %vm2700_vm4 = vcmp.gt.f32.partialorder %v2680_v60, 0.0  ;;  %v2720_v46 = vmul.f32 0.1, %v2680_v60  ;;  %v2804_v31 = vsel %vm739_vm5, %v2802_v13, %v2803_v7  ;;  %v2739_v40 = vsel %vm2699_vm13, %v2679_v24, %v2719_v37 }
 0x3a0   : > { %vm2698_vm7 = vcmp.gt.f32.partialorder %v2678_v6, 0.0  ;;  %v2718_v42 = vmul.f32 0.1, %v2678_v6  ;;  %v8383_v52 = vpop.f32.mrb[60].mxu1  ;;  %8410 = vmatmul.mubr.bf16.vlgmr.msra.gmra.mrb[72].mxu1 %v2804_v31  ;;  %v2737_v59 = vsel %vm2697_vm3, %v2677_v14, %v2717_v27  ;;  %v11132_v54 = vsel %vm1108_vm14, %v3067_v47, %v3068_v0 }
 0x3a1   : > { %v2740_v19 = vsel %vm2700_vm4, %v2680_v60, %v2720_v46  ;;  %v2659_v57 = vmul.f32 %v8383_v52, %v11086_v30  ;;  %v2578_v50 = vpop.f32.mrb[61].mxu1  ;;  %8413 = vmatprep.mubr.msk.bf16.mxu1 %vm10382_vm0, %v12244_v17  ;;  %8430 = vmatpush3.bf16.msra.mxu1 %v10086_v39  ;;  %v3222_v44 = vrot.slane %v11099_v22, 3  ;;  %v3376_v11 = vrot.slane %v11099_v22, 4 }
 0x3a2   : > { %v11121_v28 = vpack.c.bf16 %v2740_v19, %v2739_v40  ;;  %v2738_v38 = vsel %vm2698_vm7, %v2678_v6, %v2718_v42  ;;  %v2657_v21 = vmul.f32 %v11086_v30, %v2578_v50  ;;  %v8384_v25 = vpop.f32.mrb[62].mxu1  ;;  %8431 = vmatprep.subr.bf16.mxu1 %v12244_v17  ;;  %v10091_v42 = vld [vmem:[%s10525_s5 + $0x298] sm:$0xff]   ;;  %v10090_v40 = vld [vmem:[%s10525_s5 + $0x450] sm:$0xff]  }
 0x3a3   : > { %v11125_v12 = vpack.c.bf16 %v2738_v38, %v2737_v59  ;;  %v2683_v10 = vadd.f32 %v11088_v34, %v2659_v57  ;;  %v2660_v9 = vmul.f32 %v8384_v25, %v11086_v30  ;;  %v2581_v53 = vpop.f32.mrb[63].mxu1 }
 0x3a4   : > { %v2681_v2 = vadd.f32 %v11088_v34, %v2657_v21  ;;  %v2658_v58 = vmul.f32 %v11086_v30, %v2581_v53  ;;  %v2807_v60 = vrot.slane %v11121_v28, 1  ;;  %v3226_v27 = vrot.slane %v11121_v28, 3 }
 0x3a5   : > { %vm2703_vm8 = vcmp.gt.f32.partialorder %v2683_v10, 0.0  ;;  %v2723_v23 = vmul.f32 0.1, %v2683_v10  ;;  %v2684_v41 = vadd.f32 %v11088_v34, %v2660_v9  ;;  %v2805_v55 = vrot.slane %v11125_v12, 1  ;;  %8432 = vmatpush3.bf16.msra.mxu1 %v10087_v18 }
 0x3a6   : > { %vm2701_vm9 = vcmp.gt.f32.partialorder %v2681_v2, 0.0  ;;  %v2721_v61 = vmul.f32 0.1, %v2681_v2  ;;  %v2682_v62 = vadd.f32 %v11088_v34, %v2658_v58  ;;  %v3224_v36 = vrot.slane %v11125_v12, 3  ;;  %8433 = vmatprep.subr.bf16.mxu1 %v12244_v17 }
 0x3a7   : > { %vm2704_vm10 = vcmp.gt.f32.partialorder %v2684_v41, 0.0  ;;  %v2724_v5 = vmul.f32 0.1, %v2684_v41  ;;  %v2806_v56 = vsel %vm739_vm5, %v2803_v7, %v2805_v55  ;;  %v2743_v15 = vsel %vm2703_vm8, %v2683_v10, %v2723_v23 }
 0x3a8   : > { %vm2702_vm11 = vcmp.gt.f32.partialorder %v2682_v62, 0.0  ;;  %v2722_v20 = vmul.f32 0.1, %v2682_v62  ;;  %v8387_v26 = vpop.f32.mrb[64].mxu1  ;;  %8414 = vmatmul.mubr.bf16.gmra.mrb[76].mxu1 %v2806_v56  ;;  %v11147_v48 = vsel %vm1540_vm15, %v3222_v44, %v3224_v36  ;;  %v2741_v51 = vsel %vm2701_vm9, %v2681_v2, %v2721_v61  ;;  %v10093_v2 = vld [vmem:[%s10525_s5 + $0x2a0] sm:$0xff]   ;;  %v10092_v61 = vld [vmem:[%s10525_s5 + $0x458] sm:$0xff]  }
 0x3a9   : > { %v2744_v33 = vsel %vm2704_vm10, %v2684_v41, %v2724_v5  ;;  %v2663_v1 = vmul.f32 %v8387_v26, %v11086_v30  ;;  %8626 = vmatmul.mubr.bf16.vlgmr.msra.gmra.mrb[0].mxu0 %v11147_v48  ;;  %v2594_v8 = vpop.f32.mrb[65].mxu1  ;;  %8417 = vmatprep.mubr.msk.bf16.mxu1 %vm10382_vm0, %v12244_v17  ;;  %v3378_v43 = vrot.slane %v11125_v12, 4  ;;  %v2808_v57 = vsel %vm739_vm5, %v2805_v55, %v2807_v60 }
 0x3aa   : > { %v11156_v35 = vpack.c.bf16 %v2744_v33, %v2743_v15  ;;  %v2742_v4 = vsel %vm2702_vm11, %v2682_v62, %v2722_v20  ;;  %8646 = vmatpush3.bf16.msra.mxu0 %v10085_v3  ;;  %v2661_v45 = vmul.f32 %v11086_v30, %v2594_v8  ;;  %v8388_v24 = vpop.f32.mrb[66].mxu1  ;;  %8629 = vmatprep.mubr.msk.bf16.mxu0 %vm10382_vm0, %v12244_v17  ;;  %v3070_v56 = vrot.slane %v11125_v12, 2 }
 0x3ab   : > { %v11163_v14 = vpack.c.bf16 %v2742_v4, %v2741_v51  ;;  %v2687_v29 = vadd.f32 %v11088_v34, %v2663_v1  ;;  %v2664_v7 = vmul.f32 %v8388_v24, %v11086_v30  ;;  %v2597_v37 = vpop.f32.mrb[67].mxu1  ;;  %8647 = vmatprep.subr.bf16.mxu0 %v12244_v17  ;;  %8434 = vmatpush3.bf16.msra.mxu1 %v10089_v63  ;;  %v10095_v1 = vld [vmem:[%s10525_s5 + $0x2a8] sm:$0xff]   ;;  %v3962_v8 = vrot.slane %v11099_v22, 5 }
 0x3ac   : > { %v2685_v13 = vadd.f32 %v11088_v34, %v2661_v45  ;;  %v2662_v39 = vmul.f32 %v11086_v30, %v2597_v37  ;;  %v11177_v6 = vsel %vm1770_vm1, %v3376_v11, %v3378_v43  ;;  %8435 = vmatprep.subr.bf16.mxu1 %v12244_v17  ;;  %v11189_v38 = vsel %vm1540_vm15, %v3224_v36, %v3226_v27 }
 0x3ad   : > { %vm2707_vm12 = vcmp.gt.f32.partialorder %v2687_v29, 0.0  ;;  %v2727_v46 = vmul.f32 0.1, %v2687_v29  ;;  %v2688_v31 = vadd.f32 %v11088_v34, %v2664_v7  ;;  %v11194_v53 = vrot.slane %v11163_v14, 1 }
 0x3ae   : > { %vm2705_vm13 = vcmp.gt.f32.partialorder %v2685_v13, 0.0  ;;  %v2725_v52 = vmul.f32 0.1, %v2685_v13  ;;  %v2686_v47 = vadd.f32 %v11088_v34, %v2662_v39  ;;  %8648 = vmatpush3.bf16.msra.mxu0 %v10088_v49  ;;  %v11215_v26 = vrot.slane %v11163_v14, 3 }
 0x3af   : > { %vm2708_vm3 = vcmp.gt.f32.partialorder %v2688_v31, 0.0  ;;  %v2728_v19 = vmul.f32 0.1, %v2688_v31  ;;  %8649 = vmatprep.subr.bf16.mxu0 %v12244_v17  ;;  %v2747_v50 = vsel %vm2707_vm12, %v2687_v29, %v2727_v46  ;;  %8436 = vmatpush3.bf16.msra.mxu1 %v10091_v42  ;;  %v2810_v33 = vsel %vm739_vm5, %v2807_v60, %v11194_v53  ;;  %v10097_v42 = vld [vmem:[%s10525_s5 + $0x468] sm:$0xff]  }
 0x3b0   : > { %vm2706_vm4 = vcmp.gt.f32.partialorder %v2686_v47, 0.0  ;;  %v2726_v18 = vmul.f32 0.1, %v2686_v47  ;;  %v8391_v59 = vpop.f32.mrb[68].mxu1  ;;  %8418 = vmatmul.mubr.bf16.gmra.mrb[80].mxu1 %v2808_v57  ;;  %v2745_v21 = vsel %vm2705_vm13, %v2685_v13, %v2725_v52  ;;  %8437 = vmatprep.subr.bf16.mxu1 %v12244_v17  ;;  %v11230_v24 = vsel %vm1108_vm14, %v3068_v0, %v3070_v56  ;;  %v10096_v13 = vld [vmem:[%s10525_s5 + $0x2b0] sm:$0xff]  }
 0x3b1   : > { %v2748_v25 = vsel %vm2708_vm3, %v2688_v31, %v2728_v19  ;;  %v2667_v10 = vmul.f32 %v8391_v59, %v11086_v30  ;;  %8630 = vmatmul.mubr.bf16.gmra.mrb[4].mxu0 %v11189_v38  ;;  %v2610_v9 = vpop.f32.mrb[69].mxu1  ;;  %8421 = vmatprep.mubr.msk.bf16.mxu1 %vm10382_vm0, %v12244_v17  ;;  %v3963_v29 = vrot.slane %v11125_v12, 5  ;;  %v11238_v7 = vsel %vm1540_vm15, %v3226_v27, %v11215_v26 }
 0x3b2   : > { %v11197_v58 = vpack.c.bf16 %v2748_v25, %v2747_v50  ;;  %v2746_v23 = vsel %vm2706_vm4, %v2686_v47, %v2726_v18  ;;  %v2665_v41 = vmul.f32 %v11086_v30, %v2610_v9  ;;  %v8392_v55 = vpop.f32.mrb[70].mxu1  ;;  %8650 = vmatpush3.bf16.msra.mxu0 %v10090_v40  ;;  %8633 = vmatprep.mubr.msk.bf16.mxu0 %vm10382_vm0, %v12244_v17  ;;  %v3221_v0 = vrot.slane %v11102_v16, 3  ;;  %v10098_v50 = vld [vmem:[%s10525_s5 + $0x2b8] sm:$0xff]   ;;  %v10099_v18 = vld [vmem:[%s10525_s5 + $0x470] sm:$0xff]  }
 0x3b3   : > { %v11203_v62 = vpack.c.bf16 %v2746_v23, %v2745_v21  ;;  %v2691_v36 = vadd.f32 %v11088_v34, %v2667_v10  ;;  %v2668_v3 = vmul.f32 %v8392_v55, %v11086_v30  ;;  %v2613_v5 = vpop.f32.mrb[71].mxu1  ;;  %8651 = vmatprep.subr.bf16.mxu0 %v12244_v17  ;;  %8438 = vmatpush3.bf16.msra.mxu1 %v10093_v2  ;;  %v11261_v47 = vrot.slane %v11156_v35, 3  ;;  %v10100_v10 = vld [vmem:[%s10525_s5 + $0x478] sm:$0xff]   ;;  %v10102_v2 = vld [vmem:[%s10525_s5 + $0x300] sm:$0xff]  }
 0x3b4   : > { %v2689_v15 = vadd.f32 %v11088_v34, %v2665_v41  ;;  %v2666_v20 = vmul.f32 %v11086_v30, %v2613_v5  ;;  %8439 = vmatprep.subr.bf16.mxu1 %v12244_v17  ;;  %v10094_v30 = vld [vmem:[%s10525_s5 + $0x460] sm:$0xff]   ;;  %v11247_v39 = vsel %vm2202_vm2, %v3962_v8, %v3963_v29  ;;  %v11267_v40 = vsel %vm1540_vm15, %v3221_v0, %v3222_v44  ;;  %v10103_v41 = vld [vmem:[%s10525_s5 + $0x308] sm:$0xff]  }
 0x3b5   : > { %v2731_v63 = vmul.f32 0.1, %v2691_v36  ;;  %v2692_v51 = vadd.f32 %v11088_v34, %v2668_v3  ;;  %vm2711_vm7 = vcmp.gt.f32.partialorder %v2691_v36, 0.0  ;;  %v4116_v19 = vrot.slane %v11099_v22, 6  ;;  %v10101_v55 = vld [vmem:[%s10525_s5 + $0x480] sm:$0xff]   ;;  %v10113_v8 = vld [vmem:[%s10525_s5 + $0x4a8] sm:$0xff]  }
 0x3b6   : > { %v2729_v4 = vmul.f32 0.1, %v2689_v15  ;;  %v2690_v45 = vadd.f32 %v11088_v34, %v2666_v20  ;;  %8652 = vmatpush3.bf16.msra.mxu0 %v10092_v61  ;;  %vm2709_vm8 = vcmp.gt.f32.partialorder %v2689_v15, 0.0  ;;  %v4117_v57 = vrot.slane %v11125_v12, 6  ;;  %v10105_v61 = vld [vmem:[%s10525_s5 + $0x310] sm:$0xff]   ;;  %v10109_v5 = vld [vmem:[%s10525_s5 + $0x320] sm:$0xff]  }
 0x3b7   : > { %vm2712_vm9 = vcmp.gt.f32.partialorder %v2692_v51, 0.0  ;;  %v2732_v49 = vmul.f32 0.1, %v2692_v51  ;;  %8653 = vmatprep.subr.bf16.mxu0 %v12244_v17  ;;  %v2751_v37 = vsel %vm2711_vm7, %v2691_v36, %v2731_v63  ;;  %8440 = vmatpush3.bf16.msra.mxu1 %v10095_v1  ;;  %v3375_v21 = vrot.slane %v11102_v16, 4  ;;  %v10107_v36 = vld [vmem:[%s10525_s5 + $0x318] sm:$0xff]   ;;  %v10111_v63 = vld [vmem:[%s10525_s5 + $0x328] sm:$0xff]  }
 0x3b8   : > { %vm2710_vm10 = vcmp.gt.f32.partialorder %v2690_v45, 0.0  ;;  %v2730_v34 = vmul.f32 0.1, %v2690_v45  ;;  %8422 = vmatmul.mubr.bf16.gmra.mrb[84].mxu1 %v2810_v33  ;;  %v2749_v46 = vsel %vm2709_vm8, %v2689_v15, %v2729_v4  ;;  %8441 = vmatprep.subr.bf16.mxu1 %v12244_v17  ;;  %v11277_v59 = vsel %vm2432_vm6, %v4116_v19, %v4117_v57  ;;  %v10108_v20 = vld [vmem:[%s10525_s5 + $0x498] sm:$0xff]   ;;  %v10112_v33 = vld [vmem:[%s10525_s5 + $0x330] sm:$0xff]   ;;  %v10118_v0 = vld [vmem:[%s10525_s5 + $0x340] sm:$0xff]  }
 0x3b9   : > { %v2752_v60 = vsel %vm2712_vm9, %v2692_v51, %v2732_v49  ;;  %8634 = vmatmul.mubr.bf16.gmra.mrb[8].mxu0 %v11238_v7  ;;  %8425 = vmatprep.mubr.msk.bf16.mxu1 %vm10382_vm0, %v12244_v17  ;;  %v3675_v44 = vsel %vm1540_vm15, %v11215_v26, %v11261_v47  ;;  %v11288_v25 = vsel %vm1770_vm1, %v3375_v21, %v3376_v11  ;;  %v4714_v9 = vrot.slane %v11197_v58, 7  ;;  %v10110_v51 = vld [vmem:[%s10525_s5 + $0x4a0] sm:$0xff]   ;;  %v10114_v4 = vld [vmem:[%s10525_s5 + $0x338] sm:$0xff]  }
 0x3ba   : > { %v11250_v31 = vpack.c.bf16 %v2752_v60, %v2751_v37  ;;  %v2750_v27 = vsel %vm2710_vm10, %v2690_v45, %v2730_v34  ;;  %8654 = vmatpush3.bf16.msra.mxu0 %v10094_v30  ;;  %8637 = vmatprep.mubr.msk.bf16.mxu0 %vm10382_vm0, %v12244_v17  ;;  %vm4704_vm11 = vcmask 1040384   ;;  %v3380_v3 = vrot.slane %v11121_v28, 4  ;;  %v10115_v30 = vld [vmem:[%s10525_s5 + $0x4b0] sm:$0xff]   ;;  %v10116_v34 = vld [vmem:[%s10525_s5 + $0x4b8] sm:$0xff]   ;;  %v10119_v37 = vld [vmem:[%s10525_s5 + $0x348] sm:$0xff]  }
 0x3bb   : > { %v11255_v52 = vpack.c.bf16 %v2750_v27, %v2749_v46  ;;  %8655 = vmatprep.subr.bf16.mxu0 %v12244_v17  ;;  %8442 = vmatpush3.bf16.msra.mxu1 %v10096_v13  ;;  %v11368_v45 = vrot.slane %v11156_v35, 4  ;;  %v10117_v60 = vld [vmem:[%s10525_s5 + $0x4c0] sm:$0xff]   ;;  %v10121_v13 = vld [vmem:[%s10525_s5 + $0x350] sm:$0xff]   ;;  %v3072_v46 = vrot.slane %v11121_v28, 2  ;;  %v10123_v27 = vld [vmem:[%s10525_s5 + $0x358] sm:$0xff]   ;;  %v11435_v21 = vrot.slane %v11163_v14, 2 }
 0x3bc   : > { %8443 = vmatprep.subr.bf16.mxu1 %v12244_v17  ;;  %v11335_v15 = vsel %vm1770_vm1, %v3378_v43, %v3380_v3  ;;  %v11347_v43 = vrot.slane %v11163_v14, 4 }
 0x3bd   : > { %v5146_v11 = vrot.slane %v11255_v52, 7  ;;  %v11416_v19 = vsel %vm1108_vm14, %v3070_v56, %v3072_v46  ;;  %v10124_v56 = vld [vmem:[%s10525_s5 + $0x4d8] sm:$0xff]  }
 0x3be   : > { %8656 = vmatpush3.bf16.msra.mxu0 %v10097_v42  ;;  %v11356_v1 = vsel %vm1770_vm1, %v3380_v3, %v11347_v43  ;;  %v11377_v49 = vsel %vm1770_vm1, %v11347_v43, %v11368_v45  ;;  %v3965_v42 = vrot.slane %v11121_v28, 5 }
 0x3bf   : > { %8657 = vmatprep.subr.bf16.mxu0 %v12244_v17  ;;  %8444 = vmatpush3.bf16.msra.mxu1 %v10098_v50  ;;  %v11304_v23 = vsel %vm4704_vm11, %v4714_v9, %v5146_v11  ;;  %v10125_v50 = vld [vmem:[%s10525_s5 + $0x360] sm:$0xff]   ;;  %v11443_v11 = vsel %vm1108_vm14, %v3072_v46, %v11435_v21 }
 0x3c0   : > { %8426 = vmatmul.mubr.bf16.gmra.mrb[88].mxu1 %v11194_v53  ;;  %8465 = vmatprep.subr.bf16.mxu1 %v12244_v17 }
 0x3c1   : > { %8638 = vmatmul.mubr.bf16.gmra.mrb[12].mxu0 %v3675_v44  ;;  %8445 = vmatprep.mubr.msk.bf16.mxu1 %vm10382_vm0, %v12244_v17  ;;  %v3967_v44 = vrot.slane %v11163_v14, 5 }
 0x3c2   : > { %8658 = vmatpush3.bf16.msra.mxu0 %v10099_v18  ;;  %8641 = vmatprep.mubr.msk.bf16.mxu0 %vm10382_vm0, %v12244_v17  ;;  %v11424_v18 = vsel %vm2202_vm2, %v3963_v29, %v3965_v42  ;;  %v10127_v29 = vld [vmem:[%s10525_s5 + $0x368] sm:$0xff]  }
 0x3c3   : > { %8659 = vmatprep.subr.bf16.mxu0 %v12244_v17 }
 0x3c6   : > { %8660 = vmatpush3.bf16.msra.mxu0 %v10100_v10  ;;  %v10126_v10 = vld [vmem:[%s10525_s5 + $0x4e0] sm:$0xff]  }
 0x3c7   : > { %8681 = vmatprep.subr.bf16.mxu0 %v12244_v17 }
 0x3c8   : > { %8446 = vmatmul.mubr.bf16.vlgmr.msra.gmra.mrb[72].mxu1 %v11102_v16  ;;  %v10104_v16 = vld [vmem:[%s10525_s5 + $0x488] sm:$0xff]  }
 0x3c9   : > { %8642 = vmatmul.mubr.bf16.gmra.mrb[16].mxu0 %v11261_v47  ;;  %8449 = vmatprep.mubr.msk.bf16.mxu1 %vm10382_vm0, %v12244_v17 }
 0x3ca   : > { %8661 = vmatprep.mubr.msk.bf16.mxu0 %vm10382_vm0, %v12244_v17  ;;  %8466 = vmatpush3.bf16.msra.mxu1 %v10102_v2  ;;  %v10128_v2 = vld [vmem:[%s10525_s5 + $0x370] sm:$0xff]  }
 0x3cb   : > { %8467 = vmatprep.subr.bf16.mxu1 %v12244_v17 }
 0x3ce   : > { %8468 = vmatpush3.bf16.msra.mxu1 %v10103_v41  ;;  %v11449_v41 = vsel %vm2202_vm2, %v3965_v42, %v3967_v44  ;;  %v10151_v42 = vld [vmem:[%s10525_s5 + $0x3c8] sm:$0xff]  }
 0x3cf   : > { %8469 = vmatprep.subr.bf16.mxu1 %v12244_v17 }
 0x3d0   : > { %8450 = vmatmul.mubr.bf16.gmra.mrb[76].mxu1 %v11099_v22  ;;  %v10106_v22 = vld [vmem:[%s10525_s5 + $0x490] sm:$0xff]  }
 0x3d1   : > { %8662 = vmatmul.mubr.bf16.vlgmr.msra.gmra.mrb[0].mxu0 %v11177_v6  ;;  %8453 = vmatprep.mubr.msk.bf16.mxu1 %vm10382_vm0, %v12244_v17 }
 0x3d2   : > { %8682 = vmatpush3.bf16.msra.mxu0 %v10101_v55  ;;  %8665 = vmatprep.mubr.msk.bf16.mxu0 %vm10382_vm0, %v12244_v17  ;;  %v10129_v55 = vld [vmem:[%s10525_s5 + $0x4e8] sm:$0xff]  }
 0x3d3   : > { %8683 = vmatprep.subr.bf16.mxu0 %v12244_v17  ;;  %8470 = vmatpush3.bf16.msra.mxu1 %v10105_v61  ;;  %v10130_v61 = vld [vmem:[%s10525_s5 + $0x378] sm:$0xff]  }
 0x3d4   : > { %8471 = vmatprep.subr.bf16.mxu1 %v12244_v17 }
 0x3d6   : > { %8684 = vmatpush3.bf16.msra.mxu0 %v10104_v16  ;;  %v11461_v16 = vrot.slane %v11156_v35, 5 }
 0x3d7   : > { %8685 = vmatprep.subr.bf16.mxu0 %v12244_v17  ;;  %8472 = vmatpush3.bf16.msra.mxu1 %v10107_v36  ;;  %v10131_v36 = vld [vmem:[%s10525_s5 + $0x4f0] sm:$0xff]  }
 0x3d8   : > { %8454 = vmatmul.mubr.bf16.gmra.mrb[80].mxu1 %v11125_v12  ;;  %8473 = vmatprep.subr.bf16.mxu1 %v12244_v17  ;;  %v11469_v3 = vsel %vm2202_vm2, %v3967_v44, %v11461_v16  ;;  %v10156_v44 = vld [vmem:[%s10525_s5 + $0x558] sm:$0xff]  }
 0x3d9   : > { %8666 = vmatmul.mubr.bf16.gmra.mrb[4].mxu0 %v11335_v15  ;;  %8457 = vmatprep.mubr.msk.bf16.mxu1 %vm10382_vm0, %v12244_v17 }
 0x3da   : > { %8686 = vmatpush3.bf16.msra.mxu0 %v10106_v22  ;;  %8669 = vmatprep.mubr.msk.bf16.mxu0 %vm10382_vm0, %v12244_v17  ;;  %v10132_v22 = vld [vmem:[%s10525_s5 + $0x4f8] sm:$0xff]  }
 0x3db   : > { %8687 = vmatprep.subr.bf16.mxu0 %v12244_v17  ;;  %8474 = vmatpush3.bf16.msra.mxu1 %v10109_v5  ;;  %v10134_v5 = vld [vmem:[%s10525_s5 + $0x380] sm:$0xff]  }
 0x3dc   : > { %8475 = vmatprep.subr.bf16.mxu1 %v12244_v17 }
 0x3de   : > { %8688 = vmatpush3.bf16.msra.mxu0 %v10108_v20  ;;  %v10135_v20 = vld [vmem:[%s10525_s5 + $0x388] sm:$0xff]  }
 0x3df   : > { %8689 = vmatprep.subr.bf16.mxu0 %v12244_v17  ;;  %8476 = vmatpush3.bf16.msra.mxu1 %v10111_v63  ;;  %v10133_v63 = vld [vmem:[%s10525_s5 + $0x500] sm:$0xff]  }
 0x3e0   : > { %8458 = vmatmul.mubr.bf16.gmra.mrb[84].mxu1 %v11121_v28  ;;  %8477 = vmatprep.subr.bf16.mxu1 %v12244_v17 }
 0x3e1   : > { %8670 = vmatmul.mubr.bf16.gmra.mrb[8].mxu0 %v11356_v1  ;;  %8461 = vmatprep.mubr.msk.bf16.mxu1 %vm10382_vm0, %v12244_v17 }
 0x3e2   : > { %8690 = vmatpush3.bf16.msra.mxu0 %v10110_v51  ;;  %8673 = vmatprep.mubr.msk.bf16.mxu0 %vm10382_vm0, %v12244_v17  ;;  %v10137_v51 = vld [vmem:[%s10525_s5 + $0x390] sm:$0xff]  }
 0x3e3   : > { %8691 = vmatprep.subr.bf16.mxu0 %v12244_v17  ;;  %8478 = vmatpush3.bf16.msra.mxu1 %v10112_v33  ;;  %v10139_v33 = vld [vmem:[%s10525_s5 + $0x398] sm:$0xff]  }
 0x3e4   : > { %8479 = vmatprep.subr.bf16.mxu1 %v12244_v17 }
 0x3e6   : > { %8692 = vmatpush3.bf16.msra.mxu0 %v10113_v8  ;;  %v4119_v8 = vrot.slane %v11121_v28, 6 }
 0x3e7   : > { %8480 = vmatpush3.bf16.msra.mxu1 %v10114_v4  ;;  %8693 = vmatprep.subr.bf16.mxu0 %v12244_v17 }
 0x3e8   : > { %8462 = vmatmul.mubr.bf16.gmra.mrb[88].mxu1 %v11163_v14  ;;  %8501 = vmatprep.subr.bf16.mxu1 %v12244_v17  ;;  %v11510_v4 = vsel %vm2432_vm6, %v4117_v57, %v4119_v8  ;;  %v4121_v57 = vrot.slane %v11163_v14, 6 }
 0x3e9   : > { %8674 = vmatmul.mubr.bf16.gmra.mrb[12].mxu0 %v11377_v49  ;;  %8481 = vmatprep.mubr.msk.bf16.mxu1 %vm10382_vm0, %v12244_v17 }
 0x3ea   : > { %8694 = vmatpush3.bf16.msra.mxu0 %v10115_v30  ;;  %8677 = vmatprep.mubr.msk.bf16.mxu0 %vm10382_vm0, %v12244_v17  ;;  %v10140_v30 = vld [vmem:[%s10525_s5 + $0x518] sm:$0xff]  }
 0x3eb   : > { %8695 = vmatprep.subr.bf16.mxu0 %v12244_v17 }
 0x3ee   : > { %8696 = vmatpush3.bf16.msra.mxu0 %v10116_v34  ;;  %v10142_v34 = vld [vmem:[%s10525_s5 + $0x520] sm:$0xff]  }
 0x3ef   : > { %8717 = vmatprep.subr.bf16.mxu0 %v12244_v17 }
 0x3f0   : > { %8482 = vmatmul.mubr.bf16.vlgmr.msra.gmra.mrb[72].mxu1 %v11132_v54  ;;  %v10120_v54 = vld [vmem:[%s10525_s5 + $0x4c8] sm:$0xff]  }
 0x3f1   : > { %8678 = vmatmul.mubr.bf16.gmra.mrb[16].mxu0 %v11368_v45  ;;  %8485 = vmatprep.mubr.msk.bf16.mxu1 %vm10382_vm0, %v12244_v17 }
 0x3f2   : > { %8697 = vmatprep.mubr.msk.bf16.mxu0 %vm10382_vm0, %v12244_v17  ;;  %8502 = vmatpush3.bf16.msra.mxu1 %v10118_v0  ;;  %v10144_v0 = vld [vmem:[%s10525_s5 + $0x3b0] sm:$0xff]  }
 0x3f3   : > { %8503 = vmatprep.subr.bf16.mxu1 %v12244_v17 }
 0x3f6   : > { %8504 = vmatpush3.bf16.msra.mxu1 %v10119_v37  ;;  %v11528_v37 = vsel %vm2432_vm6, %v4119_v8, %v4121_v57  ;;  %v11676_v8 = vld [vmem:[%s10525_s5 + $0x8b0] sm:$0xff]  }
 0x3f7   : > { %8505 = vmatprep.subr.bf16.mxu1 %v12244_v17 }
 0x3f8   : > { %8486 = vmatmul.mubr.bf16.gmra.mrb[76].mxu1 %v11230_v24 }
 0x3f9   : > { %8698 = vmatmul.mubr.bf16.vlgmr.msra.gmra.mrb[0].mxu0 %v11247_v39  ;;  %8489 = vmatprep.mubr.msk.bf16.mxu1 %vm10382_vm0, %v12244_v17  ;;  %v10122_v39 = vld [vmem:[%s10525_s5 + $0x4d0] sm:$0xff]  }
 0x3fa   : > { %8718 = vmatpush3.bf16.msra.mxu0 %v10117_v60  ;;  %8701 = vmatprep.mubr.msk.bf16.mxu0 %vm10382_vm0, %v12244_v17  ;;  %v10145_v60 = vld [vmem:[%s10525_s5 + $0x528] sm:$0xff]  }
 0x3fb   : > { %8719 = vmatprep.subr.bf16.mxu0 %v12244_v17  ;;  %8506 = vmatpush3.bf16.msra.mxu1 %v10121_v13  ;;  %v11540_v13 = vrot.slane %v11156_v35, 6 }
 0x3fc   : > { %8507 = vmatprep.subr.bf16.mxu1 %v12244_v17 }
 0x3fd   : > { %v11548_v46 = vsel %vm2432_vm6, %v4121_v57, %v11540_v13  ;;  %v6314_v57 = vrot.slane %v11197_v58, 4 }
 0x3fe   : > { %8720 = vmatpush3.bf16.msra.mxu0 %v10120_v54  ;;  %v10147_v54 = vld [vmem:[%s10525_s5 + $0x530] sm:$0xff]  }
 0x3ff   : > { %8721 = vmatprep.subr.bf16.mxu0 %v12244_v17  ;;  %8508 = vmatpush3.bf16.msra.mxu1 %v10123_v27  ;;  %v10148_v27 = vld [vmem:[%s10525_s5 + $0x538] sm:$0xff]  }
 0x400   : > { %8490 = vmatmul.mubr.bf16.gmra.mrb[80].mxu1 %v11416_v19  ;;  %8509 = vmatprep.subr.bf16.mxu1 %v12244_v17 }
 0x401   : > { %8702 = vmatmul.mubr.bf16.gmra.mrb[4].mxu0 %v11424_v18  ;;  %8493 = vmatprep.mubr.msk.bf16.mxu1 %vm10382_vm0, %v12244_v17 }
 0x402   : > { %8722 = vmatpush3.bf16.msra.mxu0 %v10122_v39  ;;  %8705 = vmatprep.mubr.msk.bf16.mxu0 %vm10382_vm0, %v12244_v17  ;;  %v10149_v39 = vld [vmem:[%s10525_s5 + $0x540] sm:$0xff]  }
 0x403   : > { %8723 = vmatprep.subr.bf16.mxu0 %v12244_v17  ;;  %8510 = vmatpush3.bf16.msra.mxu1 %v10125_v50  ;;  %v10152_v50 = vld [vmem:[%s10525_s5 + $0x548] sm:$0xff]  }
 0x404   : > { %8511 = vmatprep.subr.bf16.mxu1 %v12244_v17 }
 0x406   : > { %8724 = vmatpush3.bf16.msra.mxu0 %v10124_v56  ;;  %v10155_v56 = vld [vmem:[%s10525_s5 + $0x3d8] sm:$0xff]  }
 0x407   : > { %8725 = vmatprep.subr.bf16.mxu0 %v12244_v17  ;;  %8512 = vmatpush3.bf16.msra.mxu1 %v10127_v29  ;;  %v10157_v29 = vld [vmem:[%s10525_s5 + $0x3e0] sm:$0xff]  }
 0x408   : > { %8494 = vmatmul.mubr.bf16.gmra.mrb[84].mxu1 %v11443_v11  ;;  %8513 = vmatprep.subr.bf16.mxu1 %v12244_v17 }
 0x409   : > { %8706 = vmatmul.mubr.bf16.gmra.mrb[8].mxu0 %v11449_v41  ;;  %8497 = vmatprep.mubr.msk.bf16.mxu1 %vm10382_vm0, %v12244_v17 }
 0x40a   : > { %8726 = vmatpush3.bf16.msra.mxu0 %v10126_v10  ;;  %8709 = vmatprep.mubr.msk.bf16.mxu0 %vm10382_vm0, %v12244_v17  ;;  %v10159_v10 = vld [vmem:[%s10525_s5 + $0x3e8] sm:$0xff]  }
 0x40b   : > { %8727 = vmatprep.subr.bf16.mxu0 %v12244_v17  ;;  %8514 = vmatpush3.bf16.msra.mxu1 %v10128_v2  ;;  %v10160_v2 = vld [vmem:[%s10525_s5 + $0x3f0] sm:$0xff]  }
 0x40c   : > { %8515 = vmatprep.subr.bf16.mxu1 %v12244_v17 }
 0x40e   : > { %8728 = vmatpush3.bf16.msra.mxu0 %v10129_v55  ;;  %v10161_v55 = vld [vmem:[%s10525_s5 + $0x568] sm:$0xff]  }
 0x40f   : > { %8516 = vmatpush3.bf16.msra.mxu1 %v10130_v61  ;;  %8729 = vmatprep.subr.bf16.mxu0 %v12244_v17  ;;  %v10162_v61 = vld [vmem:[%s10525_s5 + $0x3f8] sm:$0xff]  }
 0x410   : > { %8498 = vmatmul.mubr.bf16.gmra.mrb[88].mxu1 %v11435_v21  ;;  %8537 = vmatprep.subr.bf16.mxu1 %v12244_v17 }
 0x411   : > { %8710 = vmatmul.mubr.bf16.gmra.mrb[12].mxu0 %v11469_v3  ;;  %8517 = vmatprep.mubr.msk.bf16.mxu1 %vm10382_vm0, %v12244_v17 }
 0x412   : > { %8730 = vmatpush3.bf16.msra.mxu0 %v10131_v36  ;;  %8713 = vmatprep.mubr.msk.bf16.mxu0 %vm10382_vm0, %v12244_v17  ;;  %v11609_v36 = vrot.slane %v11203_v62, 4 }
 0x413   : > { %8731 = vmatprep.subr.bf16.mxu0 %v12244_v17 }
 0x416   : > { %8732 = vmatpush3.bf16.msra.mxu0 %v10132_v22  ;;  %v10168_v22 = vld [vmem:[%s10525_s5 + $0x888] sm:$0xff]  }
 0x417   : > { %8753 = vmatprep.subr.bf16.mxu0 %v12244_v17 }
 0x418   : > { %8518 = vmatmul.mubr.bf16.vlgmr.msra.gmra.mrb[72].mxu1 %v11267_v40  ;;  %v10136_v40 = vld [vmem:[%s10525_s5 + $0x508] sm:$0xff]  }
 0x419   : > { %8714 = vmatmul.mubr.bf16.gmra.mrb[16].mxu0 %v11461_v16  ;;  %8521 = vmatprep.mubr.msk.bf16.mxu1 %vm10382_vm0, %v12244_v17 }
 0x41a   : > { %8733 = vmatprep.mubr.msk.bf16.mxu0 %vm10382_vm0, %v12244_v17  ;;  %8538 = vmatpush3.bf16.msra.mxu1 %v10134_v5  ;;  %v10165_v5 = vld [vmem:[%s10525_s5 + $0x580] sm:$0xff]  }
 0x41b   : > { %8539 = vmatprep.subr.bf16.mxu1 %v12244_v17 }
 0x41e   : > { %8540 = vmatpush3.bf16.msra.mxu1 %v10135_v20  ;;  %v10167_v20 = vld [vmem:[%s10525_s5 + $0x588] sm:$0xff]  }
 0x41f   : > { %8541 = vmatprep.subr.bf16.mxu1 %v12244_v17 }
 0x420   : > { %8522 = vmatmul.mubr.bf16.gmra.mrb[76].mxu1 %v11147_v48  ;;  %v10138_v48 = vld [vmem:[%s10525_s5 + $0x510] sm:$0xff]  }
 0x421   : > { %8734 = vmatmul.mubr.bf16.vlgmr.msra.gmra.mrb[0].mxu0 %v11277_v59  ;;  %8525 = vmatprep.mubr.msk.bf16.mxu1 %vm10382_vm0, %v12244_v17  ;;  %v10141_v59 = vld [vmem:[%s10525_s5 + $0x3a0] sm:$0xff]  }
 0x422   : > { %8754 = vmatpush3.bf16.msra.mxu0 %v10133_v63  ;;  %8737 = vmatprep.mubr.msk.bf16.mxu0 %vm10382_vm0, %v12244_v17  ;;  %v10171_v63 = vld [vmem:[%s10525_s5 + $0x898] sm:$0xff]  }
 0x423   : > { %8755 = vmatprep.subr.bf16.mxu0 %v12244_v17  ;;  %8542 = vmatpush3.bf16.msra.mxu1 %v10137_v51  ;;  %v10172_v51 = vld [vmem:[%s10525_s5 + $0x598] sm:$0xff]  }
 0x424   : > { %8543 = vmatprep.subr.bf16.mxu1 %v12244_v17 }
 0x426   : > { %8756 = vmatpush3.bf16.msra.mxu0 %v10136_v40  ;;  %v11664_v40 = vrot.slane %v11156_v35, 2 }
 0x427   : > { %8757 = vmatprep.subr.bf16.mxu0 %v12244_v17  ;;  %8544 = vmatpush3.bf16.msra.mxu1 %v10139_v33 }
 0x428   : > { %8526 = vmatmul.mubr.bf16.gmra.mrb[80].mxu1 %v11189_v38  ;;  %8545 = vmatprep.subr.bf16.mxu1 %v12244_v17  ;;  %v10143_v38 = vld [vmem:[%s10525_s5 + $0x3a8] sm:$0xff]   ;;  %v11672_v33 = vsel %vm1108_vm14, %v11435_v21, %v11664_v40 }
 0x429   : > { %8738 = vmatmul.mubr.bf16.gmra.mrb[4].mxu0 %v11510_v4  ;;  %8529 = vmatprep.mubr.msk.bf16.mxu1 %vm10382_vm0, %v12244_v17  ;;  %v10176_v21 = vld [vmem:[%s10525_s5 + $0x5a8] sm:$0xff]  }
 0x42a   : > { %8758 = vmatpush3.bf16.msra.mxu0 %v10138_v48  ;;  %8741 = vmatprep.mubr.msk.bf16.mxu0 %vm10382_vm0, %v12244_v17  ;;  %v11689_v48 = vld [vmem:[%s10525_s5 + $0x8b8] sm:$0xff]  }
 0x42b   : > { %8759 = vmatprep.subr.bf16.mxu0 %v12244_v17  ;;  %8546 = vmatpush3.bf16.msra.mxu1 %v10141_v59  ;;  %v4415_v59 = vrot.slane %v11203_v62, 5 }
 0x42c   : > { %8547 = vmatprep.subr.bf16.mxu1 %v12244_v17 }
 0x42e   : > { %8760 = vmatpush3.bf16.msra.mxu0 %v10140_v30  ;;  %v4416_v30 = vsel %vm2202_vm2, %v11461_v16, %v4415_v59  ;;  %v6316_v16 = vrot.slane %v11255_v52, 4 }
 0x42f   : > { %8761 = vmatprep.subr.bf16.mxu0 %v12244_v17  ;;  %8548 = vmatpush3.bf16.msra.mxu1 %v10143_v38  ;;  %v10180_v38 = vld [vmem:[%s10525_s5 + $0x5b8] sm:$0xff]  }
 0x430   : > { %8530 = vmatmul.mubr.bf16.gmra.mrb[84].mxu1 %v11238_v7  ;;  %8549 = vmatprep.subr.bf16.mxu1 %v12244_v17  ;;  %v10146_v7 = vld [vmem:[%s10525_s5 + $0x3b8] sm:$0xff]  }
 0x431   : > { %8742 = vmatmul.mubr.bf16.gmra.mrb[8].mxu0 %v11528_v37  ;;  %8533 = vmatprep.mubr.msk.bf16.mxu1 %vm10382_vm0, %v12244_v17 }
 0x432   : > { %8762 = vmatpush3.bf16.msra.mxu0 %v10142_v34  ;;  %8745 = vmatprep.mubr.msk.bf16.mxu0 %vm10382_vm0, %v12244_v17  ;;  %v6315_v34 = vsel %vm1770_vm1, %v11609_v36, %v6314_v57 }
 0x433   : > { %8763 = vmatprep.subr.bf16.mxu0 %v12244_v17  ;;  %8550 = vmatpush3.bf16.msra.mxu1 %v10144_v0  ;;  %v10181_v0 = vld [vmem:[%s10525_s5 + $0x5c0] sm:$0xff]  }
 0x434   : > { %8551 = vmatprep.subr.bf16.mxu1 %v12244_v17 }
 0x436   : > { %8764 = vmatpush3.bf16.msra.mxu0 %v10145_v60  ;;  %v6317_v60 = vsel %vm1770_vm1, %v6314_v57, %v6316_v16  ;;  %v10210_v57 = vld [vmem:[%s10525_s5 + $0x6a8] sm:$0xff]  }
 0x437   : > { %8552 = vmatpush3.bf16.msra.mxu1 %v10146_v7  ;;  %8765 = vmatprep.subr.bf16.mxu0 %v12244_v17  ;;  %v10182_v7 = vld [vmem:[%s10525_s5 + $0x5c8] sm:$0xff]  }
 0x438   : > { %8534 = vmatmul.mubr.bf16.gmra.mrb[88].mxu1 %v11215_v26  ;;  %8573 = vmatprep.subr.bf16.mxu1 %v12244_v17  ;;  %v10150_v26 = vld [vmem:[%s10525_s5 + $0x3c0] sm:$0xff]  }
 0x439   : > { %8746 = vmatmul.mubr.bf16.gmra.mrb[12].mxu0 %v11548_v46  ;;  %8553 = vmatprep.mubr.msk.bf16.mxu1 %vm10382_vm0, %v12244_v17 }
 0x43a   : > { %8766 = vmatpush3.bf16.msra.mxu0 %v10147_v54  ;;  %8749 = vmatprep.mubr.msk.bf16.mxu0 %vm10382_vm0, %v12244_v17  ;;  %v6318_v54 = vrot.slane %v11250_v31, 4 }
 0x43b   : > { %8767 = vmatprep.subr.bf16.mxu0 %v12244_v17 }
 0x43e   : > { %8768 = vmatpush3.bf16.msra.mxu0 %v10148_v27  ;;  %v10183_v27 = vld [vmem:[%s10525_s5 + $0x5d0] sm:$0xff]  }
 0x43f   : > { %8789 = vmatprep.subr.bf16.mxu0 %v12244_v17 }
 0x440   : > { %8554 = vmatmul.mubr.bf16.vlgmr.msra.gmra.mrb[72].mxu1 %v11288_v25  ;;  %v10153_v25 = vld [vmem:[%s10525_s5 + $0x3d0] sm:$0xff]  }
 0x441   : > { %8750 = vmatmul.mubr.bf16.gmra.mrb[16].mxu0 %v11540_v13  ;;  %8557 = vmatprep.mubr.msk.bf16.mxu1 %vm10382_vm0, %v12244_v17 }
 0x442   : > { %8769 = vmatprep.mubr.msk.bf16.mxu0 %vm10382_vm0, %v12244_v17  ;;  %8574 = vmatpush3.bf16.msra.mxu1 %v10150_v26  ;;  %v6319_v26 = vsel %vm1770_vm1, %v6316_v16, %v6318_v54 }
 0x443   : > { %8575 = vmatprep.subr.bf16.mxu1 %v12244_v17 }
 0x446   : > { %8576 = vmatpush3.bf16.msra.mxu1 %v10151_v42  ;;  %v10185_v42 = vld [vmem:[%s10525_s5 + $0x5e0] sm:$0xff]  }
 0x447   : > { %8577 = vmatprep.subr.bf16.mxu1 %v12244_v17 }
 0x448   : > { %8558 = vmatmul.mubr.bf16.gmra.mrb[76].mxu1 %v11177_v6  ;;  %v10154_v6 = vld [vmem:[%s10525_s5 + $0x550] sm:$0xff]  }
 0x449   : > { %8770 = vmatmul.mubr.bf16.vlgmr.msra.gmra.mrb[0].mxu0 %v11335_v15  ;;  %8561 = vmatprep.mubr.msk.bf16.mxu1 %vm10382_vm0, %v12244_v17 }
 0x44a   : > { %8790 = vmatpush3.bf16.msra.mxu0 %v10149_v39  ;;  %8773 = vmatprep.mubr.msk.bf16.mxu0 %vm10382_vm0, %v12244_v17  ;;  %v10186_v39 = vld [vmem:[%s10525_s5 + $0x5e8] sm:$0xff]  }
 0x44b   : > { %8791 = vmatprep.subr.bf16.mxu0 %v12244_v17  ;;  %8578 = vmatpush3.bf16.msra.mxu1 %v10153_v25  ;;  %v11742_v25 = vrot.slane %v11203_v62, 6 }
 0x44c   : > { %8579 = vmatprep.subr.bf16.mxu1 %v12244_v17 }
 0x44e   : > { %8792 = vmatpush3.bf16.msra.mxu0 %v10152_v50  ;;  %v10187_v50 = vld [vmem:[%s10525_s5 + $0x5f0] sm:$0xff]  }
 0x44f   : > { %8793 = vmatprep.subr.bf16.mxu0 %v12244_v17  ;;  %8580 = vmatpush3.bf16.msra.mxu1 %v10155_v56  ;;  %v11749_v56 = vsel %vm2432_vm6, %v11540_v13, %v11742_v25  ;;  %v4705_v13 = vrot.slane %v11125_v12, 7 }
 0x450   : > { %8562 = vmatmul.mubr.bf16.gmra.mrb[80].mxu1 %v11335_v15  ;;  %8581 = vmatprep.subr.bf16.mxu1 %v12244_v17  ;;  %v10158_v15 = vld [vmem:[%s10525_s5 + $0x560] sm:$0xff]  }
 0x451   : > { %8774 = vmatmul.mubr.bf16.gmra.mrb[4].mxu0 %v11356_v1  ;;  %8565 = vmatprep.mubr.msk.bf16.mxu1 %vm10382_vm0, %v12244_v17 }
 0x452   : > { %8794 = vmatpush3.bf16.msra.mxu0 %v10154_v6  ;;  %8777 = vmatprep.mubr.msk.bf16.mxu0 %vm10382_vm0, %v12244_v17  ;;  %v10188_v6 = vld [vmem:[%s10525_s5 + $0x5f8] sm:$0xff]  }
 0x453   : > { %8795 = vmatprep.subr.bf16.mxu0 %v12244_v17  ;;  %8582 = vmatpush3.bf16.msra.mxu1 %v10157_v29  ;;  %v4706_v29 = vrot.slane %v11121_v28, 7 }
 0x454   : > { %8583 = vmatprep.subr.bf16.mxu1 %v12244_v17 }
 0x456   : > { %8796 = vmatpush3.bf16.msra.mxu0 %v10156_v44  ;;  %v10189_v44 = vld [vmem:[%s10525_s5 + $0x600] sm:$0xff]  }
 0x457   : > { %8797 = vmatprep.subr.bf16.mxu0 %v12244_v17  ;;  %8584 = vmatpush3.bf16.msra.mxu1 %v10159_v10  ;;  %v4707_v10 = vsel %vm4704_vm11, %v4705_v13, %v4706_v29  ;;  %v10217_v13 = vld [vmem:[%s10525_s5 + $0x6e0] sm:$0xff]  }
 0x458   : > { %8566 = vmatmul.mubr.bf16.gmra.mrb[84].mxu1 %v11356_v1  ;;  %8585 = vmatprep.subr.bf16.mxu1 %v12244_v17  ;;  %v10163_v1 = vld [vmem:[%s10525_s5 + $0x570] sm:$0xff]  }
 0x459   : > { %8778 = vmatmul.mubr.bf16.gmra.mrb[8].mxu0 %v11377_v49  ;;  %8569 = vmatprep.mubr.msk.bf16.mxu1 %vm10382_vm0, %v12244_v17  ;;  %v11618_v49 = vsel %vm1770_vm1, %v11368_v45, %v11609_v36  ;;  %v10166_v45 = vld [vmem:[%s10525_s5 + $0x880] sm:$0xff]  }
 0x45a   : > { %8798 = vmatpush3.bf16.msra.mxu0 %v10158_v15  ;;  %8781 = vmatprep.mubr.msk.bf16.mxu0 %vm10382_vm0, %v12244_v17  ;;  %v10190_v15 = vld [vmem:[%s10525_s5 + $0x608] sm:$0xff]  }
 0x45b   : > { %8799 = vmatprep.subr.bf16.mxu0 %v12244_v17  ;;  %8586 = vmatpush3.bf16.msra.mxu1 %v10160_v2  ;;  %v4708_v2 = vrot.slane %v11163_v14, 7 }
 0x45c   : > { %8587 = vmatprep.subr.bf16.mxu1 %v12244_v17 }
 0x45d   : > { %v11772_v12 = vsel %vm4704_vm11, %v4706_v29, %v4708_v2  ;;  %v10218_v29 = vld [vmem:[%s10525_s5 + $0x6e8] sm:$0xff]  }
 0x45e   : > { %8800 = vmatpush3.bf16.msra.mxu0 %v10161_v55  ;;  %v10191_v55 = vld [vmem:[%s10525_s5 + $0x610] sm:$0xff]  }
 0x45f   : > { %8588 = vmatpush3.bf16.msra.mxu1 %v10162_v61  ;;  %8801 = vmatprep.subr.bf16.mxu0 %v12244_v17  ;;  %v10192_v61 = vld [vmem:[%s10525_s5 + $0x618] sm:$0xff]  }
 0x460   : > { %8570 = vmatmul.mubr.bf16.gmra.mrb[88].mxu1 %v11347_v43  ;;  %9293 = vmatprep.subr.bf16.mxu1 %v12244_v17  ;;  %v10164_v43 = vld [vmem:[%s10525_s5 + $0x578] sm:$0xff]  }
 0x461   : > { %8782 = vmatmul.mubr.bf16.gmra.mrb[12].mxu0 %v11618_v49  ;;  %8589 = vmatprep.mubr.msk.bf16.mxu1 %vm10382_vm0, %v12244_v17 }
 0x462   : > { %8802 = vmatpush3.bf16.msra.mxu0 %v10163_v1  ;;  %8785 = vmatprep.mubr.msk.bf16.mxu0 %vm10382_vm0, %v12244_v17  ;;  %v10193_v1 = vld [vmem:[%s10525_s5 + $0x620] sm:$0xff]  }
 0x463   : > { %8803 = vmatprep.subr.bf16.mxu0 %v12244_v17 }
 0x466   : > { %8804 = vmatpush3.bf16.msra.mxu0 %v10164_v43 }
 0x467   : > { %8825 = vmatprep.subr.bf16.mxu0 %v12244_v17 }
 0x468   : > { %8590 = vmatmul.mubr.bf16.vlgmr.msra.gmra.mrb[72].mxu1 %v11230_v24  ;;  %v10169_v24 = vld [vmem:[%s10525_s5 + $0x890] sm:$0xff]  }
 0x469   : > { %8786 = vmatmul.mubr.bf16.gmra.mrb[16].mxu0 %v11609_v36  ;;  %8593 = vmatprep.mubr.msk.bf16.mxu1 %vm10382_vm0, %v12244_v17  ;;  %v4710_v36 = vrot.slane %v11156_v35, 7 }
 0x46a   : > { %8805 = vmatprep.mubr.msk.bf16.mxu0 %vm10382_vm0, %v12244_v17  ;;  %9301 = vmatpush3.bf16.msra.mxu1 %v10166_v45  ;;  %v10194_v45 = vld [vmem:[%s10525_s5 + $0x628] sm:$0xff]  }
 0x46b   : > { %9294 = vmatprep.subr.bf16.mxu1 %v12244_v17  ;;  %v11783_v43 = vsel %vm4704_vm11, %v4708_v2, %v4710_v36 }
 0x46e   : > { %9302 = vmatpush3.bf16.msra.mxu1 %v10168_v22  ;;  %v4712_v22 = vrot.slane %v11203_v62, 7 }
 0x46f   : > { %9295 = vmatprep.subr.bf16.mxu1 %v12244_v17 }
 0x470   : > { %8594 = vmatmul.mubr.bf16.gmra.mrb[76].mxu1 %v11416_v19  ;;  %v10170_v19 = vld [vmem:[%s10525_s5 + $0x590] sm:$0xff]  }
 0x471   : > { %8806 = vmatmul.mubr.bf16.vlgmr.msra.gmra.mrb[0].mxu0 %v11424_v18  ;;  %8597 = vmatprep.mubr.msk.bf16.mxu1 %vm10382_vm0, %v12244_v17  ;;  %v10173_v18 = vld [vmem:[%s10525_s5 + $0x8a0] sm:$0xff]  }
 0x472   : > { %8826 = vmatpush3.bf16.msra.mxu0 %v10165_v5  ;;  %8809 = vmatprep.mubr.msk.bf16.mxu0 %vm10382_vm0, %v12244_v17  ;;  %v10195_v5 = vld [vmem:[%s10525_s5 + $0x630] sm:$0xff]  }
 0x473   : > { %8827 = vmatprep.subr.bf16.mxu0 %v12244_v17  ;;  %9303 = vmatpush3.bf16.msra.mxu1 %v10169_v24  ;;  %v11794_v24 = vsel %vm4704_vm11, %v4710_v36, %v4712_v22 }
 0x474   : > { %9296 = vmatprep.subr.bf16.mxu1 %v12244_v17 }
 0x476   : > { %8828 = vmatpush3.bf16.msra.mxu0 %v10167_v20  ;;  %v10196_v20 = vld [vmem:[%s10525_s5 + $0x638] sm:$0xff]  }
 0x477   : > { %8829 = vmatprep.subr.bf16.mxu0 %v12244_v17  ;;  %9304 = vmatpush3.bf16.msra.mxu1 %v10171_v63  ;;  %v11805_v63 = vsel %vm4704_vm11, %v4712_v22, %v4714_v9  ;;  %v10199_v9 = vld [vmem:[%s10525_s5 + $0x650] sm:$0xff]  }
 0x478   : > { %8598 = vmatmul.mubr.bf16.gmra.mrb[80].mxu1 %v11443_v11  ;;  %9297 = vmatprep.subr.bf16.mxu1 %v12244_v17  ;;  %v10175_v11 = vld [vmem:[%s10525_s5 + $0x8a8] sm:$0xff]  }
 0x479   : > { %8810 = vmatmul.mubr.bf16.gmra.mrb[4].mxu0 %v11449_v41  ;;  %8601 = vmatprep.mubr.msk.bf16.mxu1 %vm10382_vm0, %v12244_v17  ;;  %v10174_v41 = vld [vmem:[%s10525_s5 + $0x5a0] sm:$0xff]  }
 0x47a   : > { %8830 = vmatpush3.bf16.msra.mxu0 %v10170_v19  ;;  %8813 = vmatprep.mubr.msk.bf16.mxu0 %vm10382_vm0, %v12244_v17  ;;  %v10197_v19 = vld [vmem:[%s10525_s5 + $0x640] sm:$0xff]  }
 0x47b   : > { %8831 = vmatprep.subr.bf16.mxu0 %v12244_v17  ;;  %9305 = vmatpush3.bf16.msra.mxu1 %v10173_v18  ;;  %v10198_v18 = vld [vmem:[%s10525_s5 + $0x648] sm:$0xff]  }
 0x47c   : > { %9298 = vmatprep.subr.bf16.mxu1 %v12244_v17 }
 0x47e   : > { %8832 = vmatpush3.bf16.msra.mxu0 %v10172_v51  ;;  %v10201_v51 = vld [vmem:[%s10525_s5 + $0x660] sm:$0xff]  }
 0x47f   : > { %8833 = vmatprep.subr.bf16.mxu0 %v12244_v17  ;;  %9306 = vmatpush3.bf16.msra.mxu1 %v10175_v11  ;;  %v10202_v11 = vld [vmem:[%s10525_s5 + $0x668] sm:$0xff]  }
 0x480   : > { %8602 = vmatmul.mubr.bf16.gmra.mrb[84].mxu1 %v11672_v33  ;;  %9299 = vmatprep.subr.bf16.mxu1 %v12244_v17 }
 0x481   : > { %8814 = vmatmul.mubr.bf16.gmra.mrb[8].mxu0 %v11469_v3  ;;  %8605 = vmatprep.mubr.msk.bf16.mxu1 %vm10382_vm0, %v12244_v17  ;;  %v10179_v3 = vld [vmem:[%s10525_s5 + $0x5b0] sm:$0xff]  }
 0x482   : > { %8834 = vmatpush3.bf16.msra.mxu0 %v10174_v41  ;;  %8817 = vmatprep.mubr.msk.bf16.mxu0 %vm10382_vm0, %v12244_v17  ;;  %v10203_v41 = vld [vmem:[%s10525_s5 + $0x670] sm:$0xff]  }
 0x483   : > { %8835 = vmatprep.subr.bf16.mxu0 %v12244_v17  ;;  %9307 = vmatpush3.bf16.msra.mxu1 %v11676_v8 }
 0x484   : > { %9300 = vmatprep.subr.bf16.mxu1 %v12244_v17 }
 0x486   : > { %8836 = vmatpush3.bf16.msra.mxu0 %v10176_v21  ;;  %v10204_v21 = vld [vmem:[%s10525_s5 + $0x678] sm:$0xff]  }
 0x487   : > { %8837 = vmatprep.subr.bf16.mxu0 %v12244_v17  ;;  %9308 = vmatpush3.bf16.msra.mxu1 %v11689_v48 }
 0x488   : > { %8606 = vmatmul.mubr.bf16.gmra.mrb[88].mxu1 %v11664_v40 }
 0x489   : > { %8818 = vmatmul.mubr.bf16.gmra.mrb[12].mxu0 %v4416_v30  ;;  %9277 = vmatprep.mubr.msk.bf16.mxu1 %vm10382_vm0, %v12244_v17  ;;  %v10207_v30 = vld [vmem:[%s10525_s5 + $0x690] sm:$0xff]  }
 0x48a   : > { %8838 = vmatpush3.bf16.msra.mxu0 %v10179_v3  ;;  %8821 = vmatprep.mubr.msk.bf16.mxu0 %vm10382_vm0, %v12244_v17  ;;  %v10206_v3 = vld [vmem:[%s10525_s5 + $0x688] sm:$0xff]  }
 0x48b   : > { %8839 = vmatprep.subr.bf16.mxu0 %v12244_v17 }
 0x48e   : > { %8840 = vmatpush3.bf16.msra.mxu0 %v10180_v38  ;;  %v10209_v38 = vld [vmem:[%s10525_s5 + $0x6a0] sm:$0xff]  }
 0x48f   : > { %8861 = vmatprep.subr.bf16.mxu0 %v12244_v17 }
 0x490   : > { %9278 = vmatmul.mubr.bf16.vlgmr.msra.gmra.mrb[92].mxu1 %v6315_v34  ;;  %v10211_v34 = vld [vmem:[%s10525_s5 + $0x6b0] sm:$0xff]  }
 0x491   : > { %8822 = vmatmul.mubr.bf16.gmra.mrb[16].mxu0 %v4415_v59  ;;  %9281 = vmatprep.mubr.msk.bf16.mxu1 %vm10382_vm0, %v12244_v17  ;;  %v10205_v59 = vld [vmem:[%s10525_s5 + $0x680] sm:$0xff]  }
 0x492   : > { %8841 = vmatprep.mubr.msk.bf16.mxu0 %vm10382_vm0, %v12244_v17 }
 0x498   : > { %9282 = vmatmul.mubr.bf16.gmra.mrb[96].mxu1 %v6317_v60  ;;  %v10213_v60 = vld [vmem:[%s10525_s5 + $0x6c0] sm:$0xff]  }
 0x499   : > { %8842 = vmatmul.mubr.bf16.vlgmr.msra.gmra.mrb[0].mxu0 %v11510_v4  ;;  %9285 = vmatprep.mubr.msk.bf16.mxu1 %vm10382_vm0, %v12244_v17  ;;  %v10184_v4 = vld [vmem:[%s10525_s5 + $0x5d8] sm:$0xff]  }
 0x49a   : > { %8862 = vmatpush3.bf16.msra.mxu0 %v10181_v0  ;;  %8845 = vmatprep.mubr.msk.bf16.mxu0 %vm10382_vm0, %v12244_v17  ;;  %v10212_v0 = vld [vmem:[%s10525_s5 + $0x6b8] sm:$0xff]  }
 0x49b   : > { %8863 = vmatprep.subr.bf16.mxu0 %v12244_v17 }
 0x49e   : > { %8864 = vmatpush3.bf16.msra.mxu0 %v10182_v7  ;;  %v10214_v7 = vld [vmem:[%s10525_s5 + $0x6c8] sm:$0xff]  }
 0x49f   : > { %8865 = vmatprep.subr.bf16.mxu0 %v12244_v17 }
 0x4a0   : > { %9286 = vmatmul.mubr.bf16.gmra.mrb[100].mxu1 %v6319_v26 }
 0x4a1   : > { %8846 = vmatmul.mubr.bf16.gmra.mrb[4].mxu0 %v11528_v37  ;;  %9289 = vmatprep.mubr.msk.bf16.mxu1 %vm10382_vm0, %v12244_v17 }
 0x4a2   : > { %8866 = vmatpush3.bf16.msra.mxu0 %v10183_v27  ;;  %8849 = vmatprep.mubr.msk.bf16.mxu0 %vm10382_vm0, %v12244_v17 }
 0x4a3   : > { %8867 = vmatprep.subr.bf16.mxu0 %v12244_v17 }
 0x4a6   : > { %8868 = vmatpush3.bf16.msra.mxu0 %v10184_v4 }
 0x4a7   : > { %8869 = vmatprep.subr.bf16.mxu0 %v12244_v17 }
 0x4a8   : > { %9290 = vmatmul.mubr.bf16.gmra.mrb[104].mxu1 %v6318_v54 }
 0x4a9   : > { %8850 = vmatmul.mubr.bf16.gmra.mrb[8].mxu0 %v11548_v46 }
 0x4aa   : > { %8870 = vmatpush3.bf16.msra.mxu0 %v10185_v42  ;;  %8853 = vmatprep.mubr.msk.bf16.mxu0 %vm10382_vm0, %v12244_v17  ;;  %v10215_v42 = vld [vmem:[%s10525_s5 + $0x6d0] sm:$0xff]  }
 0x4ab   : > { %8871 = vmatprep.subr.bf16.mxu0 %v12244_v17 }
 0x4ae   : > { %8872 = vmatpush3.bf16.msra.mxu0 %v10186_v39  ;;  %v10216_v39 = vld [vmem:[%s10525_s5 + $0x6d8] sm:$0xff]  }
 0x4af   : > { %8873 = vmatprep.subr.bf16.mxu0 %v12244_v17 }
 0x4b1   : > { %8854 = vmatmul.mubr.bf16.gmra.mrb[12].mxu0 %v11749_v56 }
 0x4b2   : > { %8874 = vmatpush3.bf16.msra.mxu0 %v10187_v50  ;;  %8857 = vmatprep.mubr.msk.bf16.mxu0 %vm10382_vm0, %v12244_v17 }
 0x4b3   : > { %8875 = vmatprep.subr.bf16.mxu0 %v12244_v17 }
 0x4b6   : > { %8876 = vmatpush3.bf16.msra.mxu0 %v10188_v6 }
 0x4b7   : > { %8897 = vmatprep.subr.bf16.mxu0 %v12244_v17 }
 0x4b9   : > { %8858 = vmatmul.mubr.bf16.gmra.mrb[16].mxu0 %v11742_v25 }
 0x4ba   : > { %8877 = vmatprep.mubr.msk.bf16.mxu0 %vm10382_vm0, %v12244_v17 }
 0x4c1   : > { %8878 = vmatmul.mubr.bf16.vlgmr.msra.gmra.mrb[0].mxu0 %v4707_v10 }
 0x4c2   : > { %8898 = vmatpush3.bf16.msra.mxu0 %v10189_v44  ;;  %8881 = vmatprep.mubr.msk.bf16.mxu0 %vm10382_vm0, %v12244_v17 }
 0x4c3   : > { %8899 = vmatprep.subr.bf16.mxu0 %v12244_v17 }
 0x4c6   : > { %8900 = vmatpush3.bf16.msra.mxu0 %v10190_v15 }
 0x4c7   : > { %8901 = vmatprep.subr.bf16.mxu0 %v12244_v17 }
 0x4c9   : > { %8882 = vmatmul.mubr.bf16.gmra.mrb[4].mxu0 %v11772_v12 }
 0x4ca   : > { %8902 = vmatpush3.bf16.msra.mxu0 %v10191_v55  ;;  %8885 = vmatprep.mubr.msk.bf16.mxu0 %vm10382_vm0, %v12244_v17  ;;  %v10219_v55 = vld [vmem:[%s10525_s5 + $0x6f0] sm:$0xff]  }
 0x4cb   : > { %8903 = vmatprep.subr.bf16.mxu0 %v12244_v17 }
 0x4ce   : > { %8904 = vmatpush3.bf16.msra.mxu0 %v10192_v61 }
 0x4cf   : > { %8905 = vmatprep.subr.bf16.mxu0 %v12244_v17 }
 0x4d1   : > { %8886 = vmatmul.mubr.bf16.gmra.mrb[8].mxu0 %v11783_v43 }
 0x4d2   : > { %8906 = vmatpush3.bf16.msra.mxu0 %v10193_v1  ;;  %8889 = vmatprep.mubr.msk.bf16.mxu0 %vm10382_vm0, %v12244_v17 }
 0x4d3   : > { %8907 = vmatprep.subr.bf16.mxu0 %v12244_v17 }
 0x4d6   : > { %8908 = vmatpush3.bf16.msra.mxu0 %v10194_v45 }
 0x4d7   : > { %8909 = vmatprep.subr.bf16.mxu0 %v12244_v17 }
 0x4d9   : > { %8890 = vmatmul.mubr.bf16.gmra.mrb[12].mxu0 %v11794_v24 }
 0x4da   : > { %8910 = vmatpush3.bf16.msra.mxu0 %v10195_v5  ;;  %8893 = vmatprep.mubr.msk.bf16.mxu0 %vm10382_vm0, %v12244_v17 }
 0x4db   : > { %8911 = vmatprep.subr.bf16.mxu0 %v12244_v17 }
 0x4de   : > { %8912 = vmatpush3.bf16.msra.mxu0 %v10196_v20  ;;  %v10221_v20 = vld [vmem:[%s10525_s5 + $0x700] sm:$0xff]  }
 0x4df   : > { %8933 = vmatprep.subr.bf16.mxu0 %v12244_v17 }
 0x4e1   : > { %8894 = vmatmul.mubr.bf16.gmra.mrb[16].mxu0 %v11805_v63 }
 0x4e2   : > { %8913 = vmatprep.mubr.msk.bf16.mxu0 %vm10382_vm0, %v12244_v17 }
 0x4e9   : > { %8914 = vmatmul.mubr.bf16.vlgmr.msra.gmra.mrb[0].mxu0 %v11121_v28  ;;  %v10200_v28 = vld [vmem:[%s10525_s5 + $0x658] sm:$0xff]  }
 0x4ea   : > { %8934 = vmatpush3.bf16.msra.mxu0 %v10197_v19  ;;  %8917 = vmatprep.mubr.msk.bf16.mxu0 %vm10382_vm0, %v12244_v17 }
 0x4eb   : > { %8935 = vmatprep.subr.bf16.mxu0 %v12244_v17 }
 0x4ee   : > { %8936 = vmatpush3.bf16.msra.mxu0 %v10198_v18 }
 0x4ef   : > { %8937 = vmatprep.subr.bf16.mxu0 %v12244_v17 }
 0x4f1   : > { %8918 = vmatmul.mubr.bf16.gmra.mrb[4].mxu0 %v11163_v14 }
 0x4f2   : > { %8938 = vmatpush3.bf16.msra.mxu0 %v10199_v9  ;;  %8921 = vmatprep.mubr.msk.bf16.mxu0 %vm10382_vm0, %v12244_v17 }
 0x4f3   : > { %8939 = vmatprep.subr.bf16.mxu0 %v12244_v17 }
 0x4f6   : > { %8940 = vmatpush3.bf16.msra.mxu0 %v10200_v28  ;;  %v10223_v28 = vld [vmem:[%s10525_s5 + $0x710] sm:$0xff]  }
 0x4f7   : > { %8941 = vmatprep.subr.bf16.mxu0 %v12244_v17 }
 0x4f9   : > { %8922 = vmatmul.mubr.bf16.gmra.mrb[8].mxu0 %v11156_v35 }
 0x4fa   : > { %8942 = vmatpush3.bf16.msra.mxu0 %v10201_v51  ;;  %8925 = vmatprep.mubr.msk.bf16.mxu0 %vm10382_vm0, %v12244_v17 }
 0x4fb   : > { %8943 = vmatprep.subr.bf16.mxu0 %v12244_v17 }
 0x4fe   : > { %8944 = vmatpush3.bf16.msra.mxu0 %v10202_v11 }
 0x4ff   : > { %8945 = vmatprep.subr.bf16.mxu0 %v12244_v17 }
 0x501   : > { %8926 = vmatmul.mubr.bf16.gmra.mrb[12].mxu0 %v11203_v62 }
 0x502   : > { %8946 = vmatpush3.bf16.msra.mxu0 %v10203_v41  ;;  %8929 = vmatprep.mubr.msk.bf16.mxu0 %vm10382_vm0, %v12244_v17 }
 0x503   : > { %8947 = vmatprep.subr.bf16.mxu0 %v12244_v17 }
 0x506   : > { %8948 = vmatpush3.bf16.msra.mxu0 %v10204_v21 }
 0x507   : > { %8969 = vmatprep.subr.bf16.mxu0 %v12244_v17 }
 0x509   : > { %8930 = vmatmul.mubr.bf16.gmra.mrb[16].mxu0 %v11197_v58 }
 0x50a   : > { %8949 = vmatprep.mubr.msk.bf16.mxu0 %vm10382_vm0, %v12244_v17 }
 0x511   : > { %8950 = vmatmul.mubr.bf16.vlgmr.msra.gmra.mrb[0].mxu0 %v11528_v37  ;;  %v10208_v37 = vld [vmem:[%s10525_s5 + $0x698] sm:$0xff]  }
 0x512   : > { %8970 = vmatpush3.bf16.msra.mxu0 %v10205_v59  ;;  %8953 = vmatprep.mubr.msk.bf16.mxu0 %vm10382_vm0, %v12244_v17  ;;  %v10225_v59 = vld [vmem:[%s10525_s5 + $0x720] sm:$0xff]  }
 0x513   : > { %8971 = vmatprep.subr.bf16.mxu0 %v12244_v17 }
 0x516   : > { %8972 = vmatpush3.bf16.msra.mxu0 %v10206_v3  ;;  %v10226_v3 = vld [vmem:[%s10525_s5 + $0x728] sm:$0xff]  }
 0x517   : > { %8973 = vmatprep.subr.bf16.mxu0 %v12244_v17 }
 0x519   : > { %8954 = vmatmul.mubr.bf16.gmra.mrb[4].mxu0 %v11548_v46  ;;  %v5001_v46 = vrot.slane %v11197_v58, 6 }
 0x51a   : > { %8974 = vmatpush3.bf16.msra.mxu0 %v10207_v30  ;;  %8957 = vmatprep.mubr.msk.bf16.mxu0 %vm10382_vm0, %v12244_v17 }
 0x51b   : > { %8975 = vmatprep.subr.bf16.mxu0 %v12244_v17  ;;  %v5002_v16 = vsel %vm2432_vm6, %v11742_v25, %v5001_v46 }
 0x51e   : > { %8976 = vmatpush3.bf16.msra.mxu0 %v10208_v37 }
 0x51f   : > { %8977 = vmatprep.subr.bf16.mxu0 %v12244_v17 }
 0x521   : > { %8958 = vmatmul.mubr.bf16.gmra.mrb[8].mxu0 %v11749_v56 }
 0x522   : > { %8978 = vmatpush3.bf16.msra.mxu0 %v10209_v38  ;;  %8961 = vmatprep.mubr.msk.bf16.mxu0 %vm10382_vm0, %v12244_v17 }
 0x523   : > { %8979 = vmatprep.subr.bf16.mxu0 %v12244_v17 }
 0x526   : > { %8980 = vmatpush3.bf16.msra.mxu0 %v10210_v57 }
 0x527   : > { %8981 = vmatprep.subr.bf16.mxu0 %v12244_v17 }
 0x529   : > { %8962 = vmatmul.mubr.bf16.gmra.mrb[12].mxu0 %v5002_v16 }
 0x52a   : > { %8982 = vmatpush3.bf16.msra.mxu0 %v10211_v34  ;;  %8965 = vmatprep.mubr.msk.bf16.mxu0 %vm10382_vm0, %v12244_v17  ;;  %v10228_v34 = vld [vmem:[%s10525_s5 + $0x738] sm:$0xff]  }
 0x52b   : > { %8983 = vmatprep.subr.bf16.mxu0 %v12244_v17 }
 0x52e   : > { %8984 = vmatpush3.bf16.msra.mxu0 %v10212_v0 }
 0x52f   : > { %9005 = vmatprep.subr.bf16.mxu0 %v12244_v17 }
 0x531   : > { %8966 = vmatmul.mubr.bf16.gmra.mrb[16].mxu0 %v5001_v46  ;;  %v10227_v46 = vld [vmem:[%s10525_s5 + $0x730] sm:$0xff]  }
 0x532   : > { %8985 = vmatprep.mubr.msk.bf16.mxu0 %vm10382_vm0, %v12244_v17 }
 0x539   : > { %8986 = vmatmul.mubr.bf16.vlgmr.msra.gmra.mrb[0].mxu0 %v11772_v12  ;;  %v10220_v12 = vld [vmem:[%s10525_s5 + $0x6f8] sm:$0xff]  }
 0x53a   : > { %9006 = vmatpush3.bf16.msra.mxu0 %v10213_v60  ;;  %8989 = vmatprep.mubr.msk.bf16.mxu0 %vm10382_vm0, %v12244_v17 }
 0x53b   : > { %v11878_v54 = vpop.f32.mrb[72].mxu1  ;;  %9007 = vmatprep.subr.bf16.mxu0 %v12244_v17 }
 0x53c   : > { %v8591_v27 = vpop.f32.mrb[73].mxu1 }
 0x53d   : > { %v3619_v26 = vpop.f32.mrb[74].mxu1  ;;  %v5429_v27 = vrot.slane %v11156_v35, 1 }
 0x53e   : > { %9008 = vmatpush3.bf16.msra.mxu0 %v10214_v7  ;;  %v8592_v4 = vpop.f32.mrb[75].mxu1  ;;  %v10229_v26 = vld [vmem:[%s10525_s5 + $0x740] sm:$0xff]  }
 0x53f   : > { %9009 = vmatprep.subr.bf16.mxu0 %v12244_v17  ;;  %v5430_v4 = vsel %vm739_vm5, %v11194_v53, %v5429_v27  ;;  %v10232_v53 = vld [vmem:[%s10525_s5 + $0x758] sm:$0xff]  }
 0x541   : > { %8990 = vmatmul.mubr.bf16.gmra.mrb[4].mxu0 %v11783_v43 }
 0x542   : > { %9010 = vmatpush3.bf16.msra.mxu0 %v10215_v42  ;;  %8993 = vmatprep.mubr.msk.bf16.mxu0 %vm10382_vm0, %v12244_v17  ;;  %v10230_v42 = vld [vmem:[%s10525_s5 + $0x748] sm:$0xff]  }
 0x543   : > { %v11887_v25 = vpop.f32.mrb[76].mxu1  ;;  %9011 = vmatprep.subr.bf16.mxu0 %v12244_v17 }
 0x544   : > { %v8595_v50 = vpop.f32.mrb[77].mxu1 }
 0x545   : > { %v11890_v56 = vpop.f32.mrb[78].mxu1  ;;  %v10231_v50 = vld [vmem:[%s10525_s5 + $0x750] sm:$0xff]  }
 0x546   : > { %v8596_v6 = vpop.f32.mrb[79].mxu1  ;;  %9012 = vmatpush3.bf16.msra.mxu0 %v10216_v39  ;;  %v5431_v39 = vrot.slane %v11203_v62, 1 }
 0x547   : > { %9013 = vmatprep.subr.bf16.mxu0 %v12244_v17 }
 0x548   : > { %v11969_v6 = vsel %vm739_vm5, %v5429_v27, %v5431_v39  ;;  %v10258_v27 = vld [vmem:[%s10525_s5 + $0x828] sm:$0xff]  }
 0x549   : > { %8994 = vmatmul.mubr.bf16.gmra.mrb[8].mxu0 %v11794_v24 }
 0x54a   : > { %9014 = vmatpush3.bf16.msra.mxu0 %v10217_v13  ;;  %8997 = vmatprep.mubr.msk.bf16.mxu0 %vm10382_vm0, %v12244_v17  ;;  %v5433_v13 = vrot.slane %v11197_v58, 1 }
 0x54b   : > { %v3631_v44 = vpop.f32.mrb[80].mxu1  ;;  %9015 = vmatprep.subr.bf16.mxu0 %v12244_v17 }
 0x54c   : > { %v8599_v10 = vpop.f32.mrb[81].mxu1  ;;  %v11980_v44 = vsel %vm739_vm5, %v5431_v39, %v5433_v13  ;;  %v10260_v39 = vld [vmem:[%s10525_s5 + $0x838] sm:$0xff]  }
 0x54d   : > { %v11899_v15 = vpop.f32.mrb[82].mxu1  ;;  %v10234_v10 = vld [vmem:[%s10525_s5 + $0x768] sm:$0xff]  }
 0x54e   : > { %v8600_v2 = vpop.f32.mrb[83].mxu1  ;;  %9016 = vmatpush3.bf16.msra.mxu0 %v10218_v29  ;;  %v10233_v29 = vld [vmem:[%s10525_s5 + $0x760] sm:$0xff]  }
 0x54f   : > { %9017 = vmatprep.subr.bf16.mxu0 %v12244_v17  ;;  %v11988_v2 = vrot.slane %v11255_v52, 1 }
 0x551   : > { %8998 = vmatmul.mubr.bf16.gmra.mrb[12].mxu0 %v11805_v63  ;;  %v10222_v63 = vld [vmem:[%s10525_s5 + $0x708] sm:$0xff]  }
 0x552   : > { %9018 = vmatpush3.bf16.msra.mxu0 %v10219_v55  ;;  %9001 = vmatprep.mubr.msk.bf16.mxu0 %vm10382_vm0, %v12244_v17  ;;  %v10235_v55 = vld [vmem:[%s10525_s5 + $0x770] sm:$0xff]  }
 0x553   : > { %v3638_v61 = vpop.f32.mrb[84].mxu1  ;;  %9019 = vmatprep.subr.bf16.mxu0 %v12244_v17 }
 0x554   : > { %v8603_v36 = vpop.f32.mrb[85].mxu1  ;;  %v10236_v61 = vld [vmem:[%s10525_s5 + $0x778] sm:$0xff]  }
 0x555   : > { %v11908_v1 = vpop.f32.mrb[86].mxu1  ;;  %v10237_v36 = vld [vmem:[%s10525_s5 + $0x780] sm:$0xff]  }
 0x556   : > { %v8604_v43 = vpop.f32.mrb[87].mxu1  ;;  %9020 = vmatpush3.bf16.msra.mxu0 %v10220_v12  ;;  %v11994_v12 = vsel %vm739_vm5, %v5433_v13, %v11988_v2  ;;  %v10264_v13 = vld [vmem:[%s10525_s5 + $0x858] sm:$0xff]  }
 0x557   : > { %9041 = vmatprep.subr.bf16.mxu0 %v12244_v17  ;;  %v10238_v43 = vld [vmem:[%s10525_s5 + $0x788] sm:$0xff]  }
 0x559   : > { %9002 = vmatmul.mubr.bf16.gmra.mrb[16].mxu0 %v11304_v23 }
 0x55a   : > { %9021 = vmatprep.mubr.msk.bf16.mxu0 %vm10382_vm0, %v12244_v17 }
 0x55b   : > { %v11914_v45 = vpop.f32.mrb[88].mxu1 }
 0x55c   : > { %v8607_v22 = vpop.f32.mrb[89].mxu1 }
 0x55d   : > { %v3648_v5 = vpop.f32.mrb[90].mxu1  ;;  %v5582_v22 = vrot.slane %v11203_v62, 2 }
 0x55e   : > { %v8608_v24 = vpop.f32.mrb[91].mxu1  ;;  %v10239_v5 = vld [vmem:[%s10525_s5 + $0x790] sm:$0xff]  }
 0x55f   : > { %v12016_v24 = vsel %vm1108_vm14, %v11664_v40, %v5582_v22 }
 0x561   : > { %9022 = vmatmul.mubr.bf16.vlgmr.msra.gmra.mrb[0].mxu0 %v11163_v14  ;;  %v10224_v14 = vld [vmem:[%s10525_s5 + $0x718] sm:$0xff]  }
 0x562   : > { %9042 = vmatpush3.bf16.msra.mxu0 %v10221_v20  ;;  %9025 = vmatprep.mubr.msk.bf16.mxu0 %vm10382_vm0, %v12244_v17  ;;  %v5584_v20 = vrot.slane %v11197_v58, 2 }
 0x563   : > { %v11921_v19 = vpop.f32.mrb[92].mxu1  ;;  %9043 = vmatprep.subr.bf16.mxu0 %v12244_v17 }
 0x564   : > { %v9279_v23 = vpop.f32.mrb[93].mxu1  ;;  %v12027_v40 = vsel %vm1108_vm14, %v5582_v22, %v5584_v20  ;;  %v6163_v22 = vrot.slane %v11197_v58, 3 }
 0x565   : > { %v11924_v18 = vpop.f32.mrb[94].mxu1  ;;  %v10242_v23 = vld [vmem:[%s10525_s5 + $0x7a8] sm:$0xff]  }
 0x566   : > { %9044 = vmatpush3.bf16.msra.mxu0 %v10222_v63  ;;  %v9280_v9 = vpop.f32.mrb[95].mxu1  ;;  %v10241_v63 = vld [vmem:[%s10525_s5 + $0x7a0] sm:$0xff]  }
 0x567   : > { %9045 = vmatprep.subr.bf16.mxu0 %v12244_v17  ;;  %v12035_v9 = vrot.slane %v11255_v52, 2 }
 0x569   : > { %9026 = vmatmul.mubr.bf16.gmra.mrb[4].mxu0 %v11156_v35 }
 0x56a   : > { %9046 = vmatpush3.bf16.msra.mxu0 %v10223_v28  ;;  %9029 = vmatprep.mubr.msk.bf16.mxu0 %vm10382_vm0, %v12244_v17  ;;  %v10243_v28 = vld [vmem:[%s10525_s5 + $0x7b0] sm:$0xff]  }
 0x56b   : > { %v6421_v51 = vpop.f32.mrb[96].mxu1  ;;  %9047 = vmatprep.subr.bf16.mxu0 %v12244_v17 }
 0x56c   : > { %v9283_v11 = vpop.f32.mrb[97].mxu1  ;;  %v10244_v51 = vld [vmem:[%s10525_s5 + $0x7b8] sm:$0xff]  }
 0x56d   : > { %v11933_v41 = vpop.f32.mrb[98].mxu1  ;;  %v10245_v11 = vld [vmem:[%s10525_s5 + $0x7c0] sm:$0xff]  }
 0x56e   : > { %v9284_v21 = vpop.f32.mrb[99].mxu1  ;;  %9048 = vmatpush3.bf16.msra.mxu0 %v10224_v14  ;;  %v12041_v14 = vsel %vm1108_vm14, %v5584_v20, %v12035_v9  ;;  %v10274_v20 = vld [vmem:[%s10525_s5 + $0x8a0] sm:$0xff]  }
 0x56f   : > { %9049 = vmatprep.subr.bf16.mxu0 %v12244_v17  ;;  %v10246_v21 = vld [vmem:[%s10525_s5 + $0x7c8] sm:$0xff]  }
 0x571   : > { %9030 = vmatmul.mubr.bf16.gmra.mrb[8].mxu0 %v11203_v62 }
 0x572   : > { %9050 = vmatpush3.bf16.msra.mxu0 %v10225_v59  ;;  %9033 = vmatprep.mubr.msk.bf16.mxu0 %vm10382_vm0, %v12244_v17  ;;  %v10247_v59 = vld [vmem:[%s10525_s5 + $0x7d0] sm:$0xff]  }
 0x573   : > { %v6428_v30 = vpop.f32.mrb[100].mxu1  ;;  %9051 = vmatprep.subr.bf16.mxu0 %v12244_v17 }
 0x574   : > { %v9287_v37 = vpop.f32.mrb[101].mxu1  ;;  %v10250_v30 = vld [vmem:[%s10525_s5 + $0x7e8] sm:$0xff]  }
 0x575   : > { %v11942_v38 = vpop.f32.mrb[102].mxu1  ;;  %v10251_v37 = vld [vmem:[%s10525_s5 + $0x7f0] sm:$0xff]  }
 0x576   : > { %v9288_v57 = vpop.f32.mrb[103].mxu1  ;;  %9052 = vmatpush3.bf16.msra.mxu0 %v10226_v3  ;;  %v10249_v3 = vld [vmem:[%s10525_s5 + $0x7e0] sm:$0xff]  }
 0x577   : > { %9053 = vmatprep.subr.bf16.mxu0 %v12244_v17  ;;  %v10252_v57 = vld [vmem:[%s10525_s5 + $0x7f8] sm:$0xff]  }
 0x579   : > { %9034 = vmatmul.mubr.bf16.gmra.mrb[12].mxu0 %v11197_v58 }
 0x57a   : > { %9054 = vmatpush3.bf16.msra.mxu0 %v10227_v46  ;;  %9037 = vmatprep.mubr.msk.bf16.mxu0 %vm10382_vm0, %v12244_v17  ;;  %v10253_v46 = vld [vmem:[%s10525_s5 + $0x800] sm:$0xff]  }
 0x57b   : > { %v11950_v16 = vpop.f32.mrb[104].mxu1  ;;  %9055 = vmatprep.subr.bf16.mxu0 %v12244_v17 }
 0x57c   : > { %v9291_v0 = vpop.f32.mrb[105].mxu1 }
 0x57d   : > { %v6438_v60 = vpop.f32.mrb[106].mxu1  ;;  %v10255_v0 = vld [vmem:[%s10525_s5 + $0x810] sm:$0xff]  }
 0x57e   : > { %v9292_v7 = vpop.f32.mrb[107].mxu1  ;;  %9056 = vmatpush3.bf16.msra.mxu0 %v10228_v34  ;;  %v10254_v34 = vld [vmem:[%s10525_s5 + $0x808] sm:$0xff]   ;;  %v10256_v60 = vld [vmem:[%s10525_s5 + $0x818] sm:$0xff]  }
 0x57f   : > { %9077 = vmatprep.subr.bf16.mxu0 %v12244_v17  ;;  %v10257_v7 = vld [vmem:[%s10525_s5 + $0x820] sm:$0xff]  }
 0x581   : > { %9038 = vmatmul.mubr.bf16.gmra.mrb[16].mxu0 %v11255_v52 }
 0x582   : > { %9057 = vmatprep.mubr.msk.bf16.mxu0 %vm10382_vm0, %v12244_v17 }
 0x589   : > { %9058 = vmatmul.mubr.bf16.vlgmr.msra.gmra.mrb[0].mxu0 %v5430_v4  ;;  %v10259_v4 = vld [vmem:[%s10525_s5 + $0x830] sm:$0xff]  }
 0x58a   : > { %9078 = vmatpush3.bf16.msra.mxu0 %v10229_v26  ;;  %9061 = vmatprep.mubr.msk.bf16.mxu0 %vm10382_vm0, %v12244_v17  ;;  %v5873_v26 = vrot.slane %v11250_v31, 1 }
 0x58b   : > { %9079 = vmatprep.subr.bf16.mxu0 %v12244_v17 }
 0x58e   : > { %9080 = vmatpush3.bf16.msra.mxu0 %v10230_v42  ;;  %v5874_v42 = vsel %vm739_vm5, %v11988_v2, %v5873_v26 }
 0x58f   : > { %9081 = vmatprep.subr.bf16.mxu0 %v12244_v17 }
 0x591   : > { %9062 = vmatmul.mubr.bf16.gmra.mrb[4].mxu0 %v11969_v6 }
 0x592   : > { %9082 = vmatpush3.bf16.msra.mxu0 %v10231_v50  ;;  %9065 = vmatprep.mubr.msk.bf16.mxu0 %vm10382_vm0, %v12244_v17  ;;  %v10261_v50 = vld [vmem:[%s10525_s5 + $0x840] sm:$0xff]  }
 0x593   : > { %9083 = vmatprep.subr.bf16.mxu0 %v12244_v17 }
 0x596   : > { %9084 = vmatpush3.bf16.msra.mxu0 %v10232_v53  ;;  %v10263_v53 = vld [vmem:[%s10525_s5 + $0x850] sm:$0xff]  }
 0x597   : > { %9085 = vmatprep.subr.bf16.mxu0 %v12244_v17 }
 0x599   : > { %9066 = vmatmul.mubr.bf16.gmra.mrb[8].mxu0 %v11980_v44 }
 0x59a   : > { %9086 = vmatpush3.bf16.msra.mxu0 %v10233_v29  ;;  %9069 = vmatprep.mubr.msk.bf16.mxu0 %vm10382_vm0, %v12244_v17  ;;  %v10265_v29 = vld [vmem:[%s10525_s5 + $0x860] sm:$0xff]  }
 0x59b   : > { %9087 = vmatprep.subr.bf16.mxu0 %v12244_v17 }
 0x59e   : > { %9088 = vmatpush3.bf16.msra.mxu0 %v10234_v10  ;;  %v6017_v10 = vrot.slane %v11250_v31, 2 }
 0x59f   : > { %9089 = vmatprep.subr.bf16.mxu0 %v12244_v17 }
 0x5a1   : > { %9070 = vmatmul.mubr.bf16.gmra.mrb[12].mxu0 %v11994_v12 }
 0x5a2   : > { %9090 = vmatpush3.bf16.msra.mxu0 %v10235_v55  ;;  %9073 = vmatprep.mubr.msk.bf16.mxu0 %vm10382_vm0, %v12244_v17  ;;  %v6018_v55 = vsel %vm1108_vm14, %v12035_v9, %v6017_v10 }
 0x5a3   : > { %9091 = vmatprep.subr.bf16.mxu0 %v12244_v17 }
 0x5a6   : > { %9092 = vmatpush3.bf16.msra.mxu0 %v10236_v61  ;;  %v6161_v61 = vrot.slane %v11203_v62, 3 }
 0x5a7   : > { %9113 = vmatprep.subr.bf16.mxu0 %v12244_v17 }
 0x5a9   : > { %9074 = vmatmul.mubr.bf16.gmra.mrb[16].mxu0 %v11988_v2  ;;  %v10267_v2 = vld [vmem:[%s10525_s5 + $0x870] sm:$0xff]  }
 0x5aa   : > { %9093 = vmatprep.mubr.msk.bf16.mxu0 %vm10382_vm0, %v12244_v17 }
 0x5b1   : > { %9094 = vmatmul.mubr.bf16.vlgmr.msra.gmra.mrb[0].mxu0 %v11672_v33  ;;  %v10240_v33 = vld [vmem:[%s10525_s5 + $0x798] sm:$0xff]  }
 0x5b2   : > { %9114 = vmatpush3.bf16.msra.mxu0 %v10237_v36  ;;  %9097 = vmatprep.mubr.msk.bf16.mxu0 %vm10382_vm0, %v12244_v17  ;;  %v6162_v36 = vsel %vm1540_vm15, %v11261_v47, %v6161_v61  ;;  %v10272_v47 = vld [vmem:[%s10525_s5 + $0x890] sm:$0xff]  }
 0x5b3   : > { %9115 = vmatprep.subr.bf16.mxu0 %v12244_v17 }
 0x5b6   : > { %9116 = vmatpush3.bf16.msra.mxu0 %v10238_v43  ;;  %v10270_v43 = vld [vmem:[%s10525_s5 + $0x880] sm:$0xff]  }
 0x5b7   : > { %9117 = vmatprep.subr.bf16.mxu0 %v12244_v17 }
 0x5b9   : > { %9098 = vmatmul.mubr.bf16.gmra.mrb[4].mxu0 %v12016_v24 }
 0x5ba   : > { %9118 = vmatpush3.bf16.msra.mxu0 %v10239_v5  ;;  %9101 = vmatprep.mubr.msk.bf16.mxu0 %vm10382_vm0, %v12244_v17  ;;  %v10271_v5 = vld [vmem:[%s10525_s5 + $0x888] sm:$0xff]  }
 0x5bb   : > { %9119 = vmatprep.subr.bf16.mxu0 %v12244_v17 }
 0x5be   : > { %9120 = vmatpush3.bf16.msra.mxu0 %v10240_v33  ;;  %v10273_v33 = vld [vmem:[%s10525_s5 + $0x898] sm:$0xff]  }
 0x5bf   : > { %9121 = vmatprep.subr.bf16.mxu0 %v12244_v17 }
 0x5c1   : > { %9102 = vmatmul.mubr.bf16.gmra.mrb[8].mxu0 %v12027_v40 }
 0x5c2   : > { %9122 = vmatpush3.bf16.msra.mxu0 %v10241_v63  ;;  %9105 = vmatprep.mubr.msk.bf16.mxu0 %vm10382_vm0, %v12244_v17  ;;  %v6167_v63 = vrot.slane %v11250_v31, 3 }
 0x5c3   : > { %9123 = vmatprep.subr.bf16.mxu0 %v12244_v17 }
 0x5c6   : > { %9124 = vmatpush3.bf16.msra.mxu0 %v10242_v23 }
 0x5c7   : > { %9125 = vmatprep.subr.bf16.mxu0 %v12244_v17 }
 0x5c9   : > { %9106 = vmatmul.mubr.bf16.gmra.mrb[12].mxu0 %v12041_v14 }
 0x5ca   : > { %9126 = vmatpush3.bf16.msra.mxu0 %v10243_v28  ;;  %9109 = vmatprep.mubr.msk.bf16.mxu0 %vm10382_vm0, %v12244_v17 }
 0x5cb   : > { %9127 = vmatprep.subr.bf16.mxu0 %v12244_v17 }
 0x5ce   : > { %9128 = vmatpush3.bf16.msra.mxu0 %v10244_v51 }
 0x5cf   : > { %9149 = vmatprep.subr.bf16.mxu0 %v12244_v17 }
 0x5d1   : > { %9110 = vmatmul.mubr.bf16.gmra.mrb[16].mxu0 %v12035_v9 }
 0x5d2   : > { %9129 = vmatprep.mubr.msk.bf16.mxu0 %vm10382_vm0, %v12244_v17 }
 0x5d9   : > { %9130 = vmatmul.mubr.bf16.vlgmr.msra.gmra.mrb[0].mxu0 %v11156_v35  ;;  %v10248_v35 = vld [vmem:[%s10525_s5 + $0x7d8] sm:$0xff]  }
 0x5da   : > { %9150 = vmatpush3.bf16.msra.mxu0 %v10245_v11  ;;  %9133 = vmatprep.mubr.msk.bf16.mxu0 %vm10382_vm0, %v12244_v17 }
 0x5db   : > { %9151 = vmatprep.subr.bf16.mxu0 %v12244_v17 }
 0x5de   : > { %9152 = vmatpush3.bf16.msra.mxu0 %v10246_v21 }
 0x5df   : > { %9153 = vmatprep.subr.bf16.mxu0 %v12244_v17 }
 0x5e1   : > { %9134 = vmatmul.mubr.bf16.gmra.mrb[4].mxu0 %v11203_v62  ;;  %v6164_v62 = vsel %vm1540_vm15, %v6161_v61, %v6163_v22 }
 0x5e2   : > { %9154 = vmatpush3.bf16.msra.mxu0 %v10247_v59  ;;  %9137 = vmatprep.mubr.msk.bf16.mxu0 %vm10382_vm0, %v12244_v17 }
 0x5e3   : > { %9155 = vmatprep.subr.bf16.mxu0 %v12244_v17 }
 0x5e6   : > { %9156 = vmatpush3.bf16.msra.mxu0 %v10248_v35 }
 0x5e7   : > { %9157 = vmatprep.subr.bf16.mxu0 %v12244_v17 }
 0x5e9   : > { %9138 = vmatmul.mubr.bf16.gmra.mrb[8].mxu0 %v11197_v58 }
 0x5ea   : > { %9158 = vmatpush3.bf16.msra.mxu0 %v10249_v3  ;;  %9141 = vmatprep.mubr.msk.bf16.mxu0 %vm10382_vm0, %v12244_v17 }
 0x5eb   : > { %9159 = vmatprep.subr.bf16.mxu0 %v12244_v17 }
 0x5ee   : > { %9160 = vmatpush3.bf16.msra.mxu0 %v10250_v30 }
 0x5ef   : > { %9161 = vmatprep.subr.bf16.mxu0 %v12244_v17 }
 0x5f1   : > { %9142 = vmatmul.mubr.bf16.gmra.mrb[12].mxu0 %v11255_v52 }
 0x5f2   : > { %9162 = vmatpush3.bf16.msra.mxu0 %v10251_v37  ;;  %9145 = vmatprep.mubr.msk.bf16.mxu0 %vm10382_vm0, %v12244_v17 }
 0x5f3   : > { %9163 = vmatprep.subr.bf16.mxu0 %v12244_v17 }
 0x5f6   : > { %9164 = vmatpush3.bf16.msra.mxu0 %v10252_v57 }
 0x5f7   : > { %9185 = vmatprep.subr.bf16.mxu0 %v12244_v17 }
 0x5f9   : > { %9146 = vmatmul.mubr.bf16.gmra.mrb[16].mxu0 %v11250_v31 }
 0x5fa   : > { %9165 = vmatprep.mubr.msk.bf16.mxu0 %vm10382_vm0, %v12244_v17 }
 0x601   : > { %9166 = vmatmul.mubr.bf16.vlgmr.msra.gmra.mrb[0].mxu0 %v11969_v6  ;;  %v10262_v6 = vld [vmem:[%s10525_s5 + $0x848] sm:$0xff]  }
 0x602   : > { %9186 = vmatpush3.bf16.msra.mxu0 %v10253_v46  ;;  %9169 = vmatprep.mubr.msk.bf16.mxu0 %vm10382_vm0, %v12244_v17 }
 0x603   : > { %9187 = vmatprep.subr.bf16.mxu0 %v12244_v17 }
 0x606   : > { %9188 = vmatpush3.bf16.msra.mxu0 %v10254_v34 }
 0x607   : > { %9189 = vmatprep.subr.bf16.mxu0 %v12244_v17 }
 0x609   : > { %9170 = vmatmul.mubr.bf16.gmra.mrb[4].mxu0 %v11980_v44  ;;  %v10266_v44 = vld [vmem:[%s10525_s5 + $0x868] sm:$0xff]  }
 0x60a   : > { %9190 = vmatpush3.bf16.msra.mxu0 %v10255_v0  ;;  %9173 = vmatprep.mubr.msk.bf16.mxu0 %vm10382_vm0, %v12244_v17 }
 0x60b   : > { %9191 = vmatprep.subr.bf16.mxu0 %v12244_v17 }
 0x60e   : > { %9192 = vmatpush3.bf16.msra.mxu0 %v10256_v60 }
 0x60f   : > { %9193 = vmatprep.subr.bf16.mxu0 %v12244_v17 }
 0x611   : > { %9174 = vmatmul.mubr.bf16.gmra.mrb[8].mxu0 %v11994_v12  ;;  %v10268_v12 = vld [vmem:[%s10525_s5 + $0x878] sm:$0xff]  }
 0x612   : > { %9194 = vmatpush3.bf16.msra.mxu0 %v10257_v7  ;;  %9177 = vmatprep.mubr.msk.bf16.mxu0 %vm10382_vm0, %v12244_v17  ;;  %v12194_v7 = vld [vmem:[%s10531_s8] sm:$0xff] }
 0x613   : > { %9195 = vmatprep.subr.bf16.mxu0 %v12244_v17 }
 0x616   : > { %9196 = vmatpush3.bf16.msra.mxu0 %v10258_v27  ;;  %v6459_v27 = vsub.s32 5, %v10617_v32 }
 0x617   : > { %9197 = vmatprep.subr.bf16.mxu0 %v12244_v17 }
 0x619   : > { %9178 = vmatmul.mubr.bf16.gmra.mrb[12].mxu0 %v5874_v42 }
 0x61a   : > { %9198 = vmatpush3.bf16.msra.mxu0 %v10259_v4  ;;  %9181 = vmatprep.mubr.msk.bf16.mxu0 %vm10382_vm0, %v12244_v17 }
 0x61b   : > { %9199 = vmatprep.subr.bf16.mxu0 %v12244_v17 }
 0x61e   : > { %9200 = vmatpush3.bf16.msra.mxu0 %v10260_v39 }
 0x61f   : > { %9221 = vmatprep.subr.bf16.mxu0 %v12244_v17 }
 0x621   : > { %9182 = vmatmul.mubr.bf16.gmra.mrb[16].mxu0 %v5873_v26 }
 0x622   : > { %9201 = vmatprep.mubr.msk.bf16.mxu0 %vm10382_vm0, %v12244_v17 }
 0x629   : > { %9202 = vmatmul.mubr.bf16.vlgmr.msra.gmra.mrb[0].mxu0 %v12016_v24  ;;  %v6165_v24 = vrot.slane %v11255_v52, 3 }
 0x62a   : > { %9222 = vmatpush3.bf16.msra.mxu0 %v10261_v50  ;;  %9205 = vmatprep.mubr.msk.bf16.mxu0 %vm10382_vm0, %v12244_v17 }
 0x62b   : > { %9223 = vmatprep.subr.bf16.mxu0 %v12244_v17  ;;  %v6166_v58 = vsel %vm1540_vm15, %v6163_v22, %v6165_v24  ;;  %v6168_v52 = vsel %vm1540_vm15, %v6165_v24, %v6167_v63 }
 0x62e   : > { %9224 = vmatpush3.bf16.msra.mxu0 %v10262_v6 }
 0x62f   : > { %9225 = vmatprep.subr.bf16.mxu0 %v12244_v17 }
 0x631   : > { %9206 = vmatmul.mubr.bf16.gmra.mrb[4].mxu0 %v12027_v40  ;;  %v10275_v40 = vld [vmem:[%s10525_s5 + $0x8a8] sm:$0xff]  }
 0x632   : > { %9226 = vmatpush3.bf16.msra.mxu0 %v10263_v53  ;;  %9209 = vmatprep.mubr.msk.bf16.mxu0 %vm10382_vm0, %v12244_v17 }
 0x633   : > { %9227 = vmatprep.subr.bf16.mxu0 %v12244_v17 }
 0x636   : > { %9228 = vmatpush3.bf16.msra.mxu0 %v10264_v13 }
 0x637   : > { %9229 = vmatprep.subr.bf16.mxu0 %v12244_v17 }
 0x639   : > { %9210 = vmatmul.mubr.bf16.gmra.mrb[8].mxu0 %v12041_v14 }
 0x63a   : > { %9230 = vmatpush3.bf16.msra.mxu0 %v10265_v29  ;;  %9213 = vmatprep.mubr.msk.bf16.mxu0 %vm10382_vm0, %v12244_v17 }
 0x63b   : > { %9231 = vmatprep.subr.bf16.mxu0 %v12244_v17 }
 0x63e   : > { %9232 = vmatpush3.bf16.msra.mxu0 %v10266_v44 }
 0x63f   : > { %9233 = vmatprep.subr.bf16.mxu0 %v12244_v17 }
 0x641   : > { %9214 = vmatmul.mubr.bf16.gmra.mrb[12].mxu0 %v6018_v55 }
 0x642   : > { %9234 = vmatpush3.bf16.msra.mxu0 %v10267_v2  ;;  %9217 = vmatprep.mubr.msk.bf16.mxu0 %vm10382_vm0, %v12244_v17 }
 0x643   : > { %9235 = vmatprep.subr.bf16.mxu0 %v12244_v17 }
 0x646   : > { %9236 = vmatpush3.bf16.msra.mxu0 %v10268_v12 }
 0x647   : > { %9257 = vmatprep.subr.bf16.mxu0 %v12244_v17 }
 0x649   : > { %9218 = vmatmul.mubr.bf16.gmra.mrb[16].mxu0 %v6017_v10 }
 0x64a   : > { %9237 = vmatprep.mubr.msk.bf16.mxu0 %vm10382_vm0, %v12244_v17 }
 0x651   : > { %9238 = vmatmul.mubr.bf16.vlgmr.msra.gmra.mrb[0].mxu0 %v6162_v36 }
 0x652   : > { %9258 = vmatpush3.bf16.msra.mxu0 %v10270_v43  ;;  %9241 = vmatprep.mubr.msk.bf16.mxu0 %vm10382_vm0, %v12244_v17 }
 0x653   : > { %9259 = vmatprep.subr.bf16.mxu0 %v12244_v17 }
 0x656   : > { %9260 = vmatpush3.bf16.msra.mxu0 %v10271_v5 }
 0x657   : > { %9261 = vmatprep.subr.bf16.mxu0 %v12244_v17 }
 0x659   : > { %9242 = vmatmul.mubr.bf16.gmra.mrb[4].mxu0 %v6164_v62 }
 0x65a   : > { %9262 = vmatpush3.bf16.msra.mxu0 %v10272_v47  ;;  %9245 = vmatprep.mubr.msk.bf16.mxu0 %vm10382_vm0, %v12244_v17 }
 0x65b   : > { %9263 = vmatprep.subr.bf16.mxu0 %v12244_v17 }
 0x65e   : > { %9264 = vmatpush3.bf16.msra.mxu0 %v10273_v33 }
 0x65f   : > { %9265 = vmatprep.subr.bf16.mxu0 %v12244_v17 }
 0x661   : > { %9246 = vmatmul.mubr.bf16.gmra.mrb[8].mxu0 %v6166_v58 }
 0x662   : > { %9266 = vmatpush3.bf16.msra.mxu0 %v10274_v20  ;;  %9249 = vmatprep.mubr.msk.bf16.mxu0 %vm10382_vm0, %v12244_v17 }
 0x663   : > { %9267 = vmatprep.subr.bf16.mxu0 %v12244_v17 }
 0x666   : > { %9268 = vmatpush3.bf16.msra.mxu0 %v10275_v40 }
 0x667   : > { %9269 = vmatprep.subr.bf16.mxu0 %v12244_v17 }
 0x669   : > { %9250 = vmatmul.mubr.bf16.gmra.mrb[12].mxu0 %v6168_v52 }
 0x66a   : > { %9270 = vmatpush3.bf16.msra.mxu0 %v11676_v8  ;;  %9253 = vmatprep.mubr.msk.bf16.mxu0 %vm10382_vm0, %v12244_v17 }
 0x66b   : > { %9271 = vmatprep.subr.bf16.mxu0 %v12244_v17 }
 0x66e   : > { %9272 = vmatpush3.bf16.msra.mxu0 %v11689_v48 }
 0x671   : > { %9254 = vmatmul.mubr.bf16.gmra.mrb[16].mxu0 %v6167_v63 }
 0x672   : > { %9273 = vmatprep.mubr.msk.bf16.mxu0 %vm10382_vm0, %v12244_v17 }
 0x679   : > { %9274 = vmatmul.mubr.bf16.vlgmr.msra.gmra.mrb[0].mxu0 %v11618_v49 }
 0x72c   : > { %v6263_v31 = vpop.f32.mrb[4].mxu0 }
 0x72d   : > { %v9310_v23 = vadd.f32 %v6263_v31, %v11887_v25  ;;  %v9243_v9 = vpop.f32.mrb[5].mxu0 }
 0x72e   : > { %v6266_v28 = vpop.f32.mrb[6].mxu0 }
 0x72f   : > { %v9311_v8 = vadd.f32 %v9310_v23, %v11921_v19  ;;  %v9312_v14 = vadd.f32 %v6266_v28, %v11890_v56  ;;  %v9244_v51 = vpop.f32.mrb[7].mxu0 }
 0x731   : > { %v9313_v11 = vadd.f32 %v9312_v14, %v11924_v18  ;;  %v6449_v18 = vsub.s32 4, %v10617_v32 }
 0x734   : > { %v6271_v21 = vpop.f32.mrb[8].mxu0 }
 0x735   : > { %v9247_v48 = vpop.f32.mrb[9].mxu0 }
 0x736   : > { %v6273_v59 = vpop.f32.mrb[10].mxu0 }
 0x737   : > { %v9314_v35 = vadd.f32 %v6273_v59, %v11899_v15  ;;  %v9248_v17 = vpop.f32.mrb[11].mxu0 }
 0x739   : > { %v9315_v49 = vadd.f32 %v9314_v35, %v11933_v41  ;;  %v6450_v41 = vrot.slane %v12194_v7, %v6449_v18 }
 0x73b   : > { %v6452_v26 = vmul.f32 %v9311_v8, %v6450_v41  ;;  %v6454_v55 = vmul.f32 %v9315_v49, %v6450_v41 }
 0x73c   : > { %v6278_v3 = vpop.f32.mrb[12].mxu0 }
 0x73d   : > { %v9251_v25 = vpop.f32.mrb[13].mxu0 }
 0x73e   : > { %v6280_v30 = vpop.f32.mrb[14].mxu0 }
 0x73f   : > { %v9316_v37 = vadd.f32 %v6280_v30, %v11908_v1  ;;  %v9252_v19 = vpop.f32.mrb[15].mxu0 }
 0x741   : > { %v9317_v56 = vadd.f32 %v9316_v37, %v11942_v38  ;;  %v6460_v38 = vrot.slane %v12194_v7, %v6459_v27 }
 0x743   : > { %v6462_v6 = vadd.f32 %v6460_v38, %v6452_v26  ;;  %v6464_v5 = vadd.f32 %v6460_v38, %v6454_v55  ;;  %v6455_v24 = vmul.f32 %v9317_v56, %v6450_v41  ;;  %v6532_v56 = vsub.s32 6, %v10617_v32 }
 0x744   : > { %v6285_v57 = vpop.f32.mrb[16].mxu0 }
 0x745   : > { %v9318_v46 = vadd.f32 %v6285_v57, %v11914_v45  ;;  %v9255_v34 = vpop.f32.mrb[17].mxu0  ;;  %v6474_v29 = vmul.f32 0.1, %v6462_v6  ;;  %vm6468_vm5 = vcmp.gt.f32.partialorder %v6462_v6, 0.0  ;;  %v6476_v63 = vmul.f32 0.1, %v6464_v5 }
 0x746   : > { %v6288_v0 = vpop.f32.mrb[18].mxu0  ;;  %vm6470_vm15 = vcmp.gt.f32.partialorder %v6464_v5, 0.0  ;;  %v6465_v52 = vadd.f32 %v6460_v38, %v6455_v24 }
 0x747   : > { %v9319_v15 = vadd.f32 %v9318_v46, %v11950_v16  ;;  %v9256_v60 = vpop.f32.mrb[19].mxu0  ;;  %v6453_v16 = vmul.f32 %v9313_v11, %v6450_v41  ;;  %v6480_v36 = vsel %vm6468_vm5, %v6462_v6, %v6474_v29  ;;  %v6482_v9 = vsel %vm6470_vm15, %v6464_v5, %v6476_v63 }
 0x748   : > { %v6496_v62 = vrot.slane %v6480_v36, 4  ;;  %v6499_v33 = vrot.slane %v6480_v36, 6  ;;  %v6477_v14 = vmul.f32 0.1, %v6465_v52  ;;  %v6509_v51 = vrot.slane %v6482_v9, 2 }
 0x749   : > { %v6463_v2 = vadd.f32 %v6460_v38, %v6453_v16  ;;  %v6456_v28 = vmul.f32 %v9319_v15, %v6450_v41  ;;  %vm6471_vm1 = vcmp.gt.f32.partialorder %v6465_v52, 0.0  ;;  %v6512_v48 = vrot.slane %v6482_v9, 4 }
 0x74a   : > { %v6483_v35 = vsel %vm6471_vm1, %v6465_v52, %v6477_v14  ;;  %v6515_v17 = vrot.slane %v6482_v9, 6  ;;  %v6537_v46 = vsub.s32 7, %v10617_v32  ;;  %v6533_v15 = vrot.slane %v12194_v7, %v6532_v56 }
 0x74b   : > { %v6475_v22 = vmul.f32 0.1, %v6463_v2  ;;  %vm6469_vm14 = vcmp.gt.f32.partialorder %v6463_v2, 0.0  ;;  %v6466_v21 = vadd.f32 %v6460_v38, %v6456_v28  ;;  %v6519_v25 = vrot.slane %v6483_v35, 4 }
 0x74c   : > { %v6406_v1 = vpop.f32.mrb[0].mxu0  ;;  %v6522_v37 = vrot.slane %v6483_v35, 6 }
 0x74d   : > { %v9309_v4 = vadd.f32 %v6406_v1, %v11878_v54  ;;  %v9275_v42 = vpop.f32.mrb[1].mxu0  ;;  %v6481_v20 = vsel %vm6469_vm14, %v6463_v2, %v6475_v22  ;;  %v6478_v3 = vmul.f32 0.1, %v6466_v21  ;;  %vm6472_vm2 = vcmp.gt.f32.partialorder %v6466_v21, 0.0 }
 0x74e   : > { %v6409_v39 = vpop.f32.mrb[2].mxu0  ;;  %v6504_v31 = vrot.slane %v6481_v20, 2 }
 0x74f   : > { %v6451_v45 = vmul.f32 %v9309_v4, %v6450_v41  ;;  %v9276_v50 = vpop.f32.mrb[3].mxu0  ;;  %v6484_v57 = vsel %vm6472_vm2, %v6466_v21, %v6478_v3  ;;  %v6538_v41 = vrot.slane %v12194_v7, %v6537_v46 }
 0x750   : > { %v6527_v34 = vrot.slane %v6484_v57, 2 }
 0x751   : > { %v6461_v53 = vadd.f32 %v6460_v38, %v6451_v45 }
 0x753   : > { %vm6467_vm0 = vcmp.gt.f32.partialorder %v6461_v53, 0.0  ;;  %v6473_v13 = vmul.f32 0.1, %v6461_v53 }
 0x755   : > { %v6479_v44 = vsel %vm6467_vm0, %v6461_v53, %v6473_v13 }
 0x756   : > { %v6486_v10 = vrot.slane %v6479_v44, 2  ;;  %v6489_v61 = vrot.slane %v6479_v44, 4  ;;  %v6492_v54 = vrot.slane %v6479_v44, 6 }
 0x758   : > { %v6488_v12 = vmax.f32 %v6479_v44, %v6486_v10 }
 0x75a   : > { %v6491_v43 = vmax.f32 %v6488_v12, %v6489_v61 }
 0x75c   : > { %v6494_v47 = vmax.f32 %v6491_v43, %v6492_v54 }
 0x75e   : > { %v6498_v58 = vmax.f32 %v6494_v47, %v6496_v62 }
 0x760   : > { %v6501_v40 = vmax.f32 %v6498_v58, %v6499_v33 }
 0x762   : > { %v6502_v23 = vmax.f32 %v6501_v40, %v6481_v20 }
 0x764   : > { %v6506_v8 = vmax.f32 %v6502_v23, %v6504_v31 }
 0x766   : > { %v6507_v11 = vmax.f32 %v6506_v8, %v6482_v9 }
 0x768   : > { %v6511_v59 = vmax.f32 %v6507_v11, %v6509_v51 }
 0x76a   : > { %v6514_v49 = vmax.f32 %v6511_v59, %v6512_v48 }
 0x76c   : > { %v6517_v30 = vmax.f32 %v6514_v49, %v6515_v17 }
 0x76e   : > { %v6521_v19 = vmax.f32 %v6517_v30, %v6519_v25 }
 0x770   : > { %v6524_v18 = vmax.f32 %v6521_v19, %v6522_v37 }
 0x772   : > { %v6525_v0 = vmax.f32 %v6524_v18, %v6484_v57 }
 0x774   : > { %v6529_v60 = vmax.f32 %v6525_v0, %v6527_v34 }
 0x776   : > { %v6534_v27 = vmul.f32 %v6533_v15, %v6529_v60 }
 0x778   : > { %v6539_v1 = vadd.f32 %v6538_v41, %v6534_v27 }
 0x77a   : > { %vm6540_vm6 = vcmp.gt.f32.partialorder %v6539_v1, 0.0  ;;  %v6541_v26 = vmul.f32 0.1, %v6539_v1 }
 0x77c   : > { %v6542_v38 = vsel %vm6540_vm6, %v6539_v1, %v6541_v26 }
 0x77d   : > { %6543 = vst [vmem:[%s245_s4] sm:$0x3] %v6542_v38 }
 0x77e PF: > { %p16_p8 = scmp.ge.s32.totalorder %s10425_s17, 5   ;;  %s12247_s12 = smov %s10367_s13 }
 0x77f   : > { %s12248_s13 = smov %s10371_s14  ;;  %s12249_s14 = smov %s10435_s20 }
 0x780   : > { %s12250_s15 = smov %s10425_s17  ;;  %18 = sbr.rel (!%p16_p8) target bundleno = 5 (0x5), region = 122 }
 0x787   :  { %6563 = vsyncpa [#allocation3], 1 }
 0x788   :  { %6565 = vsyncpa [#allocation3 + $0x1], 1 }
 0x789   :  { %6566 = vsyncpa [#allocation5], 1 }
 0x78a   :  { %6568 = vsyncpa [#allocation5 + $0x1], 1 }

</bundles_post_ra>
